<compile_context>
chip_gen: v7x
topology: tpu7x:2x2x1
jax: 0.10.0
libtpu: 0.0.40
codegen_flags: <defaults>
</compile_context>

<pallas_src>
import math

import jax
import jax.numpy as jnp
from jax.experimental import pallas as pl
from jax.experimental.pallas import tpu as pltpu

# ----------------------------- configuration --------------------------------
IMAGE_SIZE = 64
PATCH_SIZE = 16
IN_CHANNELS = 1
EMBED_DIM = 64
DEPTH = 2
NUM_HEADS = 4
MLP_RATIO = 4.0
HEAD_DIM = EMBED_DIM // NUM_HEADS
SCALE = HEAD_DIM ** (-0.5)
NUM_PATCHES = (IMAGE_SIZE // PATCH_SIZE) ** 2          # 16
SEQ_LEN = NUM_PATCHES + 1                              # 17 (+cls)
HIDDEN_DIM = int(EMBED_DIM * MLP_RATIO)                # 256
PATCH_K = IN_CHANNELS * PATCH_SIZE * PATCH_SIZE        # 256
LN_EPS = 1e-5
B_EXAMPLE = 4


# ------------------------------ kernel helpers -------------------------------
def _layer_norm(x, g, b):
    mu = jnp.mean(x, axis=-1, keepdims=True)
    var = jnp.mean((x - mu) ** 2, axis=-1, keepdims=True)
    return (x - mu) * jax.lax.rsqrt(var + LN_EPS) * g + b


def _gelu_exact(x):
    # PyTorch nn.GELU() default = exact erf formulation.
    return 0.5 * x * (1.0 + jax.lax.erf(x * (1.0 / math.sqrt(2.0))))


# ------------------------------ fused Pallas kernel ---------------------------
def _make_kernel(bstep):
    """Build the fused encoder kernel for `bstep` examples per grid step."""
    rows = bstep * SEQ_LEN

    def kernel(patches_ref, pos_ref, wpatch_ref, wqkv_ref, bqkv_ref,
               wproj_ref, wfc1_ref, bfc1_ref, wfc2_ref, vece_ref, lnf_ref,
               o_ref, attn_sc):
        # ---- patch embedding: conv(k=s=patch) == linear over flat patches ----
        # patches are pre-padded with a zero cls row per example; cls token and
        # b_patch are folded into pos_ref, so this matmul + add yields x directly.
        x = jnp.dot(patches_ref[0], wpatch_ref[...],
                    preferred_element_type=jnp.float32) + pos_ref[...]     # (rows, E) f32

        for d in range(DEPTH):                                     # static unroll
            vece = vece_ref[d]                                     # (6, E) f32
            ln1_g, ln1_b = vece[0:1, :], vece[1:2, :]
            b_proj = vece[2:3, :]
            ln2_g, ln2_b = vece[3:4, :], vece[4:5, :]
            b_fc2 = vece[5:6, :]

            # ---------------- attention branch ----------------
            h = _layer_norm(x, ln1_g, ln1_b)                       # (rows, E) f32
            # fused QKV: one lane-dense (rows,64)@(64,192) MXU op
            qkv = jnp.dot(h.astype(jnp.bfloat16), wqkv_ref[d],
                          preferred_element_type=jnp.float32) + bqkv_ref[d]   # (rows, 3E)

            # tiny per-(example, head) scores / softmax / AV (static unroll)
            for bi in range(bstep):
                r0 = bi * SEQ_LEN
                for hh in range(NUM_HEADS):
                    c = hh * HEAD_DIM
                    q = qkv[r0:r0 + SEQ_LEN, c:c + HEAD_DIM]
                    k = qkv[r0:r0 + SEQ_LEN,
                            EMBED_DIM + c:EMBED_DIM + c + HEAD_DIM]
                    v = qkv[r0:r0 + SEQ_LEN,
                            2 * EMBED_DIM + c:2 * EMBED_DIM + c + HEAD_DIM]
                    # NT matmul: contract dim 1 of both operands (no transpose).
                    s = jax.lax.dot_general(
                        q.astype(jnp.bfloat16), k.astype(jnp.bfloat16),
                        (((1,), (1,)), ((), ())),
                        preferred_element_type=jnp.float32) * SCALE          # (S, S)
                    s = s - jnp.max(s, axis=-1, keepdims=True)
                    p = jnp.exp(s)
                    p = p * pl.reciprocal(jnp.sum(p, axis=-1, keepdims=True),
                                          approx=True)             # softmax (dropout=id)
                    oh = jnp.dot(p.astype(jnp.bfloat16), v.astype(jnp.bfloat16),
                                 preferred_element_type=jnp.float32)         # (S, d)
                    # stash head output at its 16-lane offset (no lane concat)
                    attn_sc[r0:r0 + SEQ_LEN, c:c + HEAD_DIM] = oh

            # single lane-dense output projection over all heads + examples
            attn = jnp.dot(attn_sc[...].astype(jnp.bfloat16), wproj_ref[d],
                           preferred_element_type=jnp.float32) + b_proj      # (rows, E)
            x = x + attn

            # ---------------- MLP branch ----------------
            h = _layer_norm(x, ln2_g, ln2_b)
            h = jnp.dot(h.astype(jnp.bfloat16), wfc1_ref[d],
                        preferred_element_type=jnp.float32) + bfc1_ref[d]    # (rows, H)
            h = _gelu_exact(h)
            h = jnp.dot(h.astype(jnp.bfloat16), wfc2_ref[d],
                        preferred_element_type=jnp.float32) + b_fc2          # (rows, E)
            x = x + h

        # ---- final LayerNorm on cls rows only; one (bstep, E) store ----
        cls = jnp.concatenate(
            [x[bi * SEQ_LEN:bi * SEQ_LEN + 1, :] for bi in range(bstep)],
            axis=0)                                                # (bstep, E)
        lnf = lnf_ref[...]                                         # (2, E) = [gamma; beta]
        o_ref[0] = _layer_norm(cls, lnf[0:1, :], lnf[1:2, :]).astype(o_ref.dtype)

    return kernel


# ------------------------------ Pallas wrapper --------------------------------
def _const_spec(shape):
    nd = len(shape)
    return pl.BlockSpec(shape, lambda s: (0,) * nd)   # constant block -> fetched once


def symbol_encoder_pallas(patches, pos_tiled, p, bstep):
    """patches: (num_steps, bstep*SEQ_LEN, PATCH_K) bf16, zero cls rows included.
    pos_tiled: (bstep*SEQ_LEN, E) f32 with cls token and b_patch folded in."""
    num_steps = patches.shape[0]
    rows = bstep * SEQ_LEN

    in_specs = [
        pl.BlockSpec((1, rows, PATCH_K), lambda s: (s, 0, 0)),     # per-step patches
        _const_spec(pos_tiled.shape),
        _const_spec(p["w_patch"].shape),
        _const_spec(p["w_qkv"].shape),
        _const_spec(p["b_qkv"].shape),
        _const_spec(p["w_proj"].shape),
        _const_spec(p["w_fc1"].shape),
        _const_spec(p["b_fc1"].shape),
        _const_spec(p["w_fc2"].shape),
        _const_spec(p["vec_e"].shape),
        _const_spec(p["ln_f"].shape),
    ]
    out = pl.pallas_call(
        _make_kernel(bstep),
        out_shape=jax.ShapeDtypeStruct((num_steps, bstep, EMBED_DIM), jnp.float32),
        grid=(num_steps,),
        in_specs=in_specs,
        out_specs=pl.BlockSpec((1, bstep, EMBED_DIM), lambda s: (s, 0, 0)),
        scratch_shapes=[pltpu.VMEM((rows, EMBED_DIM), jnp.float32)],   # head-concat scratch
        compiler_params=pltpu.CompilerParams(
            dimension_semantics=("parallel",)),   # v7x megacore: one step per TC
    )(patches, pos_tiled, p["w_patch"], p["w_qkv"], p["b_qkv"], p["w_proj"],
      p["w_fc1"], p["b_fc1"], p["w_fc2"], p["vec_e"], p["ln_f"])
    return out.reshape(num_steps * bstep, EMBED_DIM)


# ------------------------------ parameter init -------------------------------
def init_params(key):
    keys = iter(jax.random.split(key, 16))

    w_patch = 0.02 * jax.random.normal(next(keys), (PATCH_K, EMBED_DIM), jnp.float32)
    b_patch = jnp.zeros((EMBED_DIM,), jnp.float32)
    cls = jax.random.normal(next(keys), (1, EMBED_DIM), jnp.float32)
    pos = jax.random.normal(next(keys), (SEQ_LEN, EMBED_DIM), jnp.float32)
    # Fold cls token and patch-projection bias into the positional table:
    #   row 0 (cls row, zero patch input):  pos[0] + cls
    #   rows 1..:                           pos[i] + b_patch
    pos_aug = jnp.concatenate([pos[0:1] + cls, pos[1:] + b_patch[None, :]], axis=0)

    w_qkv, b_qkv, w_proj, w_fc1, b_fc1, w_fc2, vec_e = ([] for _ in range(7))
    for _ in range(DEPTH):
        wqkv = 0.02 * jax.random.normal(next(keys), (EMBED_DIM, 3 * EMBED_DIM), jnp.float32)
        bqkv = jnp.zeros((1, 3 * EMBED_DIM), jnp.float32)
        wproj = 0.02 * jax.random.normal(next(keys), (EMBED_DIM, EMBED_DIM), jnp.float32)
        bproj = jnp.zeros((EMBED_DIM,), jnp.float32)
        wfc1 = 0.02 * jax.random.normal(next(keys), (EMBED_DIM, HIDDEN_DIM), jnp.float32)
        bfc1 = jnp.zeros((1, HIDDEN_DIM), jnp.float32)
        wfc2 = 0.02 * jax.random.normal(next(keys), (HIDDEN_DIM, EMBED_DIM), jnp.float32)
        bfc2 = jnp.zeros((EMBED_DIM,), jnp.float32)
        ln1_g, ln1_b = jnp.ones((EMBED_DIM,), jnp.float32), jnp.zeros((EMBED_DIM,), jnp.float32)
        ln2_g, ln2_b = jnp.ones((EMBED_DIM,), jnp.float32), jnp.zeros((EMBED_DIM,), jnp.float32)

        w_qkv.append(wqkv)
        b_qkv.append(bqkv)
        w_proj.append(wproj)
        w_fc1.append(wfc1)
        b_fc1.append(bfc1)
        w_fc2.append(wfc2)
        # packed (1,E)-sized vectors: [ln1_g, ln1_b, b_proj, ln2_g, ln2_b, b_fc2]
        vec_e.append(jnp.stack([ln1_g, ln1_b, bproj, ln2_g, ln2_b, bfc2], axis=0))

    return {
        # MXU operands stored in bf16 (native on v6e/v7x MXU; halves weight DMA).
        "w_patch": w_patch.astype(jnp.bfloat16),
        "w_qkv": jnp.stack(w_qkv).astype(jnp.bfloat16),     # (DEPTH, E, 3E)
        "w_proj": jnp.stack(w_proj).astype(jnp.bfloat16),   # (DEPTH, E, E)
        "w_fc1": jnp.stack(w_fc1).astype(jnp.bfloat16),     # (DEPTH, E, H)
        "w_fc2": jnp.stack(w_fc2).astype(jnp.bfloat16),     # (DEPTH, H, E)
        # small vectors / LN params stay f32 (elementwise path, safe on v5e).
        "b_qkv": jnp.stack(b_qkv),                          # (DEPTH, 1, 3E)
        "b_fc1": jnp.stack(b_fc1),                           # (DEPTH, 1, H)
        "vec_e": jnp.stack(vec_e),                            # (DEPTH, 6, E)
        "ln_f": jnp.concatenate([jnp.ones((1, EMBED_DIM), jnp.float32),
                                 jnp.zeros((1, EMBED_DIM), jnp.float32)], axis=0),
        "pos_aug": pos_aug,                                   # (SEQ_LEN, E) precomputed
    }


# ------------------------------ forward pass ---------------------------------
@jax.jit
def symbol_encoder_forward(x, params):
    """x: (B, C, H, W) NCHW -> (B, E) cls embedding."""
    B, C, H, W = x.shape
    ps = PATCH_SIZE
    hp, wp = H // ps, W // ps

    # Non-overlapping patches, (C, kh, kw) flatten order == PyTorch conv weight layout.
    # TODO(synk): if xprof ever shows this XLA prep comparable to the kernel, fold the
    # patch extraction into the kernel's index_map instead.
    xp = x.reshape(B, C, hp, ps, wp, ps)
    xp = xp.transpose(0, 2, 4, 1, 3, 5).reshape(B, hp * wp, C * ps * ps)   # (B, P, K)

    # Pre-pad a zero cls row per example so the patch matmul yields (17, E) directly.
    xp = jnp.concatenate([jnp.zeros((B, 1, PATCH_K), xp.dtype), xp], axis=1)  # (B, N, K)

    # Batch examples per grid step; keep (up to) a 2-wide parallel grid for v7x.
    bstep = max(1, (B + 1) // 2)
    num_steps = (B + bstep - 1) // bstep
    pad = num_steps * bstep - B
    if pad:
        xp = jnp.concatenate([xp, jnp.zeros((pad, SEQ_LEN, PATCH_K), xp.dtype)], axis=0)
    xp = xp.reshape(num_steps, bstep * SEQ_LEN, PATCH_K).astype(jnp.bfloat16)

    pos_tiled = jnp.tile(params["pos_aug"], (bstep, 1))     # (bstep*N, E)

    # TODO(synk): dropout / gradient checkpointing are training-only (identity in eval).
    out = symbol_encoder_pallas(xp, pos_tiled, params, bstep)
    return out[:B]


# ---------------------------------- main --------------------------------------
if __name__ == "__main__":
    key = jax.random.PRNGKey(0)
    k_params, k_input = jax.random.split(key)
    params = init_params(k_params)
    x = jax.random.normal(k_input, (B_EXAMPLE, IN_CHANNELS, IMAGE_SIZE, IMAGE_SIZE),
                          dtype=jnp.float32)
    out = symbol_encoder_forward(x, params)
    out = jax.block_until_ready(out)
    assert out.shape == (B_EXAMPLE, EMBED_DIM), out.shape
    assert bool(jnp.all(jnp.isfinite(out)))
    print("KERNEL_OK")
</pallas_src>

<mosaic_0001>
module attributes {stable_mosaic.version = 11 : i64} {
  func.func @kernel(%arg0: i32, %arg1: memref<1x34x256xbf16, #tpu.memory_space<vmem>>, %arg2: memref<34x64xf32, #tpu.memory_space<vmem>>, %arg3: memref<256x64xbf16, #tpu.memory_space<vmem>>, %arg4: memref<2x64x192xbf16, #tpu.memory_space<vmem>>, %arg5: memref<2x1x192xf32, #tpu.memory_space<vmem>>, %arg6: memref<2x64x64xbf16, #tpu.memory_space<vmem>>, %arg7: memref<2x64x256xbf16, #tpu.memory_space<vmem>>, %arg8: memref<2x1x256xf32, #tpu.memory_space<vmem>>, %arg9: memref<2x256x64xbf16, #tpu.memory_space<vmem>>, %arg10: memref<2x6x64xf32, #tpu.memory_space<vmem>>, %arg11: memref<2x64xf32, #tpu.memory_space<vmem>>, %arg12: memref<1x2x64xf32, #tpu.memory_space<vmem>>, %arg13: memref<34x64xf32, #tpu.memory_space<vmem>>) attributes {dimension_semantics = [#tpu.dimension_semantics<parallel>], iteration_bounds = array<i64: 2>, scalar_prefetch = 0 : i64, scratch_operands = 1 : i64, tpu.core_type = #tpu.core_type<tc>, window_params = [{transform_indices = @transform_0, window_bounds = array<i64: 1, 34, 256>}, {pipeline_mode = #tpu.pipeline_mode<synchronous>, transform_indices = @transform_1, window_bounds = array<i64: 34, 64>}, {pipeline_mode = #tpu.pipeline_mode<synchronous>, transform_indices = @transform_2, window_bounds = array<i64: 256, 64>}, {pipeline_mode = #tpu.pipeline_mode<synchronous>, transform_indices = @transform_3, window_bounds = array<i64: 2, 64, 192>}, {pipeline_mode = #tpu.pipeline_mode<synchronous>, transform_indices = @transform_4, window_bounds = array<i64: 2, 1, 192>}, {pipeline_mode = #tpu.pipeline_mode<synchronous>, transform_indices = @transform_5, window_bounds = array<i64: 2, 64, 64>}, {pipeline_mode = #tpu.pipeline_mode<synchronous>, transform_indices = @transform_6, window_bounds = array<i64: 2, 64, 256>}, {pipeline_mode = #tpu.pipeline_mode<synchronous>, transform_indices = @transform_7, window_bounds = array<i64: 2, 1, 256>}, {pipeline_mode = #tpu.pipeline_mode<synchronous>, transform_indices = @transform_8, window_bounds = array<i64: 2, 256, 64>}, {pipeline_mode = #tpu.pipeline_mode<synchronous>, transform_indices = @transform_9, window_bounds = array<i64: 2, 6, 64>}, {pipeline_mode = #tpu.pipeline_mode<synchronous>, transform_indices = @transform_10, window_bounds = array<i64: 2, 64>}, {transform_indices = @transform_11, window_bounds = array<i64: 1, 2, 64>}]} {
    %c0 = arith.constant 0 : index
    %c0_0 = arith.constant 0 : index
    %c0_1 = arith.constant 0 : index
    %0 = vector.load %arg1[%c0, %c0_0, %c0_1] : memref<1x34x256xbf16, #tpu.memory_space<vmem>>, vector<1x34x256xbf16>
    %1 = vector.shape_cast %0 : vector<1x34x256xbf16> to vector<34x256xbf16>
    %c0_2 = arith.constant 0 : index
    %c0_3 = arith.constant 0 : index
    %2 = vector.load %arg3[%c0_2, %c0_3] : memref<256x64xbf16, #tpu.memory_space<vmem>>, vector<256x64xbf16>
    %cst = arith.constant dense<0.000000e+00> : vector<34x64xf32>
    %3 = tpu.matmul %1, %2, %cst {dimension_numbers = #tpu.dot_dimension_numbers<[1], [0], [0], [1], [0, 0, 1, 1], [], []>} : vector<34x256xbf16>, vector<256x64xbf16>, vector<34x64xf32> -> vector<34x64xf32>
    %c0_4 = arith.constant 0 : index
    %c0_5 = arith.constant 0 : index
    %4 = vector.load %arg2[%c0_4, %c0_5] : memref<34x64xf32, #tpu.memory_space<vmem>>, vector<34x64xf32>
    %5 = arith.addf %3, %4 : vector<34x64xf32>
    %c0_6 = arith.constant 0 : index
    %c0_7 = arith.constant 0 : index
    %c0_8 = arith.constant 0 : index
    %6 = vector.load %arg10[%c0_6, %c0_7, %c0_8] : memref<2x6x64xf32, #tpu.memory_space<vmem>>, vector<1x6x64xf32>
    %7 = vector.shape_cast %6 : vector<1x6x64xf32> to vector<6x64xf32>
    %8 = vector.extract_strided_slice %7 {offsets = [0, 0], sizes = [1, 64], strides = [1, 1]} : vector<6x64xf32> to vector<1x64xf32>
    %9 = vector.extract_strided_slice %7 {offsets = [1, 0], sizes = [1, 64], strides = [1, 1]} : vector<6x64xf32> to vector<1x64xf32>
    %10 = vector.extract_strided_slice %7 {offsets = [2, 0], sizes = [1, 64], strides = [1, 1]} : vector<6x64xf32> to vector<1x64xf32>
    %11 = vector.extract_strided_slice %7 {offsets = [3, 0], sizes = [1, 64], strides = [1, 1]} : vector<6x64xf32> to vector<1x64xf32>
    %12 = vector.extract_strided_slice %7 {offsets = [4, 0], sizes = [1, 64], strides = [1, 1]} : vector<6x64xf32> to vector<1x64xf32>
    %13 = vector.extract_strided_slice %7 {offsets = [5, 0], sizes = [1, 64], strides = [1, 1]} : vector<6x64xf32> to vector<1x64xf32>
    %cst_9 = arith.constant dense<0.000000e+00> : vector<34xf32>
    %14 = vector.multi_reduction <add>, %5, %cst_9 [1] : vector<34x64xf32> to vector<34xf32>
    %15 = vector.shape_cast %14 : vector<34xf32> to vector<34x1xf32>
    %cst_10 = arith.constant 6.400000e+01 : f32
    %16 = vector.broadcast %cst_10 : f32 to vector<34x1xf32>
    %17 = arith.divf %15, %16 : vector<34x1xf32>
    %18 = vector.broadcast %17 : vector<34x1xf32> to vector<34x64xf32>
    %19 = arith.subf %5, %18 : vector<34x64xf32>
    %20 = arith.mulf %19, %19 : vector<34x64xf32>
    %cst_11 = arith.constant dense<0.000000e+00> : vector<34xf32>
    %21 = vector.multi_reduction <add>, %20, %cst_11 [1] : vector<34x64xf32> to vector<34xf32>
    %22 = vector.shape_cast %21 : vector<34xf32> to vector<34x1xf32>
    %cst_12 = arith.constant 6.400000e+01 : f32
    %23 = vector.broadcast %cst_12 : f32 to vector<34x1xf32>
    %24 = arith.divf %22, %23 : vector<34x1xf32>
    %25 = vector.broadcast %17 : vector<34x1xf32> to vector<34x64xf32>
    %26 = arith.subf %5, %25 : vector<34x64xf32>
    %cst_13 = arith.constant 9.99999974E-6 : f32
    %27 = vector.broadcast %cst_13 : f32 to vector<34x1xf32>
    %28 = arith.addf %24, %27 : vector<34x1xf32>
    %29 = math.rsqrt %28 : vector<34x1xf32>
    %30 = vector.broadcast %29 : vector<34x1xf32> to vector<34x64xf32>
    %31 = arith.mulf %26, %30 : vector<34x64xf32>
    %32 = vector.broadcast %8 : vector<1x64xf32> to vector<34x64xf32>
    %33 = arith.mulf %31, %32 : vector<34x64xf32>
    %34 = vector.broadcast %9 : vector<1x64xf32> to vector<34x64xf32>
    %35 = arith.addf %33, %34 : vector<34x64xf32>
    %36 = arith.truncf %35 : vector<34x64xf32> to vector<34x64xbf16>
    %c0_14 = arith.constant 0 : index
    %c0_15 = arith.constant 0 : index
    %c0_16 = arith.constant 0 : index
    %37 = vector.load %arg4[%c0_14, %c0_15, %c0_16] : memref<2x64x192xbf16, #tpu.memory_space<vmem>>, vector<1x64x192xbf16>
    %38 = vector.shape_cast %37 : vector<1x64x192xbf16> to vector<64x192xbf16>
    %cst_17 = arith.constant dense<0.000000e+00> : vector<34x192xf32>
    %39 = tpu.matmul %36, %38, %cst_17 {dimension_numbers = #tpu.dot_dimension_numbers<[1], [0], [0], [1], [0, 0, 1, 1], [], []>} : vector<34x64xbf16>, vector<64x192xbf16>, vector<34x192xf32> -> vector<34x192xf32>
    %c0_18 = arith.constant 0 : index
    %c0_19 = arith.constant 0 : index
    %c0_20 = arith.constant 0 : index
    %40 = vector.load %arg5[%c0_18, %c0_19, %c0_20] : memref<2x1x192xf32, #tpu.memory_space<vmem>>, vector<1x1x192xf32>
    %41 = vector.shape_cast %40 : vector<1x1x192xf32> to vector<1x192xf32>
    %42 = vector.broadcast %41 : vector<1x192xf32> to vector<34x192xf32>
    %43 = arith.addf %39, %42 : vector<34x192xf32>
    %44 = vector.extract_strided_slice %43 {offsets = [0, 0], sizes = [17, 16], strides = [1, 1]} : vector<34x192xf32> to vector<17x16xf32>
    %45 = vector.extract_strided_slice %43 {offsets = [0, 64], sizes = [17, 16], strides = [1, 1]} : vector<34x192xf32> to vector<17x16xf32>
    %46 = vector.extract_strided_slice %43 {offsets = [0, 128], sizes = [17, 16], strides = [1, 1]} : vector<34x192xf32> to vector<17x16xf32>
    %47 = arith.truncf %44 : vector<17x16xf32> to vector<17x16xbf16>
    %48 = arith.truncf %45 : vector<17x16xf32> to vector<17x16xbf16>
    %cst_21 = arith.constant dense<0.000000e+00> : vector<17x17xf32>
    %49 = tpu.matmul %47, %48, %cst_21 {dimension_numbers = #tpu.dot_dimension_numbers<[1], [1], [0], [0], [0, 0, 1, 0], [], []>} : vector<17x16xbf16>, vector<17x16xbf16>, vector<17x17xf32> -> vector<17x17xf32>
    %cst_22 = arith.constant 2.500000e-01 : f32
    %50 = vector.broadcast %cst_22 : f32 to vector<17x17xf32>
    %51 = arith.mulf %49, %50 : vector<17x17xf32>
    %cst_23 = arith.constant dense<0xFF800000> : vector<17xf32>
    %52 = vector.multi_reduction <maximumf>, %51, %cst_23 [1] : vector<17x17xf32> to vector<17xf32>
    %53 = vector.shape_cast %52 : vector<17xf32> to vector<17x1xf32>
    %54 = vector.broadcast %53 : vector<17x1xf32> to vector<17x17xf32>
    %55 = arith.subf %51, %54 : vector<17x17xf32>
    %56 = math.exp %55 : vector<17x17xf32>
    %cst_24 = arith.constant dense<0.000000e+00> : vector<17xf32>
    %57 = vector.multi_reduction <add>, %56, %cst_24 [1] : vector<17x17xf32> to vector<17xf32>
    %58 = vector.shape_cast %57 : vector<17xf32> to vector<17x1xf32>
    %59 = tpu.reciprocal %58 {approx = true} : vector<17x1xf32> -> vector<17x1xf32>
    %60 = vector.broadcast %59 : vector<17x1xf32> to vector<17x17xf32>
    %61 = arith.mulf %56, %60 : vector<17x17xf32>
    %62 = arith.truncf %61 : vector<17x17xf32> to vector<17x17xbf16>
    %63 = arith.truncf %46 : vector<17x16xf32> to vector<17x16xbf16>
    %cst_25 = arith.constant dense<0.000000e+00> : vector<17x16xf32>
    %64 = tpu.matmul %62, %63, %cst_25 {dimension_numbers = #tpu.dot_dimension_numbers<[1], [0], [0], [1], [0, 0, 1, 1], [], []>} : vector<17x17xbf16>, vector<17x16xbf16>, vector<17x16xf32> -> vector<17x16xf32>
    %c0_26 = arith.constant 0 : index
    %c0_27 = arith.constant 0 : index
    %65 = vector.load %arg13[%c0_26, %c0_27] : memref<34x64xf32, #tpu.memory_space<vmem>>, vector<17x16xf32>
    tpu.vector_store %arg13[%c0_26, %c0_27], %64 {strides = array<i32>} : memref<34x64xf32, #tpu.memory_space<vmem>>, vector<17x16xf32>,
    %66 = vector.extract_strided_slice %43 {offsets = [0, 16], sizes = [17, 16], strides = [1, 1]} : vector<34x192xf32> to vector<17x16xf32>
    %67 = vector.extract_strided_slice %43 {offsets = [0, 80], sizes = [17, 16], strides = [1, 1]} : vector<34x192xf32> to vector<17x16xf32>
    %68 = vector.extract_strided_slice %43 {offsets = [0, 144], sizes = [17, 16], strides = [1, 1]} : vector<34x192xf32> to vector<17x16xf32>
    %69 = arith.truncf %66 : vector<17x16xf32> to vector<17x16xbf16>
    %70 = arith.truncf %67 : vector<17x16xf32> to vector<17x16xbf16>
    %cst_28 = arith.constant dense<0.000000e+00> : vector<17x17xf32>
    %71 = tpu.matmul %69, %70, %cst_28 {dimension_numbers = #tpu.dot_dimension_numbers<[1], [1], [0], [0], [0, 0, 1, 0], [], []>} : vector<17x16xbf16>, vector<17x16xbf16>, vector<17x17xf32> -> vector<17x17xf32>
    %cst_29 = arith.constant 2.500000e-01 : f32
    %72 = vector.broadcast %cst_29 : f32 to vector<17x17xf32>
    %73 = arith.mulf %71, %72 : vector<17x17xf32>
    %cst_30 = arith.constant dense<0xFF800000> : vector<17xf32>
    %74 = vector.multi_reduction <maximumf>, %73, %cst_30 [1] : vector<17x17xf32> to vector<17xf32>
    %75 = vector.shape_cast %74 : vector<17xf32> to vector<17x1xf32>
    %76 = vector.broadcast %75 : vector<17x1xf32> to vector<17x17xf32>
    %77 = arith.subf %73, %76 : vector<17x17xf32>
    %78 = math.exp %77 : vector<17x17xf32>
    %cst_31 = arith.constant dense<0.000000e+00> : vector<17xf32>
    %79 = vector.multi_reduction <add>, %78, %cst_31 [1] : vector<17x17xf32> to vector<17xf32>
    %80 = vector.shape_cast %79 : vector<17xf32> to vector<17x1xf32>
    %81 = tpu.reciprocal %80 {approx = true} : vector<17x1xf32> -> vector<17x1xf32>
    %82 = vector.broadcast %81 : vector<17x1xf32> to vector<17x17xf32>
    %83 = arith.mulf %78, %82 : vector<17x17xf32>
    %84 = arith.truncf %83 : vector<17x17xf32> to vector<17x17xbf16>
    %85 = arith.truncf %68 : vector<17x16xf32> to vector<17x16xbf16>
    %cst_32 = arith.constant dense<0.000000e+00> : vector<17x16xf32>
    %86 = tpu.matmul %84, %85, %cst_32 {dimension_numbers = #tpu.dot_dimension_numbers<[1], [0], [0], [1], [0, 0, 1, 1], [], []>} : vector<17x17xbf16>, vector<17x16xbf16>, vector<17x16xf32> -> vector<17x16xf32>
    %c0_33 = arith.constant 0 : index
    %c16 = arith.constant 16 : index
    %87 = vector.load %arg13[%c0_33, %c16] : memref<34x64xf32, #tpu.memory_space<vmem>>, vector<17x16xf32>
    tpu.vector_store %arg13[%c0_33, %c16], %86 {strides = array<i32>} : memref<34x64xf32, #tpu.memory_space<vmem>>, vector<17x16xf32>,
    %88 = vector.extract_strided_slice %43 {offsets = [0, 32], sizes = [17, 16], strides = [1, 1]} : vector<34x192xf32> to vector<17x16xf32>
    %89 = vector.extract_strided_slice %43 {offsets = [0, 96], sizes = [17, 16], strides = [1, 1]} : vector<34x192xf32> to vector<17x16xf32>
    %90 = vector.extract_strided_slice %43 {offsets = [0, 160], sizes = [17, 16], strides = [1, 1]} : vector<34x192xf32> to vector<17x16xf32>
    %91 = arith.truncf %88 : vector<17x16xf32> to vector<17x16xbf16>
    %92 = arith.truncf %89 : vector<17x16xf32> to vector<17x16xbf16>
    %cst_34 = arith.constant dense<0.000000e+00> : vector<17x17xf32>
    %93 = tpu.matmul %91, %92, %cst_34 {dimension_numbers = #tpu.dot_dimension_numbers<[1], [1], [0], [0], [0, 0, 1, 0], [], []>} : vector<17x16xbf16>, vector<17x16xbf16>, vector<17x17xf32> -> vector<17x17xf32>
    %cst_35 = arith.constant 2.500000e-01 : f32
    %94 = vector.broadcast %cst_35 : f32 to vector<17x17xf32>
    %95 = arith.mulf %93, %94 : vector<17x17xf32>
    %cst_36 = arith.constant dense<0xFF800000> : vector<17xf32>
    %96 = vector.multi_reduction <maximumf>, %95, %cst_36 [1] : vector<17x17xf32> to vector<17xf32>
    %97 = vector.shape_cast %96 : vector<17xf32> to vector<17x1xf32>
    %98 = vector.broadcast %97 : vector<17x1xf32> to vector<17x17xf32>
    %99 = arith.subf %95, %98 : vector<17x17xf32>
    %100 = math.exp %99 : vector<17x17xf32>
    %cst_37 = arith.constant dense<0.000000e+00> : vector<17xf32>
    %101 = vector.multi_reduction <add>, %100, %cst_37 [1] : vector<17x17xf32> to vector<17xf32>
    %102 = vector.shape_cast %101 : vector<17xf32> to vector<17x1xf32>
    %103 = tpu.reciprocal %102 {approx = true} : vector<17x1xf32> -> vector<17x1xf32>
    %104 = vector.broadcast %103 : vector<17x1xf32> to vector<17x17xf32>
    %105 = arith.mulf %100, %104 : vector<17x17xf32>
    %106 = arith.truncf %105 : vector<17x17xf32> to vector<17x17xbf16>
    %107 = arith.truncf %90 : vector<17x16xf32> to vector<17x16xbf16>
    %cst_38 = arith.constant dense<0.000000e+00> : vector<17x16xf32>
    %108 = tpu.matmul %106, %107, %cst_38 {dimension_numbers = #tpu.dot_dimension_numbers<[1], [0], [0], [1], [0, 0, 1, 1], [], []>} : vector<17x17xbf16>, vector<17x16xbf16>, vector<17x16xf32> -> vector<17x16xf32>
    %c0_39 = arith.constant 0 : index
    %c32 = arith.constant 32 : index
    %109 = vector.load %arg13[%c0_39, %c32] : memref<34x64xf32, #tpu.memory_space<vmem>>, vector<17x16xf32>
    tpu.vector_store %arg13[%c0_39, %c32], %108 {strides = array<i32>} : memref<34x64xf32, #tpu.memory_space<vmem>>, vector<17x16xf32>,
    %110 = vector.extract_strided_slice %43 {offsets = [0, 48], sizes = [17, 16], strides = [1, 1]} : vector<34x192xf32> to vector<17x16xf32>
    %111 = vector.extract_strided_slice %43 {offsets = [0, 112], sizes = [17, 16], strides = [1, 1]} : vector<34x192xf32> to vector<17x16xf32>
    %112 = vector.extract_strided_slice %43 {offsets = [0, 176], sizes = [17, 16], strides = [1, 1]} : vector<34x192xf32> to vector<17x16xf32>
    %113 = arith.truncf %110 : vector<17x16xf32> to vector<17x16xbf16>
    %114 = arith.truncf %111 : vector<17x16xf32> to vector<17x16xbf16>
    %cst_40 = arith.constant dense<0.000000e+00> : vector<17x17xf32>
    %115 = tpu.matmul %113, %114, %cst_40 {dimension_numbers = #tpu.dot_dimension_numbers<[1], [1], [0], [0], [0, 0, 1, 0], [], []>} : vector<17x16xbf16>, vector<17x16xbf16>, vector<17x17xf32> -> vector<17x17xf32>
    %cst_41 = arith.constant 2.500000e-01 : f32
    %116 = vector.broadcast %cst_41 : f32 to vector<17x17xf32>
    %117 = arith.mulf %115, %116 : vector<17x17xf32>
    %cst_42 = arith.constant dense<0xFF800000> : vector<17xf32>
    %118 = vector.multi_reduction <maximumf>, %117, %cst_42 [1] : vector<17x17xf32> to vector<17xf32>
    %119 = vector.shape_cast %118 : vector<17xf32> to vector<17x1xf32>
    %120 = vector.broadcast %119 : vector<17x1xf32> to vector<17x17xf32>
    %121 = arith.subf %117, %120 : vector<17x17xf32>
    %122 = math.exp %121 : vector<17x17xf32>
    %cst_43 = arith.constant dense<0.000000e+00> : vector<17xf32>
    %123 = vector.multi_reduction <add>, %122, %cst_43 [1] : vector<17x17xf32> to vector<17xf32>
    %124 = vector.shape_cast %123 : vector<17xf32> to vector<17x1xf32>
    %125 = tpu.reciprocal %124 {approx = true} : vector<17x1xf32> -> vector<17x1xf32>
    %126 = vector.broadcast %125 : vector<17x1xf32> to vector<17x17xf32>
    %127 = arith.mulf %122, %126 : vector<17x17xf32>
    %128 = arith.truncf %127 : vector<17x17xf32> to vector<17x17xbf16>
    %129 = arith.truncf %112 : vector<17x16xf32> to vector<17x16xbf16>
    %cst_44 = arith.constant dense<0.000000e+00> : vector<17x16xf32>
    %130 = tpu.matmul %128, %129, %cst_44 {dimension_numbers = #tpu.dot_dimension_numbers<[1], [0], [0], [1], [0, 0, 1, 1], [], []>} : vector<17x17xbf16>, vector<17x16xbf16>, vector<17x16xf32> -> vector<17x16xf32>
    %c0_45 = arith.constant 0 : index
    %c48 = arith.constant 48 : index
    %131 = vector.load %arg13[%c0_45, %c48] : memref<34x64xf32, #tpu.memory_space<vmem>>, vector<17x16xf32>
    tpu.vector_store %arg13[%c0_45, %c48], %130 {strides = array<i32>} : memref<34x64xf32, #tpu.memory_space<vmem>>, vector<17x16xf32>,
    %132 = vector.extract_strided_slice %43 {offsets = [17, 0], sizes = [17, 16], strides = [1, 1]} : vector<34x192xf32> to vector<17x16xf32>
    %133 = vector.extract_strided_slice %43 {offsets = [17, 64], sizes = [17, 16], strides = [1, 1]} : vector<34x192xf32> to vector<17x16xf32>
    %134 = vector.extract_strided_slice %43 {offsets = [17, 128], sizes = [17, 16], strides = [1, 1]} : vector<34x192xf32> to vector<17x16xf32>
    %135 = arith.truncf %132 : vector<17x16xf32> to vector<17x16xbf16>
    %136 = arith.truncf %133 : vector<17x16xf32> to vector<17x16xbf16>
    %cst_46 = arith.constant dense<0.000000e+00> : vector<17x17xf32>
    %137 = tpu.matmul %135, %136, %cst_46 {dimension_numbers = #tpu.dot_dimension_numbers<[1], [1], [0], [0], [0, 0, 1, 0], [], []>} : vector<17x16xbf16>, vector<17x16xbf16>, vector<17x17xf32> -> vector<17x17xf32>
    %cst_47 = arith.constant 2.500000e-01 : f32
    %138 = vector.broadcast %cst_47 : f32 to vector<17x17xf32>
    %139 = arith.mulf %137, %138 : vector<17x17xf32>
    %cst_48 = arith.constant dense<0xFF800000> : vector<17xf32>
    %140 = vector.multi_reduction <maximumf>, %139, %cst_48 [1] : vector<17x17xf32> to vector<17xf32>
    %141 = vector.shape_cast %140 : vector<17xf32> to vector<17x1xf32>
    %142 = vector.broadcast %141 : vector<17x1xf32> to vector<17x17xf32>
    %143 = arith.subf %139, %142 : vector<17x17xf32>
    %144 = math.exp %143 : vector<17x17xf32>
    %cst_49 = arith.constant dense<0.000000e+00> : vector<17xf32>
    %145 = vector.multi_reduction <add>, %144, %cst_49 [1] : vector<17x17xf32> to vector<17xf32>
    %146 = vector.shape_cast %145 : vector<17xf32> to vector<17x1xf32>
    %147 = tpu.reciprocal %146 {approx = true} : vector<17x1xf32> -> vector<17x1xf32>
    %148 = vector.broadcast %147 : vector<17x1xf32> to vector<17x17xf32>
    %149 = arith.mulf %144, %148 : vector<17x17xf32>
    %150 = arith.truncf %149 : vector<17x17xf32> to vector<17x17xbf16>
    %151 = arith.truncf %134 : vector<17x16xf32> to vector<17x16xbf16>
    %cst_50 = arith.constant dense<0.000000e+00> : vector<17x16xf32>
    %152 = tpu.matmul %150, %151, %cst_50 {dimension_numbers = #tpu.dot_dimension_numbers<[1], [0], [0], [1], [0, 0, 1, 1], [], []>} : vector<17x17xbf16>, vector<17x16xbf16>, vector<17x16xf32> -> vector<17x16xf32>
    %c17 = arith.constant 17 : index
    %c0_51 = arith.constant 0 : index
    %153 = vector.load %arg13[%c17, %c0_51] : memref<34x64xf32, #tpu.memory_space<vmem>>, vector<17x16xf32>
    tpu.vector_store %arg13[%c17, %c0_51], %152 {strides = array<i32>} : memref<34x64xf32, #tpu.memory_space<vmem>>, vector<17x16xf32>,
    %154 = vector.extract_strided_slice %43 {offsets = [17, 16], sizes = [17, 16], strides = [1, 1]} : vector<34x192xf32> to vector<17x16xf32>
    %155 = vector.extract_strided_slice %43 {offsets = [17, 80], sizes = [17, 16], strides = [1, 1]} : vector<34x192xf32> to vector<17x16xf32>
    %156 = vector.extract_strided_slice %43 {offsets = [17, 144], sizes = [17, 16], strides = [1, 1]} : vector<34x192xf32> to vector<17x16xf32>
    %157 = arith.truncf %154 : vector<17x16xf32> to vector<17x16xbf16>
    %158 = arith.truncf %155 : vector<17x16xf32> to vector<17x16xbf16>
    %cst_52 = arith.constant dense<0.000000e+00> : vector<17x17xf32>
    %159 = tpu.matmul %157, %158, %cst_52 {dimension_numbers = #tpu.dot_dimension_numbers<[1], [1], [0], [0], [0, 0, 1, 0], [], []>} : vector<17x16xbf16>, vector<17x16xbf16>, vector<17x17xf32> -> vector<17x17xf32>
    %cst_53 = arith.constant 2.500000e-01 : f32
    %160 = vector.broadcast %cst_53 : f32 to vector<17x17xf32>
    %161 = arith.mulf %159, %160 : vector<17x17xf32>
    %cst_54 = arith.constant dense<0xFF800000> : vector<17xf32>
    %162 = vector.multi_reduction <maximumf>, %161, %cst_54 [1] : vector<17x17xf32> to vector<17xf32>
    %163 = vector.shape_cast %162 : vector<17xf32> to vector<17x1xf32>
    %164 = vector.broadcast %163 : vector<17x1xf32> to vector<17x17xf32>
    %165 = arith.subf %161, %164 : vector<17x17xf32>
    %166 = math.exp %165 : vector<17x17xf32>
    %cst_55 = arith.constant dense<0.000000e+00> : vector<17xf32>
    %167 = vector.multi_reduction <add>, %166, %cst_55 [1] : vector<17x17xf32> to vector<17xf32>
    %168 = vector.shape_cast %167 : vector<17xf32> to vector<17x1xf32>
    %169 = tpu.reciprocal %168 {approx = true} : vector<17x1xf32> -> vector<17x1xf32>
    %170 = vector.broadcast %169 : vector<17x1xf32> to vector<17x17xf32>
    %171 = arith.mulf %166, %170 : vector<17x17xf32>
    %172 = arith.truncf %171 : vector<17x17xf32> to vector<17x17xbf16>
    %173 = arith.truncf %156 : vector<17x16xf32> to vector<17x16xbf16>
    %cst_56 = arith.constant dense<0.000000e+00> : vector<17x16xf32>
    %174 = tpu.matmul %172, %173, %cst_56 {dimension_numbers = #tpu.dot_dimension_numbers<[1], [0], [0], [1], [0, 0, 1, 1], [], []>} : vector<17x17xbf16>, vector<17x16xbf16>, vector<17x16xf32> -> vector<17x16xf32>
    %c17_57 = arith.constant 17 : index
    %c16_58 = arith.constant 16 : index
    %175 = vector.load %arg13[%c17_57, %c16_58] : memref<34x64xf32, #tpu.memory_space<vmem>>, vector<17x16xf32>
    tpu.vector_store %arg13[%c17_57, %c16_58], %174 {strides = array<i32>} : memref<34x64xf32, #tpu.memory_space<vmem>>, vector<17x16xf32>,
    %176 = vector.extract_strided_slice %43 {offsets = [17, 32], sizes = [17, 16], strides = [1, 1]} : vector<34x192xf32> to vector<17x16xf32>
    %177 = vector.extract_strided_slice %43 {offsets = [17, 96], sizes = [17, 16], strides = [1, 1]} : vector<34x192xf32> to vector<17x16xf32>
    %178 = vector.extract_strided_slice %43 {offsets = [17, 160], sizes = [17, 16], strides = [1, 1]} : vector<34x192xf32> to vector<17x16xf32>
    %179 = arith.truncf %176 : vector<17x16xf32> to vector<17x16xbf16>
    %180 = arith.truncf %177 : vector<17x16xf32> to vector<17x16xbf16>
    %cst_59 = arith.constant dense<0.000000e+00> : vector<17x17xf32>
    %181 = tpu.matmul %179, %180, %cst_59 {dimension_numbers = #tpu.dot_dimension_numbers<[1], [1], [0], [0], [0, 0, 1, 0], [], []>} : vector<17x16xbf16>, vector<17x16xbf16>, vector<17x17xf32> -> vector<17x17xf32>
    %cst_60 = arith.constant 2.500000e-01 : f32
    %182 = vector.broadcast %cst_60 : f32 to vector<17x17xf32>
    %183 = arith.mulf %181, %182 : vector<17x17xf32>
    %cst_61 = arith.constant dense<0xFF800000> : vector<17xf32>
    %184 = vector.multi_reduction <maximumf>, %183, %cst_61 [1] : vector<17x17xf32> to vector<17xf32>
    %185 = vector.shape_cast %184 : vector<17xf32> to vector<17x1xf32>
    %186 = vector.broadcast %185 : vector<17x1xf32> to vector<17x17xf32>
    %187 = arith.subf %183, %186 : vector<17x17xf32>
    %188 = math.exp %187 : vector<17x17xf32>
    %cst_62 = arith.constant dense<0.000000e+00> : vector<17xf32>
    %189 = vector.multi_reduction <add>, %188, %cst_62 [1] : vector<17x17xf32> to vector<17xf32>
    %190 = vector.shape_cast %189 : vector<17xf32> to vector<17x1xf32>
    %191 = tpu.reciprocal %190 {approx = true} : vector<17x1xf32> -> vector<17x1xf32>
    %192 = vector.broadcast %191 : vector<17x1xf32> to vector<17x17xf32>
    %193 = arith.mulf %188, %192 : vector<17x17xf32>
    %194 = arith.truncf %193 : vector<17x17xf32> to vector<17x17xbf16>
    %195 = arith.truncf %178 : vector<17x16xf32> to vector<17x16xbf16>
    %cst_63 = arith.constant dense<0.000000e+00> : vector<17x16xf32>
    %196 = tpu.matmul %194, %195, %cst_63 {dimension_numbers = #tpu.dot_dimension_numbers<[1], [0], [0], [1], [0, 0, 1, 1], [], []>} : vector<17x17xbf16>, vector<17x16xbf16>, vector<17x16xf32> -> vector<17x16xf32>
    %c17_64 = arith.constant 17 : index
    %c32_65 = arith.constant 32 : index
    %197 = vector.load %arg13[%c17_64, %c32_65] : memref<34x64xf32, #tpu.memory_space<vmem>>, vector<17x16xf32>
    tpu.vector_store %arg13[%c17_64, %c32_65], %196 {strides = array<i32>} : memref<34x64xf32, #tpu.memory_space<vmem>>, vector<17x16xf32>,
    %198 = vector.extract_strided_slice %43 {offsets = [17, 48], sizes = [17, 16], strides = [1, 1]} : vector<34x192xf32> to vector<17x16xf32>
    %199 = vector.extract_strided_slice %43 {offsets = [17, 112], sizes = [17, 16], strides = [1, 1]} : vector<34x192xf32> to vector<17x16xf32>
    %200 = vector.extract_strided_slice %43 {offsets = [17, 176], sizes = [17, 16], strides = [1, 1]} : vector<34x192xf32> to vector<17x16xf32>
    %201 = arith.truncf %198 : vector<17x16xf32> to vector<17x16xbf16>
    %202 = arith.truncf %199 : vector<17x16xf32> to vector<17x16xbf16>
    %cst_66 = arith.constant dense<0.000000e+00> : vector<17x17xf32>
    %203 = tpu.matmul %201, %202, %cst_66 {dimension_numbers = #tpu.dot_dimension_numbers<[1], [1], [0], [0], [0, 0, 1, 0], [], []>} : vector<17x16xbf16>, vector<17x16xbf16>, vector<17x17xf32> -> vector<17x17xf32>
    %cst_67 = arith.constant 2.500000e-01 : f32
    %204 = vector.broadcast %cst_67 : f32 to vector<17x17xf32>
    %205 = arith.mulf %203, %204 : vector<17x17xf32>
    %cst_68 = arith.constant dense<0xFF800000> : vector<17xf32>
    %206 = vector.multi_reduction <maximumf>, %205, %cst_68 [1] : vector<17x17xf32> to vector<17xf32>
    %207 = vector.shape_cast %206 : vector<17xf32> to vector<17x1xf32>
    %208 = vector.broadcast %207 : vector<17x1xf32> to vector<17x17xf32>
    %209 = arith.subf %205, %208 : vector<17x17xf32>
    %210 = math.exp %209 : vector<17x17xf32>
    %cst_69 = arith.constant dense<0.000000e+00> : vector<17xf32>
    %211 = vector.multi_reduction <add>, %210, %cst_69 [1] : vector<17x17xf32> to vector<17xf32>
    %212 = vector.shape_cast %211 : vector<17xf32> to vector<17x1xf32>
    %213 = tpu.reciprocal %212 {approx = true} : vector<17x1xf32> -> vector<17x1xf32>
    %214 = vector.broadcast %213 : vector<17x1xf32> to vector<17x17xf32>
    %215 = arith.mulf %210, %214 : vector<17x17xf32>
    %216 = arith.truncf %215 : vector<17x17xf32> to vector<17x17xbf16>
    %217 = arith.truncf %200 : vector<17x16xf32> to vector<17x16xbf16>
    %cst_70 = arith.constant dense<0.000000e+00> : vector<17x16xf32>
    %218 = tpu.matmul %216, %217, %cst_70 {dimension_numbers = #tpu.dot_dimension_numbers<[1], [0], [0], [1], [0, 0, 1, 1], [], []>} : vector<17x17xbf16>, vector<17x16xbf16>, vector<17x16xf32> -> vector<17x16xf32>
    %c17_71 = arith.constant 17 : index
    %c48_72 = arith.constant 48 : index
    %219 = vector.load %arg13[%c17_71, %c48_72] : memref<34x64xf32, #tpu.memory_space<vmem>>, vector<17x16xf32>
    tpu.vector_store %arg13[%c17_71, %c48_72], %218 {strides = array<i32>} : memref<34x64xf32, #tpu.memory_space<vmem>>, vector<17x16xf32>,
    %c0_73 = arith.constant 0 : index
    %c0_74 = arith.constant 0 : index
    %220 = vector.load %arg13[%c0_73, %c0_74] : memref<34x64xf32, #tpu.memory_space<vmem>>, vector<34x64xf32>
    %221 = arith.truncf %220 : vector<34x64xf32> to vector<34x64xbf16>
    %c0_75 = arith.constant 0 : index
    %c0_76 = arith.constant 0 : index
    %c0_77 = arith.constant 0 : index
    %222 = vector.load %arg6[%c0_75, %c0_76, %c0_77] : memref<2x64x64xbf16, #tpu.memory_space<vmem>>, vector<1x64x64xbf16>
    %223 = vector.shape_cast %222 : vector<1x64x64xbf16> to vector<64x64xbf16>
    %cst_78 = arith.constant dense<0.000000e+00> : vector<34x64xf32>
    %224 = tpu.matmul %221, %223, %cst_78 {dimension_numbers = #tpu.dot_dimension_numbers<[1], [0], [0], [1], [0, 0, 1, 1], [], []>} : vector<34x64xbf16>, vector<64x64xbf16>, vector<34x64xf32> -> vector<34x64xf32>
    %225 = vector.broadcast %10 : vector<1x64xf32> to vector<34x64xf32>
    %226 = arith.addf %224, %225 : vector<34x64xf32>
    %227 = arith.addf %5, %226 : vector<34x64xf32>
    %cst_79 = arith.constant dense<0.000000e+00> : vector<34xf32>
    %228 = vector.multi_reduction <add>, %227, %cst_79 [1] : vector<34x64xf32> to vector<34xf32>
    %229 = vector.shape_cast %228 : vector<34xf32> to vector<34x1xf32>
    %cst_80 = arith.constant 6.400000e+01 : f32
    %230 = vector.broadcast %cst_80 : f32 to vector<34x1xf32>
    %231 = arith.divf %229, %230 : vector<34x1xf32>
    %232 = vector.broadcast %231 : vector<34x1xf32> to vector<34x64xf32>
    %233 = arith.subf %227, %232 : vector<34x64xf32>
    %234 = arith.mulf %233, %233 : vector<34x64xf32>
    %cst_81 = arith.constant dense<0.000000e+00> : vector<34xf32>
    %235 = vector.multi_reduction <add>, %234, %cst_81 [1] : vector<34x64xf32> to vector<34xf32>
    %236 = vector.shape_cast %235 : vector<34xf32> to vector<34x1xf32>
    %cst_82 = arith.constant 6.400000e+01 : f32
    %237 = vector.broadcast %cst_82 : f32 to vector<34x1xf32>
    %238 = arith.divf %236, %237 : vector<34x1xf32>
    %239 = vector.broadcast %231 : vector<34x1xf32> to vector<34x64xf32>
    %240 = arith.subf %227, %239 : vector<34x64xf32>
    %cst_83 = arith.constant 9.99999974E-6 : f32
    %241 = vector.broadcast %cst_83 : f32 to vector<34x1xf32>
    %242 = arith.addf %238, %241 : vector<34x1xf32>
    %243 = math.rsqrt %242 : vector<34x1xf32>
    %244 = vector.broadcast %243 : vector<34x1xf32> to vector<34x64xf32>
    %245 = arith.mulf %240, %244 : vector<34x64xf32>
    %246 = vector.broadcast %11 : vector<1x64xf32> to vector<34x64xf32>
    %247 = arith.mulf %245, %246 : vector<34x64xf32>
    %248 = vector.broadcast %12 : vector<1x64xf32> to vector<34x64xf32>
    %249 = arith.addf %247, %248 : vector<34x64xf32>
    %250 = arith.truncf %249 : vector<34x64xf32> to vector<34x64xbf16>
    %c0_84 = arith.constant 0 : index
    %c0_85 = arith.constant 0 : index
    %c0_86 = arith.constant 0 : index
    %251 = vector.load %arg7[%c0_84, %c0_85, %c0_86] : memref<2x64x256xbf16, #tpu.memory_space<vmem>>, vector<1x64x256xbf16>
    %252 = vector.shape_cast %251 : vector<1x64x256xbf16> to vector<64x256xbf16>
    %cst_87 = arith.constant dense<0.000000e+00> : vector<34x256xf32>
    %253 = tpu.matmul %250, %252, %cst_87 {dimension_numbers = #tpu.dot_dimension_numbers<[1], [0], [0], [1], [0, 0, 1, 1], [], []>} : vector<34x64xbf16>, vector<64x256xbf16>, vector<34x256xf32> -> vector<34x256xf32>
    %c0_88 = arith.constant 0 : index
    %c0_89 = arith.constant 0 : index
    %c0_90 = arith.constant 0 : index
    %254 = vector.load %arg8[%c0_88, %c0_89, %c0_90] : memref<2x1x256xf32, #tpu.memory_space<vmem>>, vector<1x1x256xf32>
    %255 = vector.shape_cast %254 : vector<1x1x256xf32> to vector<1x256xf32>
    %256 = vector.broadcast %255 : vector<1x256xf32> to vector<34x256xf32>
    %257 = arith.addf %253, %256 : vector<34x256xf32>
    %cst_91 = arith.constant 5.000000e-01 : f32
    %258 = vector.broadcast %cst_91 : f32 to vector<34x256xf32>
    %259 = arith.mulf %258, %257 : vector<34x256xf32>
    %cst_92 = arith.constant 0.707106769 : f32
    %260 = vector.broadcast %cst_92 : f32 to vector<34x256xf32>
    %261 = arith.mulf %257, %260 : vector<34x256xf32>
    %262 = math.erf %261 : vector<34x256xf32>
    %cst_93 = arith.constant 1.000000e+00 : f32
    %263 = vector.broadcast %cst_93 : f32 to vector<34x256xf32>
    %264 = arith.addf %263, %262 : vector<34x256xf32>
    %265 = arith.mulf %259, %264 : vector<34x256xf32>
    %266 = arith.truncf %265 : vector<34x256xf32> to vector<34x256xbf16>
    %c0_94 = arith.constant 0 : index
    %c0_95 = arith.constant 0 : index
    %c0_96 = arith.constant 0 : index
    %267 = vector.load %arg9[%c0_94, %c0_95, %c0_96] : memref<2x256x64xbf16, #tpu.memory_space<vmem>>, vector<1x256x64xbf16>
    %268 = vector.shape_cast %267 : vector<1x256x64xbf16> to vector<256x64xbf16>
    %cst_97 = arith.constant dense<0.000000e+00> : vector<34x64xf32>
    %269 = tpu.matmul %266, %268, %cst_97 {dimension_numbers = #tpu.dot_dimension_numbers<[1], [0], [0], [1], [0, 0, 1, 1], [], []>} : vector<34x256xbf16>, vector<256x64xbf16>, vector<34x64xf32> -> vector<34x64xf32>
    %270 = vector.broadcast %13 : vector<1x64xf32> to vector<34x64xf32>
    %271 = arith.addf %269, %270 : vector<34x64xf32>
    %272 = arith.addf %227, %271 : vector<34x64xf32>
    %c1 = arith.constant 1 : index
    %c0_98 = arith.constant 0 : index
    %c0_99 = arith.constant 0 : index
    %273 = vector.load %arg10[%c1, %c0_98, %c0_99] : memref<2x6x64xf32, #tpu.memory_space<vmem>>, vector<1x6x64xf32>
    %274 = vector.shape_cast %273 : vector<1x6x64xf32> to vector<6x64xf32>
    %275 = vector.extract_strided_slice %274 {offsets = [0, 0], sizes = [1, 64], strides = [1, 1]} : vector<6x64xf32> to vector<1x64xf32>
    %276 = vector.extract_strided_slice %274 {offsets = [1, 0], sizes = [1, 64], strides = [1, 1]} : vector<6x64xf32> to vector<1x64xf32>
    %277 = vector.extract_strided_slice %274 {offsets = [2, 0], sizes = [1, 64], strides = [1, 1]} : vector<6x64xf32> to vector<1x64xf32>
    %278 = vector.extract_strided_slice %274 {offsets = [3, 0], sizes = [1, 64], strides = [1, 1]} : vector<6x64xf32> to vector<1x64xf32>
    %279 = vector.extract_strided_slice %274 {offsets = [4, 0], sizes = [1, 64], strides = [1, 1]} : vector<6x64xf32> to vector<1x64xf32>
    %280 = vector.extract_strided_slice %274 {offsets = [5, 0], sizes = [1, 64], strides = [1, 1]} : vector<6x64xf32> to vector<1x64xf32>
    %cst_100 = arith.constant dense<0.000000e+00> : vector<34xf32>
    %281 = vector.multi_reduction <add>, %272, %cst_100 [1] : vector<34x64xf32> to vector<34xf32>
    %282 = vector.shape_cast %281 : vector<34xf32> to vector<34x1xf32>
    %cst_101 = arith.constant 6.400000e+01 : f32
    %283 = vector.broadcast %cst_101 : f32 to vector<34x1xf32>
    %284 = arith.divf %282, %283 : vector<34x1xf32>
    %285 = vector.broadcast %284 : vector<34x1xf32> to vector<34x64xf32>
    %286 = arith.subf %272, %285 : vector<34x64xf32>
    %287 = arith.mulf %286, %286 : vector<34x64xf32>
    %cst_102 = arith.constant dense<0.000000e+00> : vector<34xf32>
    %288 = vector.multi_reduction <add>, %287, %cst_102 [1] : vector<34x64xf32> to vector<34xf32>
    %289 = vector.shape_cast %288 : vector<34xf32> to vector<34x1xf32>
    %cst_103 = arith.constant 6.400000e+01 : f32
    %290 = vector.broadcast %cst_103 : f32 to vector<34x1xf32>
    %291 = arith.divf %289, %290 : vector<34x1xf32>
    %292 = vector.broadcast %284 : vector<34x1xf32> to vector<34x64xf32>
    %293 = arith.subf %272, %292 : vector<34x64xf32>
    %cst_104 = arith.constant 9.99999974E-6 : f32
    %294 = vector.broadcast %cst_104 : f32 to vector<34x1xf32>
    %295 = arith.addf %291, %294 : vector<34x1xf32>
    %296 = math.rsqrt %295 : vector<34x1xf32>
    %297 = vector.broadcast %296 : vector<34x1xf32> to vector<34x64xf32>
    %298 = arith.mulf %293, %297 : vector<34x64xf32>
    %299 = vector.broadcast %275 : vector<1x64xf32> to vector<34x64xf32>
    %300 = arith.mulf %298, %299 : vector<34x64xf32>
    %301 = vector.broadcast %276 : vector<1x64xf32> to vector<34x64xf32>
    %302 = arith.addf %300, %301 : vector<34x64xf32>
    %303 = arith.truncf %302 : vector<34x64xf32> to vector<34x64xbf16>
    %c1_105 = arith.constant 1 : index
    %c0_106 = arith.constant 0 : index
    %c0_107 = arith.constant 0 : index
    %304 = vector.load %arg4[%c1_105, %c0_106, %c0_107] : memref<2x64x192xbf16, #tpu.memory_space<vmem>>, vector<1x64x192xbf16>
    %305 = vector.shape_cast %304 : vector<1x64x192xbf16> to vector<64x192xbf16>
    %cst_108 = arith.constant dense<0.000000e+00> : vector<34x192xf32>
    %306 = tpu.matmul %303, %305, %cst_108 {dimension_numbers = #tpu.dot_dimension_numbers<[1], [0], [0], [1], [0, 0, 1, 1], [], []>} : vector<34x64xbf16>, vector<64x192xbf16>, vector<34x192xf32> -> vector<34x192xf32>
    %c1_109 = arith.constant 1 : index
    %c0_110 = arith.constant 0 : index
    %c0_111 = arith.constant 0 : index
    %307 = vector.load %arg5[%c1_109, %c0_110, %c0_111] : memref<2x1x192xf32, #tpu.memory_space<vmem>>, vector<1x1x192xf32>
    %308 = vector.shape_cast %307 : vector<1x1x192xf32> to vector<1x192xf32>
    %309 = vector.broadcast %308 : vector<1x192xf32> to vector<34x192xf32>
    %310 = arith.addf %306, %309 : vector<34x192xf32>
    %311 = vector.extract_strided_slice %310 {offsets = [0, 0], sizes = [17, 16], strides = [1, 1]} : vector<34x192xf32> to vector<17x16xf32>
    %312 = vector.extract_strided_slice %310 {offsets = [0, 64], sizes = [17, 16], strides = [1, 1]} : vector<34x192xf32> to vector<17x16xf32>
    %313 = vector.extract_strided_slice %310 {offsets = [0, 128], sizes = [17, 16], strides = [1, 1]} : vector<34x192xf32> to vector<17x16xf32>
    %314 = arith.truncf %311 : vector<17x16xf32> to vector<17x16xbf16>
    %315 = arith.truncf %312 : vector<17x16xf32> to vector<17x16xbf16>
    %cst_112 = arith.constant dense<0.000000e+00> : vector<17x17xf32>
    %316 = tpu.matmul %314, %315, %cst_112 {dimension_numbers = #tpu.dot_dimension_numbers<[1], [1], [0], [0], [0, 0, 1, 0], [], []>} : vector<17x16xbf16>, vector<17x16xbf16>, vector<17x17xf32> -> vector<17x17xf32>
    %cst_113 = arith.constant 2.500000e-01 : f32
    %317 = vector.broadcast %cst_113 : f32 to vector<17x17xf32>
    %318 = arith.mulf %316, %317 : vector<17x17xf32>
    %cst_114 = arith.constant dense<0xFF800000> : vector<17xf32>
    %319 = vector.multi_reduction <maximumf>, %318, %cst_114 [1] : vector<17x17xf32> to vector<17xf32>
    %320 = vector.shape_cast %319 : vector<17xf32> to vector<17x1xf32>
    %321 = vector.broadcast %320 : vector<17x1xf32> to vector<17x17xf32>
    %322 = arith.subf %318, %321 : vector<17x17xf32>
    %323 = math.exp %322 : vector<17x17xf32>
    %cst_115 = arith.constant dense<0.000000e+00> : vector<17xf32>
    %324 = vector.multi_reduction <add>, %323, %cst_115 [1] : vector<17x17xf32> to vector<17xf32>
    %325 = vector.shape_cast %324 : vector<17xf32> to vector<17x1xf32>
    %326 = tpu.reciprocal %325 {approx = true} : vector<17x1xf32> -> vector<17x1xf32>
    %327 = vector.broadcast %326 : vector<17x1xf32> to vector<17x17xf32>
    %328 = arith.mulf %323, %327 : vector<17x17xf32>
    %329 = arith.truncf %328 : vector<17x17xf32> to vector<17x17xbf16>
    %330 = arith.truncf %313 : vector<17x16xf32> to vector<17x16xbf16>
    %cst_116 = arith.constant dense<0.000000e+00> : vector<17x16xf32>
    %331 = tpu.matmul %329, %330, %cst_116 {dimension_numbers = #tpu.dot_dimension_numbers<[1], [0], [0], [1], [0, 0, 1, 1], [], []>} : vector<17x17xbf16>, vector<17x16xbf16>, vector<17x16xf32> -> vector<17x16xf32>
    %c0_117 = arith.constant 0 : index
    %c0_118 = arith.constant 0 : index
    %332 = vector.load %arg13[%c0_117, %c0_118] : memref<34x64xf32, #tpu.memory_space<vmem>>, vector<17x16xf32>
    tpu.vector_store %arg13[%c0_117, %c0_118], %331 {strides = array<i32>} : memref<34x64xf32, #tpu.memory_space<vmem>>, vector<17x16xf32>,
    %333 = vector.extract_strided_slice %310 {offsets = [0, 16], sizes = [17, 16], strides = [1, 1]} : vector<34x192xf32> to vector<17x16xf32>
    %334 = vector.extract_strided_slice %310 {offsets = [0, 80], sizes = [17, 16], strides = [1, 1]} : vector<34x192xf32> to vector<17x16xf32>
    %335 = vector.extract_strided_slice %310 {offsets = [0, 144], sizes = [17, 16], strides = [1, 1]} : vector<34x192xf32> to vector<17x16xf32>
    %336 = arith.truncf %333 : vector<17x16xf32> to vector<17x16xbf16>
    %337 = arith.truncf %334 : vector<17x16xf32> to vector<17x16xbf16>
    %cst_119 = arith.constant dense<0.000000e+00> : vector<17x17xf32>
    %338 = tpu.matmul %336, %337, %cst_119 {dimension_numbers = #tpu.dot_dimension_numbers<[1], [1], [0], [0], [0, 0, 1, 0], [], []>} : vector<17x16xbf16>, vector<17x16xbf16>, vector<17x17xf32> -> vector<17x17xf32>
    %cst_120 = arith.constant 2.500000e-01 : f32
    %339 = vector.broadcast %cst_120 : f32 to vector<17x17xf32>
    %340 = arith.mulf %338, %339 : vector<17x17xf32>
    %cst_121 = arith.constant dense<0xFF800000> : vector<17xf32>
    %341 = vector.multi_reduction <maximumf>, %340, %cst_121 [1] : vector<17x17xf32> to vector<17xf32>
    %342 = vector.shape_cast %341 : vector<17xf32> to vector<17x1xf32>
    %343 = vector.broadcast %342 : vector<17x1xf32> to vector<17x17xf32>
    %344 = arith.subf %340, %343 : vector<17x17xf32>
    %345 = math.exp %344 : vector<17x17xf32>
    %cst_122 = arith.constant dense<0.000000e+00> : vector<17xf32>
    %346 = vector.multi_reduction <add>, %345, %cst_122 [1] : vector<17x17xf32> to vector<17xf32>
    %347 = vector.shape_cast %346 : vector<17xf32> to vector<17x1xf32>
    %348 = tpu.reciprocal %347 {approx = true} : vector<17x1xf32> -> vector<17x1xf32>
    %349 = vector.broadcast %348 : vector<17x1xf32> to vector<17x17xf32>
    %350 = arith.mulf %345, %349 : vector<17x17xf32>
    %351 = arith.truncf %350 : vector<17x17xf32> to vector<17x17xbf16>
    %352 = arith.truncf %335 : vector<17x16xf32> to vector<17x16xbf16>
    %cst_123 = arith.constant dense<0.000000e+00> : vector<17x16xf32>
    %353 = tpu.matmul %351, %352, %cst_123 {dimension_numbers = #tpu.dot_dimension_numbers<[1], [0], [0], [1], [0, 0, 1, 1], [], []>} : vector<17x17xbf16>, vector<17x16xbf16>, vector<17x16xf32> -> vector<17x16xf32>
    %c0_124 = arith.constant 0 : index
    %c16_125 = arith.constant 16 : index
    %354 = vector.load %arg13[%c0_124, %c16_125] : memref<34x64xf32, #tpu.memory_space<vmem>>, vector<17x16xf32>
    tpu.vector_store %arg13[%c0_124, %c16_125], %353 {strides = array<i32>} : memref<34x64xf32, #tpu.memory_space<vmem>>, vector<17x16xf32>,
    %355 = vector.extract_strided_slice %310 {offsets = [0, 32], sizes = [17, 16], strides = [1, 1]} : vector<34x192xf32> to vector<17x16xf32>
    %356 = vector.extract_strided_slice %310 {offsets = [0, 96], sizes = [17, 16], strides = [1, 1]} : vector<34x192xf32> to vector<17x16xf32>
    %357 = vector.extract_strided_slice %310 {offsets = [0, 160], sizes = [17, 16], strides = [1, 1]} : vector<34x192xf32> to vector<17x16xf32>
    %358 = arith.truncf %355 : vector<17x16xf32> to vector<17x16xbf16>
    %359 = arith.truncf %356 : vector<17x16xf32> to vector<17x16xbf16>
    %cst_126 = arith.constant dense<0.000000e+00> : vector<17x17xf32>
    %360 = tpu.matmul %358, %359, %cst_126 {dimension_numbers = #tpu.dot_dimension_numbers<[1], [1], [0], [0], [0, 0, 1, 0], [], []>} : vector<17x16xbf16>, vector<17x16xbf16>, vector<17x17xf32> -> vector<17x17xf32>
    %cst_127 = arith.constant 2.500000e-01 : f32
    %361 = vector.broadcast %cst_127 : f32 to vector<17x17xf32>
    %362 = arith.mulf %360, %361 : vector<17x17xf32>
    %cst_128 = arith.constant dense<0xFF800000> : vector<17xf32>
    %363 = vector.multi_reduction <maximumf>, %362, %cst_128 [1] : vector<17x17xf32> to vector<17xf32>
    %364 = vector.shape_cast %363 : vector<17xf32> to vector<17x1xf32>
    %365 = vector.broadcast %364 : vector<17x1xf32> to vector<17x17xf32>
    %366 = arith.subf %362, %365 : vector<17x17xf32>
    %367 = math.exp %366 : vector<17x17xf32>
    %cst_129 = arith.constant dense<0.000000e+00> : vector<17xf32>
    %368 = vector.multi_reduction <add>, %367, %cst_129 [1] : vector<17x17xf32> to vector<17xf32>
    %369 = vector.shape_cast %368 : vector<17xf32> to vector<17x1xf32>
    %370 = tpu.reciprocal %369 {approx = true} : vector<17x1xf32> -> vector<17x1xf32>
    %371 = vector.broadcast %370 : vector<17x1xf32> to vector<17x17xf32>
    %372 = arith.mulf %367, %371 : vector<17x17xf32>
    %373 = arith.truncf %372 : vector<17x17xf32> to vector<17x17xbf16>
    %374 = arith.truncf %357 : vector<17x16xf32> to vector<17x16xbf16>
    %cst_130 = arith.constant dense<0.000000e+00> : vector<17x16xf32>
    %375 = tpu.matmul %373, %374, %cst_130 {dimension_numbers = #tpu.dot_dimension_numbers<[1], [0], [0], [1], [0, 0, 1, 1], [], []>} : vector<17x17xbf16>, vector<17x16xbf16>, vector<17x16xf32> -> vector<17x16xf32>
    %c0_131 = arith.constant 0 : index
    %c32_132 = arith.constant 32 : index
    %376 = vector.load %arg13[%c0_131, %c32_132] : memref<34x64xf32, #tpu.memory_space<vmem>>, vector<17x16xf32>
    tpu.vector_store %arg13[%c0_131, %c32_132], %375 {strides = array<i32>} : memref<34x64xf32, #tpu.memory_space<vmem>>, vector<17x16xf32>,
    %377 = vector.extract_strided_slice %310 {offsets = [0, 48], sizes = [17, 16], strides = [1, 1]} : vector<34x192xf32> to vector<17x16xf32>
    %378 = vector.extract_strided_slice %310 {offsets = [0, 112], sizes = [17, 16], strides = [1, 1]} : vector<34x192xf32> to vector<17x16xf32>
    %379 = vector.extract_strided_slice %310 {offsets = [0, 176], sizes = [17, 16], strides = [1, 1]} : vector<34x192xf32> to vector<17x16xf32>
    %380 = arith.truncf %377 : vector<17x16xf32> to vector<17x16xbf16>
    %381 = arith.truncf %378 : vector<17x16xf32> to vector<17x16xbf16>
    %cst_133 = arith.constant dense<0.000000e+00> : vector<17x17xf32>
    %382 = tpu.matmul %380, %381, %cst_133 {dimension_numbers = #tpu.dot_dimension_numbers<[1], [1], [0], [0], [0, 0, 1, 0], [], []>} : vector<17x16xbf16>, vector<17x16xbf16>, vector<17x17xf32> -> vector<17x17xf32>
    %cst_134 = arith.constant 2.500000e-01 : f32
    %383 = vector.broadcast %cst_134 : f32 to vector<17x17xf32>
    %384 = arith.mulf %382, %383 : vector<17x17xf32>
    %cst_135 = arith.constant dense<0xFF800000> : vector<17xf32>
    %385 = vector.multi_reduction <maximumf>, %384, %cst_135 [1] : vector<17x17xf32> to vector<17xf32>
    %386 = vector.shape_cast %385 : vector<17xf32> to vector<17x1xf32>
    %387 = vector.broadcast %386 : vector<17x1xf32> to vector<17x17xf32>
    %388 = arith.subf %384, %387 : vector<17x17xf32>
    %389 = math.exp %388 : vector<17x17xf32>
    %cst_136 = arith.constant dense<0.000000e+00> : vector<17xf32>
    %390 = vector.multi_reduction <add>, %389, %cst_136 [1] : vector<17x17xf32> to vector<17xf32>
    %391 = vector.shape_cast %390 : vector<17xf32> to vector<17x1xf32>
    %392 = tpu.reciprocal %391 {approx = true} : vector<17x1xf32> -> vector<17x1xf32>
    %393 = vector.broadcast %392 : vector<17x1xf32> to vector<17x17xf32>
    %394 = arith.mulf %389, %393 : vector<17x17xf32>
    %395 = arith.truncf %394 : vector<17x17xf32> to vector<17x17xbf16>
    %396 = arith.truncf %379 : vector<17x16xf32> to vector<17x16xbf16>
    %cst_137 = arith.constant dense<0.000000e+00> : vector<17x16xf32>
    %397 = tpu.matmul %395, %396, %cst_137 {dimension_numbers = #tpu.dot_dimension_numbers<[1], [0], [0], [1], [0, 0, 1, 1], [], []>} : vector<17x17xbf16>, vector<17x16xbf16>, vector<17x16xf32> -> vector<17x16xf32>
    %c0_138 = arith.constant 0 : index
    %c48_139 = arith.constant 48 : index
    %398 = vector.load %arg13[%c0_138, %c48_139] : memref<34x64xf32, #tpu.memory_space<vmem>>, vector<17x16xf32>
    tpu.vector_store %arg13[%c0_138, %c48_139], %397 {strides = array<i32>} : memref<34x64xf32, #tpu.memory_space<vmem>>, vector<17x16xf32>,
    %399 = vector.extract_strided_slice %310 {offsets = [17, 0], sizes = [17, 16], strides = [1, 1]} : vector<34x192xf32> to vector<17x16xf32>
    %400 = vector.extract_strided_slice %310 {offsets = [17, 64], sizes = [17, 16], strides = [1, 1]} : vector<34x192xf32> to vector<17x16xf32>
    %401 = vector.extract_strided_slice %310 {offsets = [17, 128], sizes = [17, 16], strides = [1, 1]} : vector<34x192xf32> to vector<17x16xf32>
    %402 = arith.truncf %399 : vector<17x16xf32> to vector<17x16xbf16>
    %403 = arith.truncf %400 : vector<17x16xf32> to vector<17x16xbf16>
    %cst_140 = arith.constant dense<0.000000e+00> : vector<17x17xf32>
    %404 = tpu.matmul %402, %403, %cst_140 {dimension_numbers = #tpu.dot_dimension_numbers<[1], [1], [0], [0], [0, 0, 1, 0], [], []>} : vector<17x16xbf16>, vector<17x16xbf16>, vector<17x17xf32> -> vector<17x17xf32>
    %cst_141 = arith.constant 2.500000e-01 : f32
    %405 = vector.broadcast %cst_141 : f32 to vector<17x17xf32>
    %406 = arith.mulf %404, %405 : vector<17x17xf32>
    %cst_142 = arith.constant dense<0xFF800000> : vector<17xf32>
    %407 = vector.multi_reduction <maximumf>, %406, %cst_142 [1] : vector<17x17xf32> to vector<17xf32>
    %408 = vector.shape_cast %407 : vector<17xf32> to vector<17x1xf32>
    %409 = vector.broadcast %408 : vector<17x1xf32> to vector<17x17xf32>
    %410 = arith.subf %406, %409 : vector<17x17xf32>
    %411 = math.exp %410 : vector<17x17xf32>
    %cst_143 = arith.constant dense<0.000000e+00> : vector<17xf32>
    %412 = vector.multi_reduction <add>, %411, %cst_143 [1] : vector<17x17xf32> to vector<17xf32>
    %413 = vector.shape_cast %412 : vector<17xf32> to vector<17x1xf32>
    %414 = tpu.reciprocal %413 {approx = true} : vector<17x1xf32> -> vector<17x1xf32>
    %415 = vector.broadcast %414 : vector<17x1xf32> to vector<17x17xf32>
    %416 = arith.mulf %411, %415 : vector<17x17xf32>
    %417 = arith.truncf %416 : vector<17x17xf32> to vector<17x17xbf16>
    %418 = arith.truncf %401 : vector<17x16xf32> to vector<17x16xbf16>
    %cst_144 = arith.constant dense<0.000000e+00> : vector<17x16xf32>
    %419 = tpu.matmul %417, %418, %cst_144 {dimension_numbers = #tpu.dot_dimension_numbers<[1], [0], [0], [1], [0, 0, 1, 1], [], []>} : vector<17x17xbf16>, vector<17x16xbf16>, vector<17x16xf32> -> vector<17x16xf32>
    %c17_145 = arith.constant 17 : index
    %c0_146 = arith.constant 0 : index
    %420 = vector.load %arg13[%c17_145, %c0_146] : memref<34x64xf32, #tpu.memory_space<vmem>>, vector<17x16xf32>
    tpu.vector_store %arg13[%c17_145, %c0_146], %419 {strides = array<i32>} : memref<34x64xf32, #tpu.memory_space<vmem>>, vector<17x16xf32>,
    %421 = vector.extract_strided_slice %310 {offsets = [17, 16], sizes = [17, 16], strides = [1, 1]} : vector<34x192xf32> to vector<17x16xf32>
    %422 = vector.extract_strided_slice %310 {offsets = [17, 80], sizes = [17, 16], strides = [1, 1]} : vector<34x192xf32> to vector<17x16xf32>
    %423 = vector.extract_strided_slice %310 {offsets = [17, 144], sizes = [17, 16], strides = [1, 1]} : vector<34x192xf32> to vector<17x16xf32>
    %424 = arith.truncf %421 : vector<17x16xf32> to vector<17x16xbf16>
    %425 = arith.truncf %422 : vector<17x16xf32> to vector<17x16xbf16>
    %cst_147 = arith.constant dense<0.000000e+00> : vector<17x17xf32>
    %426 = tpu.matmul %424, %425, %cst_147 {dimension_numbers = #tpu.dot_dimension_numbers<[1], [1], [0], [0], [0, 0, 1, 0], [], []>} : vector<17x16xbf16>, vector<17x16xbf16>, vector<17x17xf32> -> vector<17x17xf32>
    %cst_148 = arith.constant 2.500000e-01 : f32
    %427 = vector.broadcast %cst_148 : f32 to vector<17x17xf32>
    %428 = arith.mulf %426, %427 : vector<17x17xf32>
    %cst_149 = arith.constant dense<0xFF800000> : vector<17xf32>
    %429 = vector.multi_reduction <maximumf>, %428, %cst_149 [1] : vector<17x17xf32> to vector<17xf32>
    %430 = vector.shape_cast %429 : vector<17xf32> to vector<17x1xf32>
    %431 = vector.broadcast %430 : vector<17x1xf32> to vector<17x17xf32>
    %432 = arith.subf %428, %431 : vector<17x17xf32>
    %433 = math.exp %432 : vector<17x17xf32>
    %cst_150 = arith.constant dense<0.000000e+00> : vector<17xf32>
    %434 = vector.multi_reduction <add>, %433, %cst_150 [1] : vector<17x17xf32> to vector<17xf32>
    %435 = vector.shape_cast %434 : vector<17xf32> to vector<17x1xf32>
    %436 = tpu.reciprocal %435 {approx = true} : vector<17x1xf32> -> vector<17x1xf32>
    %437 = vector.broadcast %436 : vector<17x1xf32> to vector<17x17xf32>
    %438 = arith.mulf %433, %437 : vector<17x17xf32>
    %439 = arith.truncf %438 : vector<17x17xf32> to vector<17x17xbf16>
    %440 = arith.truncf %423 : vector<17x16xf32> to vector<17x16xbf16>
    %cst_151 = arith.constant dense<0.000000e+00> : vector<17x16xf32>
    %441 = tpu.matmul %439, %440, %cst_151 {dimension_numbers = #tpu.dot_dimension_numbers<[1], [0], [0], [1], [0, 0, 1, 1], [], []>} : vector<17x17xbf16>, vector<17x16xbf16>, vector<17x16xf32> -> vector<17x16xf32>
    %c17_152 = arith.constant 17 : index
    %c16_153 = arith.constant 16 : index
    %442 = vector.load %arg13[%c17_152, %c16_153] : memref<34x64xf32, #tpu.memory_space<vmem>>, vector<17x16xf32>
    tpu.vector_store %arg13[%c17_152, %c16_153], %441 {strides = array<i32>} : memref<34x64xf32, #tpu.memory_space<vmem>>, vector<17x16xf32>,
    %443 = vector.extract_strided_slice %310 {offsets = [17, 32], sizes = [17, 16], strides = [1, 1]} : vector<34x192xf32> to vector<17x16xf32>
    %444 = vector.extract_strided_slice %310 {offsets = [17, 96], sizes = [17, 16], strides = [1, 1]} : vector<34x192xf32> to vector<17x16xf32>
    %445 = vector.extract_strided_slice %310 {offsets = [17, 160], sizes = [17, 16], strides = [1, 1]} : vector<34x192xf32> to vector<17x16xf32>
    %446 = arith.truncf %443 : vector<17x16xf32> to vector<17x16xbf16>
    %447 = arith.truncf %444 : vector<17x16xf32> to vector<17x16xbf16>
    %cst_154 = arith.constant dense<0.000000e+00> : vector<17x17xf32>
    %448 = tpu.matmul %446, %447, %cst_154 {dimension_numbers = #tpu.dot_dimension_numbers<[1], [1], [0], [0], [0, 0, 1, 0], [], []>} : vector<17x16xbf16>, vector<17x16xbf16>, vector<17x17xf32> -> vector<17x17xf32>
    %cst_155 = arith.constant 2.500000e-01 : f32
    %449 = vector.broadcast %cst_155 : f32 to vector<17x17xf32>
    %450 = arith.mulf %448, %449 : vector<17x17xf32>
    %cst_156 = arith.constant dense<0xFF800000> : vector<17xf32>
    %451 = vector.multi_reduction <maximumf>, %450, %cst_156 [1] : vector<17x17xf32> to vector<17xf32>
    %452 = vector.shape_cast %451 : vector<17xf32> to vector<17x1xf32>
    %453 = vector.broadcast %452 : vector<17x1xf32> to vector<17x17xf32>
    %454 = arith.subf %450, %453 : vector<17x17xf32>
    %455 = math.exp %454 : vector<17x17xf32>
    %cst_157 = arith.constant dense<0.000000e+00> : vector<17xf32>
    %456 = vector.multi_reduction <add>, %455, %cst_157 [1] : vector<17x17xf32> to vector<17xf32>
    %457 = vector.shape_cast %456 : vector<17xf32> to vector<17x1xf32>
    %458 = tpu.reciprocal %457 {approx = true} : vector<17x1xf32> -> vector<17x1xf32>
    %459 = vector.broadcast %458 : vector<17x1xf32> to vector<17x17xf32>
    %460 = arith.mulf %455, %459 : vector<17x17xf32>
    %461 = arith.truncf %460 : vector<17x17xf32> to vector<17x17xbf16>
    %462 = arith.truncf %445 : vector<17x16xf32> to vector<17x16xbf16>
    %cst_158 = arith.constant dense<0.000000e+00> : vector<17x16xf32>
    %463 = tpu.matmul %461, %462, %cst_158 {dimension_numbers = #tpu.dot_dimension_numbers<[1], [0], [0], [1], [0, 0, 1, 1], [], []>} : vector<17x17xbf16>, vector<17x16xbf16>, vector<17x16xf32> -> vector<17x16xf32>
    %c17_159 = arith.constant 17 : index
    %c32_160 = arith.constant 32 : index
    %464 = vector.load %arg13[%c17_159, %c32_160] : memref<34x64xf32, #tpu.memory_space<vmem>>, vector<17x16xf32>
    tpu.vector_store %arg13[%c17_159, %c32_160], %463 {strides = array<i32>} : memref<34x64xf32, #tpu.memory_space<vmem>>, vector<17x16xf32>,
    %465 = vector.extract_strided_slice %310 {offsets = [17, 48], sizes = [17, 16], strides = [1, 1]} : vector<34x192xf32> to vector<17x16xf32>
    %466 = vector.extract_strided_slice %310 {offsets = [17, 112], sizes = [17, 16], strides = [1, 1]} : vector<34x192xf32> to vector<17x16xf32>
    %467 = vector.extract_strided_slice %310 {offsets = [17, 176], sizes = [17, 16], strides = [1, 1]} : vector<34x192xf32> to vector<17x16xf32>
    %468 = arith.truncf %465 : vector<17x16xf32> to vector<17x16xbf16>
    %469 = arith.truncf %466 : vector<17x16xf32> to vector<17x16xbf16>
    %cst_161 = arith.constant dense<0.000000e+00> : vector<17x17xf32>
    %470 = tpu.matmul %468, %469, %cst_161 {dimension_numbers = #tpu.dot_dimension_numbers<[1], [1], [0], [0], [0, 0, 1, 0], [], []>} : vector<17x16xbf16>, vector<17x16xbf16>, vector<17x17xf32> -> vector<17x17xf32>
    %cst_162 = arith.constant 2.500000e-01 : f32
    %471 = vector.broadcast %cst_162 : f32 to vector<17x17xf32>
    %472 = arith.mulf %470, %471 : vector<17x17xf32>
    %cst_163 = arith.constant dense<0xFF800000> : vector<17xf32>
    %473 = vector.multi_reduction <maximumf>, %472, %cst_163 [1] : vector<17x17xf32> to vector<17xf32>
    %474 = vector.shape_cast %473 : vector<17xf32> to vector<17x1xf32>
    %475 = vector.broadcast %474 : vector<17x1xf32> to vector<17x17xf32>
    %476 = arith.subf %472, %475 : vector<17x17xf32>
    %477 = math.exp %476 : vector<17x17xf32>
    %cst_164 = arith.constant dense<0.000000e+00> : vector<17xf32>
    %478 = vector.multi_reduction <add>, %477, %cst_164 [1] : vector<17x17xf32> to vector<17xf32>
    %479 = vector.shape_cast %478 : vector<17xf32> to vector<17x1xf32>
    %480 = tpu.reciprocal %479 {approx = true} : vector<17x1xf32> -> vector<17x1xf32>
    %481 = vector.broadcast %480 : vector<17x1xf32> to vector<17x17xf32>
    %482 = arith.mulf %477, %481 : vector<17x17xf32>
    %483 = arith.truncf %482 : vector<17x17xf32> to vector<17x17xbf16>
    %484 = arith.truncf %467 : vector<17x16xf32> to vector<17x16xbf16>
    %cst_165 = arith.constant dense<0.000000e+00> : vector<17x16xf32>
    %485 = tpu.matmul %483, %484, %cst_165 {dimension_numbers = #tpu.dot_dimension_numbers<[1], [0], [0], [1], [0, 0, 1, 1], [], []>} : vector<17x17xbf16>, vector<17x16xbf16>, vector<17x16xf32> -> vector<17x16xf32>
    %c17_166 = arith.constant 17 : index
    %c48_167 = arith.constant 48 : index
    %486 = vector.load %arg13[%c17_166, %c48_167] : memref<34x64xf32, #tpu.memory_space<vmem>>, vector<17x16xf32>
    tpu.vector_store %arg13[%c17_166, %c48_167], %485 {strides = array<i32>} : memref<34x64xf32, #tpu.memory_space<vmem>>, vector<17x16xf32>,
    %c0_168 = arith.constant 0 : index
    %c0_169 = arith.constant 0 : index
    %487 = vector.load %arg13[%c0_168, %c0_169] : memref<34x64xf32, #tpu.memory_space<vmem>>, vector<34x64xf32>
    %488 = arith.truncf %487 : vector<34x64xf32> to vector<34x64xbf16>
    %c1_170 = arith.constant 1 : index
    %c0_171 = arith.constant 0 : index
    %c0_172 = arith.constant 0 : index
    %489 = vector.load %arg6[%c1_170, %c0_171, %c0_172] : memref<2x64x64xbf16, #tpu.memory_space<vmem>>, vector<1x64x64xbf16>
    %490 = vector.shape_cast %489 : vector<1x64x64xbf16> to vector<64x64xbf16>
    %cst_173 = arith.constant dense<0.000000e+00> : vector<34x64xf32>
    %491 = tpu.matmul %488, %490, %cst_173 {dimension_numbers = #tpu.dot_dimension_numbers<[1], [0], [0], [1], [0, 0, 1, 1], [], []>} : vector<34x64xbf16>, vector<64x64xbf16>, vector<34x64xf32> -> vector<34x64xf32>
    %492 = vector.broadcast %277 : vector<1x64xf32> to vector<34x64xf32>
    %493 = arith.addf %491, %492 : vector<34x64xf32>
    %494 = arith.addf %272, %493 : vector<34x64xf32>
    %cst_174 = arith.constant dense<0.000000e+00> : vector<34xf32>
    %495 = vector.multi_reduction <add>, %494, %cst_174 [1] : vector<34x64xf32> to vector<34xf32>
    %496 = vector.shape_cast %495 : vector<34xf32> to vector<34x1xf32>
    %cst_175 = arith.constant 6.400000e+01 : f32
    %497 = vector.broadcast %cst_175 : f32 to vector<34x1xf32>
    %498 = arith.divf %496, %497 : vector<34x1xf32>
    %499 = vector.broadcast %498 : vector<34x1xf32> to vector<34x64xf32>
    %500 = arith.subf %494, %499 : vector<34x64xf32>
    %501 = arith.mulf %500, %500 : vector<34x64xf32>
    %cst_176 = arith.constant dense<0.000000e+00> : vector<34xf32>
    %502 = vector.multi_reduction <add>, %501, %cst_176 [1] : vector<34x64xf32> to vector<34xf32>
    %503 = vector.shape_cast %502 : vector<34xf32> to vector<34x1xf32>
    %cst_177 = arith.constant 6.400000e+01 : f32
    %504 = vector.broadcast %cst_177 : f32 to vector<34x1xf32>
    %505 = arith.divf %503, %504 : vector<34x1xf32>
    %506 = vector.broadcast %498 : vector<34x1xf32> to vector<34x64xf32>
    %507 = arith.subf %494, %506 : vector<34x64xf32>
    %cst_178 = arith.constant 9.99999974E-6 : f32
    %508 = vector.broadcast %cst_178 : f32 to vector<34x1xf32>
    %509 = arith.addf %505, %508 : vector<34x1xf32>
    %510 = math.rsqrt %509 : vector<34x1xf32>
    %511 = vector.broadcast %510 : vector<34x1xf32> to vector<34x64xf32>
    %512 = arith.mulf %507, %511 : vector<34x64xf32>
    %513 = vector.broadcast %278 : vector<1x64xf32> to vector<34x64xf32>
    %514 = arith.mulf %512, %513 : vector<34x64xf32>
    %515 = vector.broadcast %279 : vector<1x64xf32> to vector<34x64xf32>
    %516 = arith.addf %514, %515 : vector<34x64xf32>
    %517 = arith.truncf %516 : vector<34x64xf32> to vector<34x64xbf16>
    %c1_179 = arith.constant 1 : index
    %c0_180 = arith.constant 0 : index
    %c0_181 = arith.constant 0 : index
    %518 = vector.load %arg7[%c1_179, %c0_180, %c0_181] : memref<2x64x256xbf16, #tpu.memory_space<vmem>>, vector<1x64x256xbf16>
    %519 = vector.shape_cast %518 : vector<1x64x256xbf16> to vector<64x256xbf16>
    %cst_182 = arith.constant dense<0.000000e+00> : vector<34x256xf32>
    %520 = tpu.matmul %517, %519, %cst_182 {dimension_numbers = #tpu.dot_dimension_numbers<[1], [0], [0], [1], [0, 0, 1, 1], [], []>} : vector<34x64xbf16>, vector<64x256xbf16>, vector<34x256xf32> -> vector<34x256xf32>
    %c1_183 = arith.constant 1 : index
    %c0_184 = arith.constant 0 : index
    %c0_185 = arith.constant 0 : index
    %521 = vector.load %arg8[%c1_183, %c0_184, %c0_185] : memref<2x1x256xf32, #tpu.memory_space<vmem>>, vector<1x1x256xf32>
    %522 = vector.shape_cast %521 : vector<1x1x256xf32> to vector<1x256xf32>
    %523 = vector.broadcast %522 : vector<1x256xf32> to vector<34x256xf32>
    %524 = arith.addf %520, %523 : vector<34x256xf32>
    %cst_186 = arith.constant 5.000000e-01 : f32
    %525 = vector.broadcast %cst_186 : f32 to vector<34x256xf32>
    %526 = arith.mulf %525, %524 : vector<34x256xf32>
    %cst_187 = arith.constant 0.707106769 : f32
    %527 = vector.broadcast %cst_187 : f32 to vector<34x256xf32>
    %528 = arith.mulf %524, %527 : vector<34x256xf32>
    %529 = math.erf %528 : vector<34x256xf32>
    %cst_188 = arith.constant 1.000000e+00 : f32
    %530 = vector.broadcast %cst_188 : f32 to vector<34x256xf32>
    %531 = arith.addf %530, %529 : vector<34x256xf32>
    %532 = arith.mulf %526, %531 : vector<34x256xf32>
    %533 = arith.truncf %532 : vector<34x256xf32> to vector<34x256xbf16>
    %c1_189 = arith.constant 1 : index
    %c0_190 = arith.constant 0 : index
    %c0_191 = arith.constant 0 : index
    %534 = vector.load %arg9[%c1_189, %c0_190, %c0_191] : memref<2x256x64xbf16, #tpu.memory_space<vmem>>, vector<1x256x64xbf16>
    %535 = vector.shape_cast %534 : vector<1x256x64xbf16> to vector<256x64xbf16>
    %cst_192 = arith.constant dense<0.000000e+00> : vector<34x64xf32>
    %536 = tpu.matmul %533, %535, %cst_192 {dimension_numbers = #tpu.dot_dimension_numbers<[1], [0], [0], [1], [0, 0, 1, 1], [], []>} : vector<34x256xbf16>, vector<256x64xbf16>, vector<34x64xf32> -> vector<34x64xf32>
    %537 = vector.broadcast %280 : vector<1x64xf32> to vector<34x64xf32>
    %538 = arith.addf %536, %537 : vector<34x64xf32>
    %539 = arith.addf %494, %538 : vector<34x64xf32>
    %540 = vector.extract_strided_slice %539 {offsets = [0, 0], sizes = [1, 64], strides = [1, 1]} : vector<34x64xf32> to vector<1x64xf32>
    %541 = vector.extract_strided_slice %539 {offsets = [17, 0], sizes = [1, 64], strides = [1, 1]} : vector<34x64xf32> to vector<1x64xf32>
    %542 = tpu.concatenate %540, %541 in 0 : vector<1x64xf32>, vector<1x64xf32> -> vector<2x64xf32>
    %c0_193 = arith.constant 0 : index
    %c0_194 = arith.constant 0 : index
    %543 = vector.load %arg11[%c0_193, %c0_194] : memref<2x64xf32, #tpu.memory_space<vmem>>, vector<2x64xf32>
    %544 = vector.extract_strided_slice %543 {offsets = [0, 0], sizes = [1, 64], strides = [1, 1]} : vector<2x64xf32> to vector<1x64xf32>
    %545 = vector.extract_strided_slice %543 {offsets = [1, 0], sizes = [1, 64], strides = [1, 1]} : vector<2x64xf32> to vector<1x64xf32>
    %cst_195 = arith.constant dense<0.000000e+00> : vector<2xf32>
    %546 = vector.multi_reduction <add>, %542, %cst_195 [1] : vector<2x64xf32> to vector<2xf32>
    %547 = vector.shape_cast %546 : vector<2xf32> to vector<2x1xf32>
    %cst_196 = arith.constant 6.400000e+01 : f32
    %548 = vector.broadcast %cst_196 : f32 to vector<2x1xf32>
    %549 = arith.divf %547, %548 : vector<2x1xf32>
    %550 = vector.broadcast %549 : vector<2x1xf32> to vector<2x64xf32>
    %551 = arith.subf %542, %550 : vector<2x64xf32>
    %552 = arith.mulf %551, %551 : vector<2x64xf32>
    %cst_197 = arith.constant dense<0.000000e+00> : vector<2xf32>
    %553 = vector.multi_reduction <add>, %552, %cst_197 [1] : vector<2x64xf32> to vector<2xf32>
    %554 = vector.shape_cast %553 : vector<2xf32> to vector<2x1xf32>
    %cst_198 = arith.constant 6.400000e+01 : f32
    %555 = vector.broadcast %cst_198 : f32 to vector<2x1xf32>
    %556 = arith.divf %554, %555 : vector<2x1xf32>
    %557 = vector.broadcast %549 : vector<2x1xf32> to vector<2x64xf32>
    %558 = arith.subf %542, %557 : vector<2x64xf32>
    %cst_199 = arith.constant 9.99999974E-6 : f32
    %559 = vector.broadcast %cst_199 : f32 to vector<2x1xf32>
    %560 = arith.addf %556, %559 : vector<2x1xf32>
    %561 = math.rsqrt %560 : vector<2x1xf32>
    %562 = vector.broadcast %561 : vector<2x1xf32> to vector<2x64xf32>
    %563 = arith.mulf %558, %562 : vector<2x64xf32>
    %564 = vector.broadcast %544 : vector<1x64xf32> to vector<2x64xf32>
    %565 = arith.mulf %563, %564 : vector<2x64xf32>
    %566 = vector.broadcast %545 : vector<1x64xf32> to vector<2x64xf32>
    %567 = arith.addf %565, %566 : vector<2x64xf32>
    %c0_200 = arith.constant 0 : index
    %c0_201 = arith.constant 0 : index
    %c0_202 = arith.constant 0 : index
    %568 = vector.load %arg12[%c0_200, %c0_201, %c0_202] : memref<1x2x64xf32, #tpu.memory_space<vmem>>, vector<1x2x64xf32>
    %569 = vector.shape_cast %568 : vector<1x2x64xf32> to vector<2x64xf32>
    %570 = vector.shape_cast %567 : vector<2x64xf32> to vector<1x2x64xf32>
    tpu.vector_store %arg12[%c0_200, %c0_201, %c0_202], %570 {strides = array<i32>} : memref<1x2x64xf32, #tpu.memory_space<vmem>>, vector<1x2x64xf32>,
    return
  }
  func.func @transform_0(%arg0: i32) -> (i32, i32, i32) {
    %c0_i32 = arith.constant 0 : i32
    %c0_i32_0 = arith.constant 0 : i32
    %c0_i32_1 = arith.constant 0 : i32
    return %arg0, %c0_i32, %c0_i32_0 : i32, i32, i32
  }
  func.func @transform_1(%arg0: i32) -> (i32, i32) {
    %c0_i32 = arith.constant 0 : i32
    %c0_i32_0 = arith.constant 0 : i32
    %c0_i32_1 = arith.constant 0 : i32
    return %c0_i32, %c0_i32_0 : i32, i32
  }
  func.func @transform_2(%arg0: i32) -> (i32, i32) {
    %c0_i32 = arith.constant 0 : i32
    %c0_i32_0 = arith.constant 0 : i32
    %c0_i32_1 = arith.constant 0 : i32
    return %c0_i32, %c0_i32_0 : i32, i32
  }
  func.func @transform_3(%arg0: i32) -> (i32, i32, i32) {
    %c0_i32 = arith.constant 0 : i32
    %c0_i32_0 = arith.constant 0 : i32
    %c0_i32_1 = arith.constant 0 : i32
    %c0_i32_2 = arith.constant 0 : i32
    return %c0_i32, %c0_i32_0, %c0_i32_1 : i32, i32, i32
  }
  func.func @transform_4(%arg0: i32) -> (i32, i32, i32) {
    %c0_i32 = arith.constant 0 : i32
    %c0_i32_0 = arith.constant 0 : i32
    %c0_i32_1 = arith.constant 0 : i32
    %c0_i32_2 = arith.constant 0 : i32
    return %c0_i32, %c0_i32_0, %c0_i32_1 : i32, i32, i32
  }
  func.func @transform_5(%arg0: i32) -> (i32, i32, i32) {
    %c0_i32 = arith.constant 0 : i32
    %c0_i32_0 = arith.constant 0 : i32
    %c0_i32_1 = arith.constant 0 : i32
    %c0_i32_2 = arith.constant 0 : i32
    return %c0_i32, %c0_i32_0, %c0_i32_1 : i32, i32, i32
  }
  func.func @transform_6(%arg0: i32) -> (i32, i32, i32) {
    %c0_i32 = arith.constant 0 : i32
    %c0_i32_0 = arith.constant 0 : i32
    %c0_i32_1 = arith.constant 0 : i32
    %c0_i32_2 = arith.constant 0 : i32
    return %c0_i32, %c0_i32_0, %c0_i32_1 : i32, i32, i32
  }
  func.func @transform_7(%arg0: i32) -> (i32, i32, i32) {
    %c0_i32 = arith.constant 0 : i32
    %c0_i32_0 = arith.constant 0 : i32
    %c0_i32_1 = arith.constant 0 : i32
    %c0_i32_2 = arith.constant 0 : i32
    return %c0_i32, %c0_i32_0, %c0_i32_1 : i32, i32, i32
  }
  func.func @transform_8(%arg0: i32) -> (i32, i32, i32) {
    %c0_i32 = arith.constant 0 : i32
    %c0_i32_0 = arith.constant 0 : i32
    %c0_i32_1 = arith.constant 0 : i32
    %c0_i32_2 = arith.constant 0 : i32
    return %c0_i32, %c0_i32_0, %c0_i32_1 : i32, i32, i32
  }
  func.func @transform_9(%arg0: i32) -> (i32, i32, i32) {
    %c0_i32 = arith.constant 0 : i32
    %c0_i32_0 = arith.constant 0 : i32
    %c0_i32_1 = arith.constant 0 : i32
    %c0_i32_2 = arith.constant 0 : i32
    return %c0_i32, %c0_i32_0, %c0_i32_1 : i32, i32, i32
  }
  func.func @transform_10(%arg0: i32) -> (i32, i32) {
    %c0_i32 = arith.constant 0 : i32
    %c0_i32_0 = arith.constant 0 : i32
    %c0_i32_1 = arith.constant 0 : i32
    return %c0_i32, %c0_i32_0 : i32, i32
  }
  func.func @transform_11(%arg0: i32) -> (i32, i32, i32) {
    %c0_i32 = arith.constant 0 : i32
    %c0_i32_0 = arith.constant 0 : i32
    %c0_i32_1 = arith.constant 0 : i32
    return %arg0, %c0_i32, %c0_i32_0 : i32, i32, i32
  }
}

</mosaic_0001>

<bundles_post_ra>
// kernel: tile.9
= control target key start
LH: loop header
LB: loop body
LE: loop exit
PB: predicated region body
PF: predicated region fallthrough
CT: control target
= control target key end

     0   :  { %vm3_vm0 = vcmask 523264   ;;  %s11_s6 = smov 3  ;;  %s74_s0 = inlined_call_operand.vmem [shape: f32[2,17,64], index: 0, kind: input, shape index: {}]   ;;  %s75_s1 = inlined_call_operand.vmem [shape: f32[34,64], index: 1, kind: output, shape index: {}]  }
   0x1   :  { %v2_v0 = vld [vmem:[%s74_s0] sm:$0xff]   ;;  %v26_v1 = vld [vmem:[%s74_s0 + $0x8] sm:$0xff]  }
   0x2   :  { %v28_v2 = vld [vmem:[%s74_s0 + $0x10] ss:$8 sm:%s11_s6]   ;;  %4 = vst.msk [vmem:[%s75_s1] sm:$0xff] %vm3_vm0, %v2_v0   ;;  %27 = vst.msk [vmem:[%s75_s1 + $0x8] sm:$0xff] %vm3_vm0, %v26_v1  }
   0x3   :  { %29 = vst.msk [vmem:[%s75_s1 + $0x10] sm:$0x3] %vm3_vm0, %v28_v2   ;;  %v30_v3 = vld [vmem:[%s74_s0 + $0x19] sm:$0xff]   ;;  %v32_v4 = vld [vmem:[%s74_s0 + $0x21] sm:$0xff]  }
   0x4   :  { %31 = vst.msk [vmem:[%s75_s1 + $0x12] sm:$0xff] %vm3_vm0, %v30_v3   ;;  %33 = vst.msk [vmem:[%s75_s1 + $0x1a] sm:$0xff] %vm3_vm0, %v32_v4  }

// kernel: symbol_encoder_forward.1
= control target key start
LH: loop header
LB: loop body
LE: loop exit
PB: predicated region body
PF: predicated region fallthrough
CT: control target
= control target key end

     0   :  { %16 = vsyncpa [#allocation4], 0  ;;  %s8067_s0 = inlined_call_operand.vmem [shape: bf16[2,34,256], index: 0, kind: input, shape index: {}]   ;;  %s8068_s1 = inlined_call_operand.vmem [shape: f32[34,64], index: 1, kind: input, shape index: {}]   ;;  %s8069_s2 = inlined_call_operand.vmem [shape: bf16[256,64], index: 2, kind: input, shape index: {}]   ;;  %s8070_s3 = inlined_call_operand.vmem [shape: bf16[2,64,192], index: 3, kind: input, shape index: {}]   ;;  %s8071_s4 = inlined_call_operand.vmem [shape: f32[2,1,192], index: 4, kind: input, shape index: {}]   ;;  %s8072_s5 = inlined_call_operand.vmem [shape: bf16[2,64,64], index: 5, kind: input, shape index: {}]   ;;  %s8073_s6 = inlined_call_operand.vmem [shape: bf16[2,64,256], index: 6, kind: input, shape index: {}]   ;;  %s8074_s7 = inlined_call_operand.vmem [shape: f32[2,1,256], index: 7, kind: input, shape index: {}]   ;;  %s8075_s8 = inlined_call_operand.vmem [shape: bf16[2,256,64], index: 8, kind: input, shape index: {}]   ;;  %s8076_s9 = inlined_call_operand.vmem [shape: f32[2,6,64], index: 9, kind: input, shape index: {}]   ;;  %s8077_s10 = inlined_call_operand.vmem [shape: f32[2,64], index: 10, kind: input, shape index: {}]   ;;  %s8078_s11 = inlined_call_operand.hbm [shape: f32[2,2,64], index: 11, kind: output, shape index: {}]  }
   0x1   :  { %18 = vsyncpa [#allocation4 + $0x1], 0  ;;  %s6632_s17 = smov 0   ;;  %s6634_s18 = smov 0  }
   0x2   :  { %s6636_s19 = smov 0   ;;  %s6638_s20 = smov 0  }
   0x3 LB: > { %8090 = sst [smem:[#allocation6_spill]] %s6555_s19  ;;  %s6653_s21 = sadd.s32 4294967295, %s6559_s20   ;;  %s6559_s20 = sphi %s6638_s20, %s8099_s20   ;;  %s6555_s19 = sphi %s6636_s19, %s8101_s19   ;;  %s6551_s18 = sphi %s6634_s18, %s8103_s18   ;;  %s6547_s17 = sphi %s6632_s17, %s8102_s17  }
   0x4   : > { %s5242_s22 = sadd.s32 4294967294, %s6559_s20   ;;  %s6657_s23 = sadd.s32 1, %s6559_s20  }
   0x5   : > { %8091 = sst [smem:[#allocation7_spill]] %s6657_s23  ;;  %s267_s24 = sadd.s32 1, %s6555_s19 }
   0x6   : > { %s264_s25 = ssub.s32 %s6559_s20, %s6657_s23  ;;  %p277_p0 = scmp.ne.s32.totalorder %s6555_s19, %s6551_s18 }
   0x7   : > { %p265_p1 = scmp.eq.s32.totalorder %s264_s25, 0  ;;  %p278_p2 = scmp.eq.s32.totalorder %s6653_s21, 1 }
   0x8   : > { %p283_p3 = scmp.ne.s32.totalorder %s6551_s18, %s6547_s17  ;;  %p284_p4 = scmp.eq.s32.totalorder %s5242_s22, 1 }
   0x9   : > { %s6668_s26 = scalar_select %p265_p1, %s6555_s19, %s267_s24  }
   0xa   : > { %p6670_p5 = por %p278_p2, %p277_p0  ;;  %p6674_p6 = por %p284_p4, %p283_p3 }
   0xb   : > { %8092 = sst [smem:[#allocation8_spill]] %s6668_s26  ;;  %p5245_p7 = scmp.ge.s32.totalorder %s6559_s20, 1 }
   0xc   : > { %p340_p8 = scmp.lt.s32.totalorder %s6559_s20, 3 }
   0xe   : > { %p341_p9 = pnand %p5245_p7, %p340_p8 }
   0xf   : > { %v6109_v0 = vld [vmem:[%s8069_s2 + $0x40] sm:$0xff] (!%p341_p9)   ;;  %v6111_v2 = vld [vmem:[%s8069_s2 + $0x48] sm:$0xff] (!%p341_p9)   ;;  %p380_p10 = scmp.lt.s32.totalorder (!%p341_p9), %s6653_s21, 1  ;;  %v6113_v4 = vld [vmem:[%s8069_s2 + $0x50] sm:$0xff] (!%p341_p9)   ;;  %vm608_vm0 = vcmask (!%p341_p9), 523264   ;;  %vm621_vm1 = vcmask (!%p341_p9), 517120  }
  0x10   : > { %344 = sbr.rel (%p341_p9) target bundleno = 12381 (0x305d), region = 64  ;;  %v6110_v1 = vld [vmem:[%s8069_s2] sm:$0xff] (!%p341_p9)   ;;  %5487 = vmatprep.subr.bf16.mxu0 (!%p341_p9), %v6109_v0  ;;  %v6112_v3 = vld [vmem:[%s8069_s2 + $0x8] sm:$0xff] (!%p341_p9)   ;;  %v6114_v5 = vld [vmem:[%s8069_s2 + $0x10] sm:$0xff] (!%p341_p9)   ;;  %vm835_vm2 = vcmask (!%p341_p9), 130048   ;;  %vm944_vm3 = vcmask (!%p341_p9), 1040384  }
  0x11   : > { %5488 = vmatpush3.bf16.msra.mxu0 (!%p341_p9), %v6110_v1  ;;  %v6115_v6 = vld [vmem:[%s8069_s2 + $0x58] sm:$0xff] (!%p341_p9)   ;;  %v6117_v8 = vld [vmem:[%s8069_s2 + $0x60] sm:$0xff] (!%p341_p9)   ;;  %v6119_v10 = vld [vmem:[%s8069_s2 + $0x68] sm:$0xff] (!%p341_p9)   ;;  %vm1561_vm4 = vsmask.f32 (!%p341_p9), 7424  ;;  %vm899_vm5 = vcmask (!%p341_p9), 138240  }
  0x12   : > { %5489 = vmatprep.subr.bf16.mxu0 (!%p341_p9), %v6111_v2  ;;  %v6116_v7 = vld [vmem:[%s8069_s2 + $0x18] sm:$0xff] (!%p341_p9)   ;;  %v6118_v9 = vld [vmem:[%s8069_s2 + $0x20] sm:$0xff] (!%p341_p9)   ;;  %v6120_v12 = vld [vmem:[%s8069_s2 + $0x28] sm:$0xff] (!%p341_p9)   ;;  %vm906_vm6 = vcmask (!%p341_p9), 131072   ;;  %s6563_s22 = smov (!%p341_p9), 48   ;;  %s6564_s24 = smov (!%p341_p9), 112  }
  0x13   : > { %v6121_v13 = vld [vmem:[%s8069_s2 + $0x70] sm:$0xff] (!%p341_p9)   ;;  %v6123_v15 = vld [vmem:[%s8069_s2 + $0x78] sm:$0xff] (!%p341_p9)   ;;  %v423_v24 = vld [vmem:[%s8068_s1] sm:$0xff] (!%p341_p9)  ;;  %s8088_s19 = smov (!%p341_p9), 32   ;;  %s8086_s23 = smov (!%p341_p9), 96   ;;  %vm1000_vm7 = vcmask (!%p341_p9), 122880  }
  0x14   : > { %v6122_v14 = vld [vmem:[%s8069_s2 + $0x30] sm:$0xff] (!%p341_p9)   ;;  %v6124_v16 = vld [vmem:[%s8069_s2 + $0x38] sm:$0xff] (!%p341_p9)   ;;  %v424_v28 = vld [vmem:[%s8068_s1 + $0x8] sm:$0xff] (!%p341_p9)  ;;  %s8084_s26 = smov (!%p341_p9), 16   ;;  %vm1184_vm8 = vcmask (!%p341_p9), 261248   ;;  %vm1369_vm9 = vcmask (!%p341_p9), 392448  }
  0x15   : > { %5490 = vmatpush3.bf16.msra.mxu0 (!%p341_p9), %v6112_v3  ;;  %v425_v35 = vld [vmem:[%s8068_s1 + $0x10] sm:$0xff] (!%p341_p9)  ;;  %v426_v40 = vld [vmem:[%s8068_s1 + $0x18] sm:$0xff] (!%p341_p9)  ;;  %v427_v63 = vld [vmem:[%s8068_s1 + $0x20] sm:$0x3] (!%p341_p9)  ;;  %vm1554_vm10 = vcmask (!%p341_p9), 523648   ;;  %vm1187_vm11 = vcmask (!%p341_p9), 254080  }
  0x16   : > { %5491 = vmatprep.subr.bf16.mxu0 (!%p341_p9), %v6113_v4  ;;  %vm6570_vm12 = vmmov (!%p341_p9), 0   ;;  %vm1372_vm13 = vcmask (!%p341_p9), 385280   ;;  %vm1557_vm14 = vcmask (!%p341_p9), 516480   ;;  %s8095_s14 = smov (!%p341_p9), 32   ;;  %s8096_s16 = smov (!%p341_p9), 96  }
  0x17   : > { %s381_s29 = scalar_select %p380_p10, %s6653_s21, 1 }
  0x18   : > { %s8097_s25 = smov 16   ;;  %s8098_s12 = smov 80  }
  0x19   : > { %s6059_s15 = smul.u32 40, %s381_s29  ;;  %5492 = vmatpush3.bf16.msra.mxu0 %v6114_v5 }
  0x1a   : > { %5493 = vmatprep.subr.bf16.mxu0 %v6115_v6 }
  0x1b   : > { %s384_s30 = scalar_lea.vmem %s8067_s0, %s6059_s15  ;;  %s8082_s15 = smov 80  }
  0x1c   : > { %v6127_v11 = vld [vmem:[%s384_s30 + $0x4] ss:$8 sps:$4 sm:$0xff]   ;;  %v6125_v17 = vld [vmem:[%s384_s30] ss:$8 sps:$4 sm:$0xff]   ;;  %v6128_v18 = vld [vmem:[%s384_s30 + $0x14] ss:$8 sps:$4 sm:$0xff]  }
  0x1d   : > { %5494 = vmatpush3.bf16.msra.mxu0 %v6116_v7  ;;  %583 = vmatprep.mubr.bf16.mxu0 %v6127_v11  ;;  %v390_v19 = vld [vmem:[%s384_s30 + $0x20] sm:$0x11]  ;;  %v6130_v20 = vld [vmem:[%s384_s30 + $0x10] ss:$8 sps:$4 sm:$0xff]   ;;  %s6562_s30 = smov 64  }
  0x1e   : > { %5495 = vmatprep.subr.bf16.mxu0 %v6117_v8  ;;  %v5253_v21 = vcombine.high %v390_v19, %v390_v19  ;;  %v5252_v22 = vcombine.low %v390_v19, %v390_v19  ;;  %v6133_v11 = vld [vmem:[%s8070_s3 + $0x4] ss:$8 sps:$4 sm:$0xff]   ;;  %v6561_v19 = vmov 0  }
  0x1f   : > { %766 = vmatprep.subr.bf16.mxu1 %v6133_v11  ;;  %798 = vmatprep.mubr.bf16.mxu1 %v6561_v19  ;;  %v705_v11 = vld [vmem:[%s8071_s4] sm:$0x3] }
  0x21   : > { %5496 = vmatpush3.bf16.msra.mxu0 %v6118_v9 }
  0x22   : > { %5497 = vmatprep.subr.bf16.mxu0 %v6119_v10 }
  0x25   : > { %5498 = vmatpush3.bf16.msra.mxu0 %v6120_v12  ;;  %v6135_v12 = vld [vmem:[%s8070_s3] ss:$8 sps:$4 sm:$0xff]  }
  0x26   : > { %5499 = vmatprep.subr.bf16.mxu0 %v6121_v13  ;;  %767 = vmatpush1.bf16.msra.mxu1 %v6135_v12  ;;  %v6136_v13 = vld [vmem:[%s8070_s3 + $0x14] ss:$8 sps:$4 sm:$0xff]  }
  0x27   : > { %768 = vmatprep.subr.bf16.mxu1 %v6136_v13 }
  0x29   : > { %5500 = vmatpush3.bf16.msra.mxu0 %v6122_v14  ;;  %v6138_v14 = vld [vmem:[%s8070_s3 + $0x10] ss:$8 sps:$4 sm:$0xff]  }
  0x2a   : > { %5501 = vmatprep.subr.bf16.mxu0 %v6123_v15  ;;  %769 = vmatpush1.bf16.msra.mxu1 %v6138_v14  ;;  %v6139_v15 = vld [vmem:[%s8070_s3 + $0x24] ss:$8 sps:$4 sm:$0xff]  }
  0x2b   : > { %770 = vmatprep.subr.bf16.mxu1 %v6139_v15 }
  0x2d   : > { %5502 = vmatpush3.bf16.msra.mxu0 %v6124_v16  ;;  %v6141_v16 = vld [vmem:[%s8070_s3 + $0x20] ss:$8 sps:$4 sm:$0xff]  }
  0x2e   : > { %771 = vmatpush1.bf16.msra.mxu1 %v6141_v16 }
  0x30   : > { %584 = vmatmul.mubr.bf16.vlgmr.msra.gmra.mrb[0].mxu0 %v6125_v17  ;;  %v6142_v17 = vld [vmem:[%s8070_s3 + $0x34] ss:$8 sps:$4 sm:$0xff]  }
  0x31   : > { %591 = vmatprep.mubr.bf16.mxu0 %v6128_v18  ;;  %v6144_v18 = vld [vmem:[%s8070_s3 + $0x30] ss:$8 sps:$4 sm:$0xff]   ;;  %772 = vmatprep.subr.bf16.mxu1 %v6142_v17 }
  0x32   : > { %773 = vmatpush1.bf16.msra.mxu1 %v6144_v18 }
  0x38   : > { %592 = vmatmul.mubr.bf16.gmra.mrb[4].mxu0 %v6130_v20 }
  0x39   : > { %599 = vmatprep.mubr.bf16.mxu0 %v5253_v21 }
  0x40   : > { %600 = vmatmul.mubr.bf16.gmra.mrb[8].mxu0 %v5252_v22 }
 0x103   : > { %v5503_v23 = vpop.f32.mrb[0].mxu0 }
 0x104   : > { %v5504_v25 = vpop.f32.mrb[1].mxu0 }
 0x105   : > { %v5505_v26 = vadd.f32 %v5504_v25, %v5503_v23  ;;  %v5506_v27 = vpop.f32.mrb[2].mxu0 }
 0x106   : > { %v5507_v29 = vpop.f32.mrb[3].mxu0 }
 0x107   : > { %v6739_v30 = vadd.f32 %v5505_v26, %v423_v24  ;;  %v5508_v31 = vadd.f32 %v5507_v29, %v5506_v27  ;;  %v676_v24 = vlaneseq }
 0x109   : > { %v6741_v32 = vadd.f32 %v5508_v31, %v424_v28  ;;  %v609_v33 = vsel %vm608_vm0, %v6739_v30, 0.0  ;;  %v6817_v28 = vshrl.u32 %v676_v24, 7 }
 0x10a   : > { %610 = vadd.xlane.f32.xlu0 %v609_v33 }
 0x10b   : > { %v5509_v34 = vpop.f32.mrb[4].mxu0  ;;  %v612_v38 = vsel %vm608_vm0, %v6741_v32, 0.0 }
 0x10c   : > { %v5510_v36 = vpop.f32.mrb[5].mxu0 }
 0x10d   : > { %v5511_v37 = vadd.f32 %v5510_v36, %v5509_v34  ;;  %v5512_v39 = vpop.f32.mrb[6].mxu0 }
 0x10e   : > { %613 = vadd.xlane.f32.xlu0 %v612_v38  ;;  %v5513_v41 = vpop.f32.mrb[7].mxu0  ;;  %v607_v38 = vld [vmem:[%s8076_s9] sm:$0x3f] }
 0x10f   : > { %v6753_v42 = vadd.f32 %v5511_v37, %v425_v35  ;;  %v5514_v43 = vadd.f32 %v5513_v41, %v5512_v39  ;;  %v6820_v35 = vsub.s32 0, %v6817_v28 }
 0x111   : > { %v6755_v44 = vadd.f32 %v5514_v43, %v426_v40  ;;  %v615_v45 = vsel %vm608_vm0, %v6753_v42, 0.0  ;;  %v710_v12 = vrot.slane %v705_v11, %v6820_v35 }
 0x112   : > { %616 = vadd.xlane.f32.xlu1 %v615_v45  ;;  %v679_v45 = vrot.slane %v607_v38, %v6820_v35 }
 0x113   : > { %v618_v46 = vsel %vm608_vm0, %v6755_v44, 0.0  ;;  %v5515_v47 = vpop.f32.mrb[8].mxu0 }
 0x114   : > { %v5516_v48 = vpop.f32.mrb[9].mxu0 }
 0x115   : > { %v5517_v49 = vadd.f32 %v5516_v48, %v5515_v47  ;;  %v5518_v50 = vpop.f32.mrb[10].mxu0 }
 0x116   : > { %619 = vadd.xlane.f32.xlu1 %v618_v46  ;;  %v5519_v51 = vpop.f32.mrb[11].mxu0  ;;  %v6829_v46 = vsub.s32 1, %v6817_v28 }
 0x117   : > { %v6779_v4 = vadd.f32 %v5517_v49, %v427_v63 }
 0x118   : > { %v714_v14 = vrot.slane %v705_v11, %v6829_v46 }
 0x119   : > { %v622_v8 = vsel %vm621_vm1, %v6779_v4, 0.0 }
 0x197   : > { %v611_v52 = vpop.xlane.xlu0 %610 }
 0x198   : > { %v626_v53 = vmul.f32 0.015625, %v611_v52  ;;  %v688_v52 = vrot.slane %v607_v38, %v6829_v46 }
 0x19a   : > { %v6762_v54 = vsub.f32 %v6739_v30, %v626_v53 }
 0x19b   : > { %v614_v55 = vpop.xlane.xlu0 %613 }
 0x19c   : > { %v627_v56 = vmul.f32 0.015625, %v614_v55  ;;  %v636_v57 = vmul.f32 %v6762_v54, %v6762_v54 }
 0x19e   : > { %v6767_v58 = vsub.f32 %v6741_v32, %v627_v56  ;;  %v641_v59 = vsel %vm608_vm0, %v636_v57, 0.0 }
 0x19f   : > { %v617_v60 = vpop.xlane.xlu1 %616  ;;  %642 = vadd.xlane.f32.xlu0 %v641_v59 }
 0x1a0   : > { %v628_v61 = vmul.f32 0.015625, %v617_v60  ;;  %v637_v62 = vmul.f32 %v6767_v58, %v6767_v58 }
 0x1a2   : > { %v6776_v0 = vsub.f32 %v6753_v42, %v628_v61  ;;  %v644_v1 = vsel %vm608_vm0, %v637_v62, 0.0 }
 0x1a3   : > { %v620_v2 = vpop.xlane.xlu1 %619  ;;  %645 = vadd.xlane.f32.xlu1 %v644_v1 }
 0x1a4   : > { %v629_v3 = vmul.f32 0.015625, %v620_v2  ;;  %v638_v5 = vmul.f32 %v6776_v0, %v6776_v0 }
 0x1a6   : > { %v6784_v6 = vsub.f32 %v6755_v44, %v629_v3  ;;  %v647_v7 = vsel %vm608_vm0, %v638_v5, 0.0 }
 0x1a7   : > { %648 = vadd.xlane.f32.xlu0 %v647_v7 }
 0x1a8   : > { %v639_v9 = vmul.f32 %v6784_v6, %v6784_v6 }
 0x1aa   : > { %v650_v10 = vsel %vm608_vm0, %v639_v9, 0.0 }
 0x1ab   : > { %623 = vadd.xlane.f32.xlu0 %v622_v8  ;;  %651 = vadd.xlane.f32.xlu1 %v650_v10 }
 0x22c   : > { %v643_v20 = vpop.xlane.xlu0 %642 }
 0x22d   : > { %v656_v21 = vmul.f32 0.015625, %v643_v20 }
 0x22f   : > { %v661_v22 = vadd.f32 1e-05, %v656_v21 }
 0x230   : > { %v646_v23 = vpop.xlane.xlu1 %645 }
 0x231   : > { %6221 = vrsqrt.f32 %v661_v22  ;;  %v657_v25 = vmul.f32 0.015625, %v646_v23 }
 0x233   : > { %v662_v26 = vadd.f32 1e-05, %v657_v25 }
 0x234   : > { %v649_v27 = vpop.xlane.xlu0 %648 }
 0x235   : > { %6223 = vrsqrt.f32 %v662_v26  ;;  %v658_v29 = vmul.f32 0.015625, %v649_v27 }
 0x237   : > { %v663_v31 = vadd.f32 1e-05, %v658_v29 }
 0x238   : > { %v652_v33 = vpop.xlane.xlu1 %651  ;;  %v624_v34 = vpop.xlane.xlu0 %623 }
 0x239   : > { %6225 = vrsqrt.f32 %v663_v31  ;;  %v659_v36 = vmul.f32 0.015625, %v652_v33  ;;  %v630_v37 = vmul.f32 0.015625, %v624_v34 }
 0x23b   : > { %v6222_v39 = vpop.eup %6221  ;;  %v664_v40 = vadd.f32 1e-05, %v659_v36  ;;  %v635_v41 = vsub.f32 %v6779_v4, %v630_v37 }
 0x23c   : > { %v671_v43 = vmul.f32 %v6222_v39, %v6762_v54 }
 0x23d   : > { %6227 = vrsqrt.f32 %v664_v40  ;;  %v640_v47 = vmul.f32 %v635_v41, %v635_v41 }
 0x23e   : > { %v680_v51 = vmul.f32 %v679_v45, %v671_v43 }
 0x23f   : > { %v6224_v48 = vpop.eup %6223  ;;  %v653_v49 = vsel %vm621_vm1, %v640_v47, 0.0 }
 0x240   : > { %654 = vadd.xlane.f32.xlu1 %v653_v49  ;;  %v672_v50 = vmul.f32 %v6224_v48, %v6767_v58  ;;  %v689_v56 = vadd.f32 %v688_v52, %v680_v51  ;;  %v6867_v48 = vsel %vm944_vm3, 65535, %v6561_v19 }
 0x242   : > { %v681_v53 = vmul.f32 %v679_v45, %v672_v50 }
 0x243   : > { %v6226_v55 = vpop.eup %6225 }
 0x244   : > { %v690_v54 = vadd.f32 %v688_v52, %v681_v53  ;;  %v673_v57 = vmul.f32 %v6226_v55, %v6776_v0 }
 0x246   : > { %v694_v59 = vpack.c.bf16 %v690_v54, %v689_v56  ;;  %v682_v62 = vmul.f32 %v679_v45, %v673_v57 }
 0x247   : > { %v6228_v60 = vpop.eup %6227 }
 0x248   : > { %5278 = vmatmul.mubr.msk.bf16.vlgmr.msra.gmra.mrb[0].mxu1 %vm608_vm0, %v694_v59  ;;  %v674_v61 = vmul.f32 %v6228_v60, %v6784_v6  ;;  %v691_v58 = vadd.f32 %v688_v52, %v682_v62 }
 0x249   : > { %808 = vmatprep.mubr.bf16.mxu1 %v6561_v19 }
 0x24a   : > { %v683_v63 = vmul.f32 %v679_v45, %v674_v61 }
 0x24c   : > { %v692_v1 = vadd.f32 %v688_v52, %v683_v63 }
 0x24e   : > { %v695_v2 = vpack.c.bf16 %v692_v1, %v691_v58 }
 0x250   : > { %5279 = vmatmul.mubr.msk.bf16.gmra.mrb[4].mxu1 %vm608_vm0, %v695_v2 }
 0x251   : > { %818 = vmatprep.mubr.bf16.mxu1 %v6561_v19 }
 0x2cd   : > { %v655_v3 = vpop.xlane.xlu1 %654 }
 0x2ce   : > { %v660_v5 = vmul.f32 0.015625, %v655_v3 }
 0x2d0   : > { %v665_v0 = vadd.f32 1e-05, %v660_v5 }
 0x2d2   : > { %6229 = vrsqrt.f32 %v665_v0 }
 0x2dc   : > { %v6230_v7 = vpop.eup %6229 }
 0x2dd   : > { %v675_v8 = vmul.f32 %v6230_v7, %v635_v41 }
 0x2df   : > { %v684_v9 = vmul.f32 %v679_v45, %v675_v8 }
 0x2e1   : > { %v693_v10 = vadd.f32 %v688_v52, %v684_v9 }
 0x2e3   : > { %v696_v6 = vpack.c.bf16 %v693_v10, %v693_v10 }
 0x2e5   : > { %5280 = vmatmul.mubr.msk.bf16.gmra.mrb[8].mxu1 %vm608_vm0, %v696_v6 }
 0x31b   : > { %v800_v13 = vpop.f32.mrb[0].mxu1 }
 0x31c   : > { %v802_v15 = vpop.f32.mrb[1].mxu1  ;;  %v801_v17 = vadd.f32 %v800_v13, %v710_v12 }
 0x31d   : > { %v804_v16 = vpop.f32.mrb[2].mxu1  ;;  %v803_v21 = vadd.f32 %v802_v15, %v714_v14 }
 0x31e   : > { %v805_v18 = vadd.f32 %v804_v16, %v710_v12  ;;  %v806_v20 = vpop.f32.mrb[3].mxu1 }
 0x31f   : > { %v807_v22 = vadd.f32 %v806_v20, %v714_v14 }
 0x320   : > { %v6846_v23 = vpack.c.bf16 %v805_v18, %v801_v17 }
 0x321   : > { %v6848_v24 = vpack.c.bf16 %v807_v22, %v803_v21 }
 0x322   : > { %831 = vrot.lane.b32.xlu0 %v6846_v23, %s6562_s30  ;;  %5735 = vmatprep.mubr.msk.bf16.mxu1 %vm835_vm2, %v6846_v23 }
 0x323   : > { %v810_v25 = vpop.f32.mrb[4].mxu1 }
 0x324   : > { %v811_v26 = vadd.f32 %v810_v25, %v710_v12  ;;  %v812_v27 = vpop.f32.mrb[5].mxu1 }
 0x325   : > { %v814_v29 = vpop.f32.mrb[6].mxu1  ;;  %v813_v36 = vadd.f32 %v812_v27, %v714_v14 }
 0x326   : > { %v6854_v31 = vpack.c.bf16 %v811_v26, %v811_v26  ;;  %v815_v33 = vadd.f32 %v814_v29, %v710_v12  ;;  %v816_v34 = vpop.f32.mrb[7].mxu1 }
 0x327   : > { %v817_v37 = vadd.f32 %v816_v34, %v714_v14  ;;  %v6863_v47 = vpack.c.bf16 %v813_v36, %v813_v36 }
 0x328   : > { %v1559_v38 = vpack.c.bf16 %v815_v33, %v811_v26  ;;  %833 = vrot.lane.b32.xlu1 %v6854_v31, %s6562_s30 }
 0x329   : > { %v1678_v39 = vpack.c.bf16 %v817_v37, %v813_v36  ;;  %v948_v49 = vand.u32 %v6867_v48, %v6863_v47 }
 0x32a   : > { %v1565_v50 = vshll.u32 %v1559_v38, 16  ;;  %v1563_v63 = vshrl.u32 %v1559_v38, 16 }
 0x32b   : > { %v1683_v51 = vshll.u32 %v1678_v39, 16  ;;  %v1681_v1 = vshrl.u32 %v1678_v39, 16 }
 0x32c   : > { %v1567_v57 = vrot.slane %v1565_v50, 1 }
 0x32d   : > { %v1685_v61 = vrot.slane %v1683_v51, 1 }
 0x32e   : > { %v1568_v3 = vor.u32 %v1567_v57, %v1563_v63 }
 0x32f   : > { %v1686_v0 = vor.u32 %v1685_v61, %v1681_v1 }
 0x394   : > { %v832_v40 = vpop.permute.xlu0 %831 }
 0x395   : > { %6027 = vmatprep.subr.msk.bf16.mxu1 %vm835_vm2, %v832_v40  ;;  %v843_v41 = vsel %vm835_vm2, %v832_v40, 0 }
 0x396   : > { %5732 = vmatpush3.bf16.xpose.msra.mxu1 %v843_v41 }
 0x39a   : > { %v834_v43 = vpop.permute.xlu1 %833 }
 0x39b   : > { %6028 = vmatprep.subr.msk.bf16.mxu1 %vm835_vm2, %v834_v43  ;;  %v846_v45 = vsel %vm835_vm2, %v834_v43, 0 }
 0x39e   : > { %5734 = vmatpush3.bf16.xpose.msra.mxu1 %v846_v45 }
 0x39f   : > { %5739 = vmatprep.subr.bf16.mxu1 %v6848_v24 }
 0x3a5   : > { %5736 = vmatmul.mubr.msk.bf16.vlgmr.msra.gmra.mrb[12].mxu1 %vm835_vm2, %v6854_v31 }
 0x3a6   : > { %5740 = vmatpush3.bf16.msra.mxu1 %v6848_v24 }
 0x3a7   : > { %5741 = vmatprep.subr.bf16.mxu1 %v948_v49 }
 0x3aa   : > { %5742 = vmatpush3.bf16.msra.mxu1 %v948_v49 }
 0x3b8   : > { %v820_v52 = vpop.f32.mrb[8].mxu1 }
 0x3b9   : > { %v821_v53 = vadd.f32 %v820_v52, %v710_v12  ;;  %v822_v55 = vpop.f32.mrb[9].mxu1 }
 0x3ba   : > { %v823_v56 = vadd.f32 %v822_v55, %v714_v14  ;;  %v824_v54 = vpop.f32.mrb[10].mxu1 }
 0x3bb   : > { %v6874_v59 = vpack.c.bf16 %v821_v53, %v821_v53  ;;  %v825_v60 = vpop.f32.mrb[11].mxu1 }
 0x3bc   : > { %v6876_v62 = vpack.c.bf16 %v823_v56, %v823_v56 }
 0x3bd   : > { %v1570_v58 = vshll.u32 %v6874_v59, 16 }
 0x3be   : > { %v1688_v2 = vshll.u32 %v6876_v62, 16 }
 0x3bf   : > { %v1572_v5 = vrot.slane %v1570_v58, 1 }
 0x3c0   : > { %v1690_v7 = vrot.slane %v1688_v2, 1 }
 0x3c1   : > { %v6881_v8 = vsel %vm1561_vm4, %v1568_v3, %v1572_v5 }
 0x3c2   : > { %v6884_v9 = vsel %vm1561_vm4, %v1686_v0, %v1690_v7 }
 0x478   : > { %v5737_v10 = vpop.f32.mrb[12].mxu1 }
 0x479   : > { %v882_v6 = vpop.f32.mrb[13].mxu1  ;;  %v898_v16 = vmul.f32 0.25, %v5737_v10 }
 0x47a   : > { %v896_v11 = vmul.f32 0.25, %v882_v6  ;;  %v5738_v12 = vpop.f32.mrb[14].mxu1 }
 0x47b   : > { %v885_v13 = vpop.f32.mrb[15].mxu1  ;;  %v907_v18 = vsel %vm906_vm6, %v898_v16, -inf }
 0x47c   : > { %v897_v14 = vmul.f32 0.25, %v885_v13  ;;  %v900_v15 = vsel %vm899_vm5, %v896_v11, -inf }
 0x47d   : > { %901 = vmax.xlane.f32.xlu1 %v900_v15 }
 0x47e   : > { %v903_v17 = vsel %vm899_vm5, %v897_v14, -inf }
 0x47f   : > { %904 = vmax.xlane.f32.xlu0 %v903_v17 }
 0x483   : > { %908 = vmax.xlane.f32.xlu0 %v907_v18 }
 0x50a   : > { %v902_v20 = vpop.xlane.xlu1 %901 }
 0x50b   : > { %v910_v25 = vsub.f32 %v896_v11, %v902_v20 }
 0x50c   : > { %v905_v21 = vpop.xlane.xlu0 %904 }
 0x50d   : > { %v911_v22 = vsub.f32 %v897_v14, %v905_v21  ;;  %v913_v33 = vmul.f32 1.442695, %v910_v25 }
 0x50f   : > { %v915_v26 = vmul.f32 1.442695, %v911_v22 }
 0x510   : > { %v909_v27 = vpop.xlane.xlu0 %908 }
 0x511   : > { %6231 = vpow2.f32 %v915_v26  ;;  %v912_v29 = vsub.f32 %v898_v16, %v909_v27 }
 0x513   : > { %v917_v34 = vmul.f32 1.442695, %v912_v29 }
 0x515   : > { %6233 = vpow2.f32 %v917_v34 }
 0x516   : > { %6235 = vpow2.f32 %v913_v33 }
 0x51b   : > { %v6232_v36 = vpop.eup %6231 }
 0x51c   : > { %v922_v37 = vsel %vm899_vm5, %v6232_v36, 0.0 }
 0x51d   : > { %923 = vadd.xlane.f32.xlu0 %v922_v37 }
 0x51f   : > { %v6234_v38 = vpop.eup %6233 }
 0x520   : > { %v925_v39 = vsel %vm906_vm6, %v6234_v38, 0.0  ;;  %v6236_v40 = vpop.eup %6235 }
 0x521   : > { %926 = vadd.xlane.f32.xlu1 %v925_v39  ;;  %v919_v41 = vsel %vm899_vm5, %v6236_v40, 0.0 }
 0x525   : > { %920 = vadd.xlane.f32.xlu1 %v919_v41 }
 0x533   : > { %1006 = vrot.lane.b32.xlu0 %v6846_v23, %s6563_s22 }
 0x536   : > { %1008 = vrot.lane.b32.xlu1 %v6854_v31, %s6563_s22 }
 0x537   : > { %1004 = vrot.lane.b32.xlu0 %v6854_v31, %s6564_s24 }
 0x53a   : > { %1193 = vrot.lane.b32.xlu1 %v6846_v23, %s8088_s19 }
 0x53b   : > { %1189 = vrot.lane.b32.xlu0 %v6846_v23, %s8086_s23 }
 0x53e   : > { %1002 = vrot.lane.b32.xlu1 %v6846_v23, %s6564_s24 }
 0x542   : > { %1195 = vrot.lane.b32.xlu1 %v6854_v31, %s8088_s19 }
 0x546   : > { %1191 = vrot.lane.b32.xlu1 %v6854_v31, %s8086_s23 }
 0x5aa   : > { %v924_v43 = vpop.xlane.xlu0 %923 }
 0x5ae   : > { %v927_v45 = vpop.xlane.xlu1 %926  ;;  %v1007_v49 = vpop.permute.xlu0 %1006 }
 0x5af   : > { %6029 = vmatprep.subr.msk.bf16.mxu1 %vm835_vm2, %v1007_v49  ;;  %6237 = vrcp.f32 %v927_v45  ;;  %v1017_v0 = vsel %vm835_vm2, %v1007_v49, 0 }
 0x5b0   : > { %6239 = vrcp.f32 %v924_v43 }
 0x5b2   : > { %v921_v50 = vpop.xlane.xlu1 %920  ;;  %v1005_v51 = vpop.permute.xlu0 %1004 }
 0x5b3   : > { %6241 = vrcp.f32 %v921_v50 }
 0x5b6   : > { %v1009_v52 = vpop.permute.xlu1 %1008  ;;  %v1190_v53 = vpop.permute.xlu0 %1189 }
 0x5b7   : > { %5767 = vmatprep.mubr.msk.bf16.mxu0 %vm835_vm2, %v1190_v53  ;;  %v1020_v6 = vsel %vm835_vm2, %v1009_v52, 0 }
 0x5b9   : > { %v6238_v55 = vpop.eup %6237 }
 0x5ba   : > { %v1194_v56 = vpop.permute.xlu1 %1193  ;;  %v6240_v54 = vpop.eup %6239  ;;  %v933_v61 = vmul.f32 %v6238_v55, %v6234_v38 }
 0x5bb   : > { %6031 = vmatprep.subr.msk.bf16.mxu0 %vm835_vm2, %v1194_v56  ;;  %v1204_v57 = vsel %vm835_vm2, %v1194_v56, 0  ;;  %v932_v1 = vmul.f32 %v6240_v54, %v6232_v36 }
 0x5bc   : > { %5764 = vmatpush3.bf16.xpose.msra.mxu0 %v1204_v57  ;;  %v935_v3 = vpack.c.bf16 %v933_v61, %v933_v61 }
 0x5bd   : > { %v6242_v60 = vpop.eup %6241 }
 0x5be   : > { %v1003_v63 = vpop.permute.xlu1 %1002  ;;  %v931_v58 = vmul.f32 %v6242_v60, %v6236_v40 }
 0x5c0   : > { %v934_v2 = vpack.c.bf16 %v932_v1, %v931_v58 }
 0x5c2   : > { %v1196_v5 = vpop.permute.xlu1 %1195  ;;  %5743 = vmatprep.mubr.msk.bf16.mxu1 %vm899_vm5, %v934_v2 }
 0x5c3   : > { %5744 = vmatmul.mubr.msk.bf16.vlgmr.msra.gmra.mrb[16].mxu1 %vm899_vm5, %v935_v3  ;;  %6032 = vmatprep.subr.msk.bf16.mxu0 %vm835_vm2, %v1196_v5  ;;  %v1207_v7 = vsel %vm835_vm2, %v1196_v5, 0 }
 0x5c4   : > { %5748 = vmatpush3.bf16.xpose.msra.mxu1 %v1017_v0  ;;  %5751 = vmatprep.mubr.msk.bf16.mxu1 %vm835_vm2, %v1003_v63 }
 0x5c5   : > { %6030 = vmatprep.subr.msk.bf16.mxu1 %vm835_vm2, %v1009_v52  ;;  %5766 = vmatpush3.bf16.xpose.msra.mxu0 %v1207_v7 }
 0x5c6   : > { %v1192_v10 = vpop.permute.xlu1 %1191 }
 0x5cc   : > { %5750 = vmatpush3.bf16.xpose.msra.mxu1 %v1020_v6  ;;  %5768 = vmatmul.mubr.msk.bf16.vlgmr.msra.gmra.mrb[12].mxu0 %vm835_vm2, %v1192_v10 }
 0x5d3   : > { %5752 = vmatmul.mubr.msk.bf16.vlgmr.msra.gmra.mrb[20].mxu1 %vm835_vm2, %v1005_v51 }
 0x696   : > { %v5745_v11 = vpop.f32.mrb[16].mxu1 }
 0x697   : > { %1001 = vst.msk [vmem:[#allocation2 + $0x10] sm:$0x1] %vm1000_vm7, %v5745_v11  ;;  %v984_v12 = vpop.f32.mrb[17].mxu1 }
 0x698   : > { %998 = vst.msk [vmem:[#allocation2] sm:$0xff] %vm835_vm2, %v984_v12  ;;  %v5746_v13 = vpop.f32.mrb[18].mxu1 }
 0x699   : > { %v987_v14 = vpop.f32.mrb[19].mxu1 }
 0x69a   : > { %999 = vst.msk [vmem:[#allocation2 + $0x8] sm:$0xff] %vm835_vm2, %v987_v14 }
 0x69f   : > { %v5769_v15 = vpop.f32.mrb[12].mxu0 }
 0x6a0   : > { %v1243_v16 = vpop.f32.mrb[13].mxu0  ;;  %v1259_v34 = vmul.f32 0.25, %v5769_v15 }
 0x6a1   : > { %v5770_v17 = vpop.f32.mrb[14].mxu0  ;;  %v1257_v37 = vmul.f32 0.25, %v1243_v16 }
 0x6a2   : > { %v1246_v18 = vpop.f32.mrb[15].mxu0  ;;  %v1266_v39 = vsel %vm906_vm6, %v1259_v34, -inf }
 0x6a3   : > { %v1258_v40 = vmul.f32 0.25, %v1246_v18  ;;  %v1260_v41 = vsel %vm899_vm5, %v1257_v37, -inf }
 0x6a5   : > { %v1263_v43 = vsel %vm899_vm5, %v1258_v40, -inf }
 0x6a6   : > { %v5753_v20 = vpop.f32.mrb[20].mxu1 }
 0x6a7   : > { %v1056_v21 = vpop.f32.mrb[21].mxu1  ;;  %v1072_v27 = vmul.f32 0.25, %v5753_v20 }
 0x6a8   : > { %v1070_v22 = vmul.f32 0.25, %v1056_v21  ;;  %v5754_v25 = vpop.f32.mrb[22].mxu1 }
 0x6a9   : > { %v1059_v26 = vpop.f32.mrb[23].mxu1  ;;  %v1079_v38 = vsel %vm906_vm6, %v1072_v27, -inf }
 0x6aa   : > { %v1071_v29 = vmul.f32 0.25, %v1059_v26  ;;  %v1073_v33 = vsel %vm899_vm5, %v1070_v22, -inf }
 0x6ab   : > { %1074 = vmax.xlane.f32.xlu0 %v1073_v33 }
 0x6ac   : > { %v1076_v36 = vsel %vm899_vm5, %v1071_v29, -inf }
 0x6ad   : > { %1077 = vmax.xlane.f32.xlu1 %v1076_v36 }
 0x6af   : > { %1080 = vmax.xlane.f32.xlu0 %v1079_v38 }
 0x6b1   : > { %1267 = vmax.xlane.f32.xlu1 %v1266_v39 }
 0x6b3   : > { %1261 = vmax.xlane.f32.xlu0 %v1260_v41 }
 0x6b7   : > { %1264 = vmax.xlane.f32.xlu0 %v1263_v43 }
 0x738   : > { %v1075_v45 = vpop.xlane.xlu0 %1074 }
 0x739   : > { %v1082_v63 = vsub.f32 %v1070_v22, %v1075_v45 }
 0x73a   : > { %v1078_v49 = vpop.xlane.xlu1 %1077 }
 0x73b   : > { %v1085_v2 = vmul.f32 1.442695, %v1082_v63  ;;  %v1083_v15 = vsub.f32 %v1071_v29, %v1078_v49 }
 0x73c   : > { %v1081_v50 = vpop.xlane.xlu0 %1080 }
 0x73d   : > { %v1084_v56 = vsub.f32 %v1072_v27, %v1081_v50  ;;  %v1087_v16 = vmul.f32 1.442695, %v1083_v15 }
 0x73e   : > { %v1268_v51 = vpop.xlane.xlu1 %1267 }
 0x73f   : > { %v1271_v52 = vsub.f32 %v1259_v34, %v1268_v51  ;;  %v1089_v58 = vmul.f32 1.442695, %v1084_v56 }
 0x740   : > { %v1262_v53 = vpop.xlane.xlu0 %1261 }
 0x741   : > { %v1269_v55 = vsub.f32 %v1257_v37, %v1262_v53  ;;  %v1276_v54 = vmul.f32 1.442695, %v1271_v52 }
 0x743   : > { %v1272_v57 = vmul.f32 1.442695, %v1269_v55 }
 0x744   : > { %v1265_v60 = vpop.xlane.xlu0 %1264 }
 0x745   : > { %6243 = vpow2.f32 %v1272_v57  ;;  %v1270_v61 = vsub.f32 %v1258_v40, %v1265_v60 }
 0x746   : > { %6245 = vpow2.f32 %v1276_v54 }
 0x747   : > { %v1274_v1 = vmul.f32 1.442695, %v1270_v61 }
 0x749   : > { %6247 = vpow2.f32 %v1274_v1 }
 0x74a   : > { %6249 = vpow2.f32 %v1089_v58 }
 0x74b   : > { %6251 = vpow2.f32 %v1085_v2  ;;  %v6974_v2 = vshrl.u32 %v6876_v62, 16 }
 0x74c   : > { %6253 = vpow2.f32 %v1087_v16 }
 0x74f   : > { %v6931_v3 = vpop.eup %6243 }
 0x750   : > { %v1278_v5 = vsel %vm899_vm5, %v6931_v3, 0.0  ;;  %v6935_v0 = vpop.eup %6245 }
 0x751   : > { %1279 = vadd.xlane.f32.xlu1 %v1278_v5  ;;  %v1284_v10 = vsel %vm906_vm6, %v6935_v0, 0.0  ;;  %v1702_v5 = vand.u32 %v6974_v2, %v6867_v48 }
 0x753   : > { %v6248_v7 = vpop.eup %6247 }
 0x754   : > { %v1281_v6 = vsel %vm899_vm5, %v6248_v7, 0.0  ;;  %v6250_v11 = vpop.eup %6249 }
 0x755   : > { %1285 = vadd.xlane.f32.xlu1 %v1284_v10  ;;  %1282 = vadd.xlane.f32.xlu0 %v1281_v6  ;;  %v1097_v12 = vsel %vm906_vm6, %v6250_v11, 0.0  ;;  %v6252_v13 = vpop.eup %6251 }
 0x756   : > { %v1091_v14 = vsel %vm899_vm5, %v6252_v13, 0.0  ;;  %v6254_v17 = vpop.eup %6253 }
 0x757   : > { %v1094_v18 = vsel %vm899_vm5, %v6254_v17, 0.0 }
 0x759   : > { %1098 = vadd.xlane.f32.xlu0 %v1097_v12 }
 0x75d   : > { %1092 = vadd.xlane.f32.xlu0 %v1091_v14 }
 0x766   : > { %1112 = vrot.lane.b32.xlu1 %v6863_v47, %s6564_s24 }
 0x76a   : > { %1295 = vrot.lane.b32.xlu1 %v6848_v24, %s8086_s23 }
 0x773   : > { %1110 = vrot.lane.b32.xlu0 %v6848_v24, %s6564_s24 }
 0x777   : > { %1378 = vrot.lane.b32.xlu0 %v6846_v23, %s8084_s26 }
 0x77b   : > { %1374 = vrot.lane.b32.xlu0 %v6846_v23, %s8082_s15 }
 0x78e   : > { %1095 = vadd.xlane.f32.xlu1 %v1094_v18 }
 0x79f   : > { %1297 = vrot.lane.b32.xlu1 %v6863_v47, %s8086_s23 }
 0x7a3   : > { %1380 = vrot.lane.b32.xlu1 %v6854_v31, %s8084_s26 }
 0x7a7   : > { %1376 = vrot.lane.b32.xlu1 %v6854_v31, %s8082_s15 }
 0x7de   : > { %v1280_v20 = vpop.xlane.xlu1 %1279 }
 0x7e2   : > { %v1283_v21 = vpop.xlane.xlu0 %1282  ;;  %v1286_v22 = vpop.xlane.xlu1 %1285 }
 0x7e3   : > { %6255 = vrcp.f32 %v1283_v21 }
 0x7e6   : > { %v1099_v25 = vpop.xlane.xlu0 %1098  ;;  %v1113_v26 = vpop.permute.xlu1 %1112 }
 0x7e7   : > { %v1122_v29 = vand.u32 %v1113_v26, %v6867_v48  ;;  %6257 = vrcp.f32 %v1099_v25 }
 0x7ea   : > { %v1093_v23 = vpop.xlane.xlu0 %1092  ;;  %v1296_v33 = vpop.permute.xlu1 %1295 }
 0x7eb   : > { %6259 = vrcp.f32 %v1093_v23 }
 0x7ec   : > { %6261 = vrcp.f32 %v1280_v20 }
 0x7ed   : > { %v6256_v34 = vpop.eup %6255 }
 0x7ee   : > { %v1111_v27 = vpop.permute.xlu0 %1110  ;;  %v1291_v45 = vmul.f32 %v6256_v34, %v6248_v7 }
 0x7ef   : > { %5755 = vmatprep.subr.bf16.mxu1 %v1111_v27 }
 0x7f0   : > { %5756 = vmatpush3.bf16.msra.mxu1 %v1111_v27 }
 0x7f1   : > { %5757 = vmatprep.subr.bf16.mxu1 %v1122_v29  ;;  %v6258_v36 = vpop.eup %6257 }
 0x7f2   : > { %v1105_v40 = vmul.f32 %v6258_v36, %v6250_v11  ;;  %v1379_v54 = vpop.permute.xlu0 %1378 }
 0x7f3   : > { %v1389_v63 = vsel %vm835_vm2, %v1379_v54, 0 }
 0x7f4   : > { %5758 = vmatpush3.bf16.msra.mxu1 %v1122_v29  ;;  %v1107_v52 = vpack.c.bf16 %v1105_v40, %v1105_v40 }
 0x7f5   : > { %5771 = vmatprep.subr.bf16.mxu1 %v1296_v33  ;;  %v6260_v37 = vpop.eup %6259 }
 0x7f6   : > { %v6262_v38 = vpop.eup %6261  ;;  %v1103_v41 = vmul.f32 %v6260_v37, %v6252_v13  ;;  %v1375_v61 = vpop.permute.xlu0 %1374 }
 0x7f7   : > { %v1290_v51 = vmul.f32 %v6262_v38, %v6931_v3 }
 0x7f9   : > { %v1293_v55 = vpack.c.bf16 %v1291_v45, %v1290_v51 }
 0x81b   : > { %v1096_v31 = vpop.xlane.xlu1 %1095 }
 0x81c   : > { %6263 = vrcp.f32 %v1096_v31 }
 0x81d   : > { %6265 = vrcp.f32 %v1286_v22 }
 0x81f   : > { %v1298_v49 = vpop.permute.xlu1 %1297 }
 0x820   : > { %v1307_v56 = vand.u32 %v1298_v49, %v6867_v48 }
 0x823   : > { %v1381_v58 = vpop.permute.xlu1 %1380 }
 0x824   : > { %v1392_v1 = vsel %vm835_vm2, %v1381_v58, 0 }
 0x826   : > { %v6264_v39 = vpop.eup %6263 }
 0x827   : > { %v1104_v43 = vmul.f32 %v6264_v39, %v6254_v17  ;;  %v6266_v53 = vpop.eup %6265  ;;  %v1377_v3 = vpop.permute.xlu1 %1376 }
 0x828   : > { %v1292_v57 = vmul.f32 %v6266_v53, %v6935_v0 }
 0x829   : > { %v1106_v50 = vpack.c.bf16 %v1104_v43, %v1103_v41 }
 0x82a   : > { %v1294_v60 = vpack.c.bf16 %v1292_v57, %v1292_v57 }
 0x82b   : > { %5759 = vmatprep.mubr.msk.bf16.mxu1 %vm899_vm5, %v1106_v50  ;;  %v7005_v50 = vshrl.u32 %v6874_v59, 16 }
 0x82c   : > { %5760 = vmatmul.mubr.msk.bf16.vlgmr.msra.gmra.mrb[24].mxu1 %vm899_vm5, %v1107_v52 }
 0x82d   : > { %5772 = vmatpush3.bf16.msra.mxu1 %v1296_v33  ;;  %5775 = vmatprep.mubr.msk.bf16.mxu1 %vm899_vm5, %v1293_v55 }
 0x82e   : > { %5773 = vmatprep.subr.bf16.mxu1 %v1307_v56 }
 0x831   : > { %5774 = vmatpush3.bf16.msra.mxu1 %v1307_v56 }
 0x832   : > { %6033 = vmatprep.subr.msk.bf16.mxu1 %vm835_vm2, %v1379_v54 }
 0x834   : > { %5776 = vmatmul.mubr.msk.bf16.vlgmr.msra.gmra.mrb[28].mxu1 %vm899_vm5, %v1294_v60 }
 0x835   : > { %5783 = vmatprep.mubr.msk.bf16.mxu1 %vm835_vm2, %v1375_v61 }
 0x83a   : > { %5780 = vmatpush3.bf16.xpose.msra.mxu1 %v1389_v63 }
 0x83b   : > { %6034 = vmatprep.subr.msk.bf16.mxu1 %vm835_vm2, %v1381_v58 }
 0x842   : > { %5782 = vmatpush3.bf16.xpose.msra.mxu1 %v1392_v1 }
 0x843   : > { %5803 = vmatprep.subr.bf16.mxu1 %v6884_v9 }
 0x849   : > { %5784 = vmatmul.mubr.msk.bf16.vlgmr.msra.gmra.mrb[32].mxu1 %vm835_vm2, %v1377_v3 }
 0x84a   : > { %5804 = vmatpush3.bf16.msra.mxu1 %v6884_v9 }
 0x84b   : > { %5805 = vmatprep.subr.bf16.mxu1 %v1702_v5 }
 0x84e   : > { %5806 = vmatpush3.bf16.msra.mxu1 %v1702_v5 }
 0x8ff   : > { %v6980_v0 = vpop.f32.mrb[24].mxu1 }
 0x900   : > { %v6982_v7 = vpop.f32.mrb[25].mxu1 }
 0x901   : > { %v5762_v10 = vpop.f32.mrb[26].mxu1 }
 0x902   : > { %v6984_v6 = vpop.f32.mrb[27].mxu1 }
 0x907   : > { %v6986_v11 = vpop.f32.mrb[28].mxu1 }
 0x908   : > { %v6988_v62 = vpop.f32.mrb[29].mxu1 }
 0x909   : > { %v5778_v12 = vpop.f32.mrb[30].mxu1 }
 0x90a   : > { %v6990_v13 = vpop.f32.mrb[31].mxu1 }
 0x91c   : > { %v5785_v14 = vpop.f32.mrb[32].mxu1 }
 0x91d   : > { %v1428_v15 = vpop.f32.mrb[33].mxu1  ;;  %v1444_v20 = vmul.f32 0.25, %v5785_v14 }
 0x91e   : > { %v1442_v16 = vmul.f32 0.25, %v1428_v15  ;;  %v5786_v17 = vpop.f32.mrb[34].mxu1 }
 0x91f   : > { %v1431_v18 = vpop.f32.mrb[35].mxu1  ;;  %v1451_v23 = vsel %vm906_vm6, %v1444_v20, -inf }
 0x920   : > { %v1443_v21 = vmul.f32 0.25, %v1431_v18  ;;  %v1445_v22 = vsel %vm899_vm5, %v1442_v16, -inf }
 0x921   : > { %1446 = vmax.xlane.f32.xlu0 %v1445_v22 }
 0x922   : > { %v1448_v25 = vsel %vm899_vm5, %v1443_v21, -inf }
 0x923   : > { %1449 = vmax.xlane.f32.xlu1 %v1448_v25 }
 0x925   : > { %1452 = vmax.xlane.f32.xlu0 %v1451_v23 }
 0x9ae   : > { %v1447_v26 = vpop.xlane.xlu0 %1446 }
 0x9af   : > { %v1454_v27 = vsub.f32 %v1442_v16, %v1447_v26 }
 0x9b0   : > { %v1450_v29 = vpop.xlane.xlu1 %1449 }
 0x9b1   : > { %v1457_v33 = vmul.f32 1.442695, %v1454_v27  ;;  %v1455_v31 = vsub.f32 %v1443_v21, %v1450_v29 }
 0x9b2   : > { %v1453_v34 = vpop.xlane.xlu0 %1452 }
 0x9b3   : > { %6267 = vpow2.f32 %v1457_v33  ;;  %v1459_v36 = vmul.f32 1.442695, %v1455_v31  ;;  %v1456_v37 = vsub.f32 %v1444_v20, %v1453_v34 }
 0x9b5   : > { %6269 = vpow2.f32 %v1459_v36  ;;  %v1461_v38 = vmul.f32 1.442695, %v1456_v37 }
 0x9b7   : > { %6271 = vpow2.f32 %v1461_v38 }
 0x9bd   : > { %v6268_v39 = vpop.eup %6267 }
 0x9be   : > { %v1463_v40 = vsel %vm899_vm5, %v6268_v39, 0.0 }
 0x9bf   : > { %v6270_v41 = vpop.eup %6269  ;;  %1464 = vadd.xlane.f32.xlu0 %v1463_v40 }
 0x9c0   : > { %v1466_v49 = vsel %vm899_vm5, %v6270_v41, 0.0 }
 0x9c1   : > { %v6272_v43 = vpop.eup %6271 }
 0x9c2   : > { %v1469_v45 = vsel %vm906_vm6, %v6272_v43, 0.0 }
 0x9c3   : > { %1470 = vadd.xlane.f32.xlu1 %v1469_v45  ;;  %1467 = vadd.xlane.f32.xlu0 %v1466_v49 }
 0x9d4   : > { %1482 = vrot.lane.b32.xlu1 %v6863_v47, %s8082_s15 }
 0x9d8   : > { %1576 = vrot.lane.b32.xlu1 %v6881_v8, %s6562_s30 }
 0x9d9   : > { %1480 = vrot.lane.b32.xlu0 %v6848_v24, %s8082_s15 }
 0x9dc   : > { %1578 = vrot.lane.b32.xlu1 %v7005_v50, %s6562_s30 }
 0xa4c   : > { %v1465_v51 = vpop.xlane.xlu0 %1464 }
 0xa4d   : > { %6273 = vrcp.f32 %v1465_v51 }
 0xa50   : > { %v1468_v52 = vpop.xlane.xlu0 %1467  ;;  %v1471_v53 = vpop.xlane.xlu1 %1470 }
 0xa51   : > { %6275 = vrcp.f32 %v1468_v52 }
 0xa52   : > { %6277 = vrcp.f32 %v1471_v53 }
 0xa54   : > { %v1481_v55 = vpop.permute.xlu0 %1480  ;;  %v1483_v47 = vpop.permute.xlu1 %1482 }
 0xa55   : > { %v1492_v56 = vand.u32 %v1483_v47, %v6867_v48  ;;  %5787 = vmatprep.subr.bf16.mxu0 %v1481_v55 }
 0xa56   : > { %5788 = vmatpush3.bf16.msra.mxu0 %v1481_v55 }
 0xa57   : > { %5789 = vmatprep.subr.bf16.mxu0 %v1492_v56  ;;  %v6274_v24 = vpop.eup %6273 }
 0xa58   : > { %v1577_v54 = vpop.permute.xlu1 %1576  ;;  %v1475_v60 = vmul.f32 %v6274_v24, %v6268_v39 }
 0xa59   : > { %v1587_v3 = vsel %vm835_vm2, %v1577_v54, 0 }
 0xa5a   : > { %5790 = vmatpush3.bf16.msra.mxu0 %v1492_v56 }
 0xa5b   : > { %v6276_v59 = vpop.eup %6275  ;;  %6035 = vmatprep.subr.msk.bf16.mxu0 %vm835_vm2, %v1577_v54 }
 0xa5c   : > { %v6278_v57 = vpop.eup %6277  ;;  %v1476_v61 = vmul.f32 %v6276_v59, %v6270_v41  ;;  %v1579_v5 = vpop.permute.xlu1 %1578 }
 0xa5d   : > { %v1477_v63 = vmul.f32 %v6278_v57, %v6272_v43  ;;  %v1590_v10 = vsel %vm835_vm2, %v1579_v5, 0 }
 0xa5e   : > { %v1478_v58 = vpack.c.bf16 %v1476_v61, %v1475_v60 }
 0xa5f   : > { %v1479_v1 = vpack.c.bf16 %v1477_v63, %v1477_v63 }
 0xa60   : > { %5791 = vmatprep.mubr.msk.bf16.mxu0 %vm899_vm5, %v1478_v58 }
 0xa61   : > { %5792 = vmatmul.mubr.msk.bf16.vlgmr.msra.gmra.mrb[16].mxu0 %vm899_vm5, %v1479_v1 }
 0xa62   : > { %5799 = vmatprep.mubr.msk.bf16.mxu0 %vm835_vm2, %v6881_v8 }
 0xa63   : > { %5796 = vmatpush3.bf16.xpose.msra.mxu0 %v1587_v3 }
 0xa64   : > { %6036 = vmatprep.subr.msk.bf16.mxu0 %vm835_vm2, %v1579_v5 }
 0xa6b   : > { %5798 = vmatpush3.bf16.xpose.msra.mxu0 %v1590_v10 }
 0xa72   : > { %5800 = vmatmul.mubr.msk.bf16.vlgmr.msra.gmra.mrb[20].mxu0 %vm835_vm2, %v7005_v50 }
 0xb34   : > { %v7020_v12 = vpop.f32.mrb[16].mxu0 }
 0xb35   : > { %v7022_v14 = vpop.f32.mrb[17].mxu0 }
 0xb36   : > { %v5794_v15 = vpop.f32.mrb[18].mxu0 }
 0xb37   : > { %v7024_v16 = vpop.f32.mrb[19].mxu0 }
 0xb45   : > { %v5801_v17 = vpop.f32.mrb[20].mxu0 }
 0xb46   : > { %v1626_v18 = vpop.f32.mrb[21].mxu0  ;;  %v1642_v25 = vmul.f32 0.25, %v5801_v17 }
 0xb47   : > { %v1640_v20 = vmul.f32 0.25, %v1626_v18  ;;  %v5802_v21 = vpop.f32.mrb[22].mxu0 }
 0xb48   : > { %v1629_v22 = vpop.f32.mrb[23].mxu0  ;;  %v1649_v29 = vsel %vm906_vm6, %v1642_v25, -inf }
 0xb49   : > { %v1641_v23 = vmul.f32 0.25, %v1629_v22  ;;  %v1643_v26 = vsel %vm899_vm5, %v1640_v20, -inf }
 0xb4a   : > { %1644 = vmax.xlane.f32.xlu0 %v1643_v26 }
 0xb4b   : > { %v1646_v27 = vsel %vm899_vm5, %v1641_v23, -inf }
 0xb4c   : > { %1647 = vmax.xlane.f32.xlu1 %v1646_v27 }
 0xb4e   : > { %1650 = vmax.xlane.f32.xlu0 %v1649_v29 }
 0xbd7   : > { %v1645_v33 = vpop.xlane.xlu0 %1644 }
 0xbd8   : > { %v1652_v31 = vsub.f32 %v1640_v20, %v1645_v33 }
 0xbd9   : > { %v1648_v34 = vpop.xlane.xlu1 %1647 }
 0xbda   : > { %v1655_v36 = vmul.f32 1.442695, %v1652_v31  ;;  %v1653_v37 = vsub.f32 %v1641_v23, %v1648_v34 }
 0xbdb   : > { %v1651_v38 = vpop.xlane.xlu0 %1650 }
 0xbdc   : > { %6279 = vpow2.f32 %v1655_v36  ;;  %v1657_v39 = vmul.f32 1.442695, %v1653_v37  ;;  %v1654_v40 = vsub.f32 %v1642_v25, %v1651_v38 }
 0xbde   : > { %6281 = vpow2.f32 %v1657_v39  ;;  %v1659_v41 = vmul.f32 1.442695, %v1654_v40 }
 0xbe0   : > { %6283 = vpow2.f32 %v1659_v41 }
 0xbe6   : > { %v6280_v43 = vpop.eup %6279 }
 0xbe7   : > { %v1661_v45 = vsel %vm899_vm5, %v6280_v43, 0.0 }
 0xbe8   : > { %v6282_v49 = vpop.eup %6281  ;;  %1662 = vadd.xlane.f32.xlu0 %v1661_v45 }
 0xbe9   : > { %v1664_v53 = vsel %vm899_vm5, %v6282_v49, 0.0 }
 0xbea   : > { %v6284_v51 = vpop.eup %6283 }
 0xbeb   : > { %v1667_v52 = vsel %vm906_vm6, %v6284_v51, 0.0 }
 0xbec   : > { %1668 = vadd.xlane.f32.xlu1 %v1667_v52  ;;  %1665 = vadd.xlane.f32.xlu0 %v1664_v53 }
 0xbfd   : > { %1761 = vrot.lane.b32.xlu1 %v7005_v50, %s6563_s22 }
 0xc01   : > { %1755 = vrot.lane.b32.xlu1 %v6881_v8, %s6564_s24 }
 0xc02   : > { %1759 = vrot.lane.b32.xlu0 %v6881_v8, %s6563_s22 }
 0xc05   : > { %1757 = vrot.lane.b32.xlu1 %v7005_v50, %s6564_s24 }
 0xc75   : > { %v1663_v55 = vpop.xlane.xlu0 %1662 }
 0xc76   : > { %6285 = vrcp.f32 %v1663_v55 }
 0xc79   : > { %v1666_v47 = vpop.xlane.xlu0 %1665  ;;  %v1669_v56 = vpop.xlane.xlu1 %1668 }
 0xc7a   : > { %6287 = vrcp.f32 %v1666_v47 }
 0xc7b   : > { %6289 = vrcp.f32 %v1669_v56 }
 0xc7d   : > { %v1760_v24 = vpop.permute.xlu0 %1759  ;;  %v1762_v57 = vpop.permute.xlu1 %1761 }
 0xc7e   : > { %6037 = vmatprep.subr.msk.bf16.mxu1 %vm835_vm2, %v1760_v24  ;;  %v1770_v10 = vsel %vm835_vm2, %v1760_v24, 0  ;;  %v1773_v15 = vsel %vm835_vm2, %v1762_v57, 0 }
 0xc80   : > { %v6286_v54 = vpop.eup %6285 }
 0xc81   : > { %v1673_v61 = vmul.f32 %v6286_v54, %v6280_v43  ;;  %v1756_v5 = vpop.permute.xlu1 %1755 }
 0xc84   : > { %v6288_v59 = vpop.eup %6287 }
 0xc85   : > { %v6290_v60 = vpop.eup %6289  ;;  %v1674_v63 = vmul.f32 %v6288_v59, %v6282_v49  ;;  %v1758_v17 = vpop.permute.xlu1 %1757 }
 0xc86   : > { %v1675_v58 = vmul.f32 %v6290_v60, %v6284_v51 }
 0xc87   : > { %v1676_v1 = vpack.c.bf16 %v1674_v63, %v1673_v61 }
 0xc88   : > { %v1677_v3 = vpack.c.bf16 %v1675_v58, %v1675_v58 }
 0xc89   : > { %5807 = vmatprep.mubr.msk.bf16.mxu1 %vm899_vm5, %v1676_v1 }
 0xc8a   : > { %5808 = vmatmul.mubr.msk.bf16.vlgmr.msra.gmra.mrb[36].mxu1 %vm899_vm5, %v1677_v3 }
 0xc8b   : > { %5812 = vmatpush3.bf16.xpose.msra.mxu1 %v1770_v10  ;;  %5815 = vmatprep.mubr.msk.bf16.mxu1 %vm835_vm2, %v1756_v5 }
 0xc8c   : > { %6038 = vmatprep.subr.msk.bf16.mxu1 %vm835_vm2, %v1762_v57 }
 0xc93   : > { %5814 = vmatpush3.bf16.xpose.msra.mxu1 %v1773_v15 }
 0xc9a   : > { %5816 = vmatmul.mubr.msk.bf16.vlgmr.msra.gmra.mrb[40].mxu1 %vm835_vm2, %v1758_v17 }
 0xd5d   : > { %v5809_v18 = vpop.f32.mrb[36].mxu1 }
 0xd5e   : > { %1754 = vst.msk [vmem:[#allocation2 + $0x21] sm:$0x1] %vm1000_vm7, %v5809_v18  ;;  %v1738_v20 = vpop.f32.mrb[37].mxu1 }
 0xd5f   : > { %1752 = vst.msk [vmem:[#allocation2 + $0x11] sm:$0xff] %vm835_vm2, %v1738_v20  ;;  %v5810_v21 = vpop.f32.mrb[38].mxu1 }
 0xd60   : > { %v1741_v22 = vpop.f32.mrb[39].mxu1 }
 0xd61   : > { %1753 = vst.msk [vmem:[#allocation2 + $0x19] sm:$0xff] %vm835_vm2, %v1741_v22 }
 0xd6d   : > { %v5817_v25 = vpop.f32.mrb[40].mxu1 }
 0xd6e   : > { %v1809_v23 = vpop.f32.mrb[41].mxu1  ;;  %v1825_v33 = vmul.f32 0.25, %v5817_v25 }
 0xd6f   : > { %v1823_v26 = vmul.f32 0.25, %v1809_v23  ;;  %v5818_v27 = vpop.f32.mrb[42].mxu1 }
 0xd70   : > { %v1812_v29 = vpop.f32.mrb[43].mxu1  ;;  %v1832_v37 = vsel %vm906_vm6, %v1825_v33, -inf }
 0xd71   : > { %v1824_v31 = vmul.f32 0.25, %v1812_v29  ;;  %v1826_v34 = vsel %vm899_vm5, %v1823_v26, -inf }
 0xd72   : > { %1827 = vmax.xlane.f32.xlu0 %v1826_v34 }
 0xd73   : > { %v1829_v36 = vsel %vm899_vm5, %v1824_v31, -inf }
 0xd74   : > { %1830 = vmax.xlane.f32.xlu1 %v1829_v36 }
 0xd76   : > { %1833 = vmax.xlane.f32.xlu0 %v1832_v37 }
 0xdff   : > { %v1828_v38 = vpop.xlane.xlu0 %1827 }
 0xe00   : > { %v1835_v39 = vsub.f32 %v1823_v26, %v1828_v38 }
 0xe01   : > { %v1831_v40 = vpop.xlane.xlu1 %1830 }
 0xe02   : > { %v1838_v41 = vmul.f32 1.442695, %v1835_v39  ;;  %v1836_v43 = vsub.f32 %v1824_v31, %v1831_v40 }
 0xe03   : > { %v1834_v45 = vpop.xlane.xlu0 %1833 }
 0xe04   : > { %6291 = vpow2.f32 %v1838_v41  ;;  %v1840_v49 = vmul.f32 1.442695, %v1836_v43  ;;  %v1837_v51 = vsub.f32 %v1825_v33, %v1834_v45 }
 0xe06   : > { %6293 = vpow2.f32 %v1840_v49  ;;  %v1842_v52 = vmul.f32 1.442695, %v1837_v51 }
 0xe08   : > { %6295 = vpow2.f32 %v1842_v52 }
 0xe0e   : > { %v6292_v53 = vpop.eup %6291 }
 0xe0f   : > { %v1844_v55 = vsel %vm899_vm5, %v6292_v53, 0.0 }
 0xe10   : > { %v6294_v47 = vpop.eup %6293  ;;  %1845 = vadd.xlane.f32.xlu0 %v1844_v55 }
 0xe11   : > { %v1847_v54 = vsel %vm899_vm5, %v6294_v47, 0.0 }
 0xe12   : > { %v6296_v56 = vpop.eup %6295 }
 0xe13   : > { %v1850_v24 = vsel %vm906_vm6, %v6296_v56, 0.0 }
 0xe14   : > { %1851 = vadd.xlane.f32.xlu1 %v1850_v24  ;;  %1848 = vadd.xlane.f32.xlu0 %v1847_v54 }
 0xe25   : > { %1863 = vrot.lane.b32.xlu1 %v6974_v2, %s6564_s24 }
 0xe29   : > { %1942 = vrot.lane.b32.xlu1 %v6881_v8, %s8088_s19 }
 0xe2a   : > { %1861 = vrot.lane.b32.xlu0 %v6884_v9, %s6564_s24 }
 0xe2d   : > { %1944 = vrot.lane.b32.xlu1 %v7005_v50, %s8088_s19 }
 0xe2e   : > { %1938 = vrot.lane.b32.xlu0 %v6881_v8, %s8086_s23 }
 0xe31   : > { %1940 = vrot.lane.b32.xlu1 %v7005_v50, %s8086_s23 }
 0xe9d   : > { %v1846_v59 = vpop.xlane.xlu0 %1845 }
 0xe9e   : > { %6297 = vrcp.f32 %v1846_v59 }
 0xea1   : > { %v1849_v57 = vpop.xlane.xlu0 %1848  ;;  %v1852_v60 = vpop.xlane.xlu1 %1851 }
 0xea2   : > { %6299 = vrcp.f32 %v1849_v57 }
 0xea3   : > { %6301 = vrcp.f32 %v1852_v60 }
 0xea5   : > { %v1862_v61 = vpop.permute.xlu0 %1861  ;;  %v1864_v63 = vpop.permute.xlu1 %1863 }
 0xea6   : > { %v1873_v58 = vand.u32 %v1864_v63, %v6867_v48  ;;  %5819 = vmatprep.subr.bf16.mxu0 %v1862_v61 }
 0xea7   : > { %5820 = vmatpush3.bf16.msra.mxu0 %v1862_v61 }
 0xea8   : > { %5821 = vmatprep.subr.bf16.mxu0 %v1873_v58  ;;  %v6298_v1 = vpop.eup %6297 }
 0xea9   : > { %v1943_v3 = vpop.permute.xlu1 %1942  ;;  %v1856_v15 = vmul.f32 %v6298_v1, %v6292_v53  ;;  %v1939_v22 = vpop.permute.xlu0 %1938 }
 0xeaa   : > { %v1953_v25 = vsel %vm835_vm2, %v1943_v3, 0 }
 0xeab   : > { %5822 = vmatpush3.bf16.msra.mxu0 %v1873_v58 }
 0xeac   : > { %v6300_v5 = vpop.eup %6299  ;;  %6039 = vmatprep.subr.msk.bf16.mxu0 %vm835_vm2, %v1943_v3 }
 0xead   : > { %v6302_v10 = vpop.eup %6301  ;;  %v1857_v17 = vmul.f32 %v6300_v5, %v6294_v47  ;;  %v1945_v23 = vpop.permute.xlu1 %1944 }
 0xeae   : > { %v1858_v18 = vmul.f32 %v6302_v10, %v6296_v56  ;;  %v1956_v26 = vsel %vm835_vm2, %v1945_v23, 0 }
 0xeaf   : > { %v1859_v20 = vpack.c.bf16 %v1857_v17, %v1856_v15 }
 0xeb0   : > { %v1860_v21 = vpack.c.bf16 %v1858_v18, %v1858_v18 }
 0xeb1   : > { %5823 = vmatprep.mubr.msk.bf16.mxu0 %vm899_vm5, %v1859_v20  ;;  %v1941_v27 = vpop.permute.xlu1 %1940 }
 0xeb2   : > { %5824 = vmatmul.mubr.msk.bf16.vlgmr.msra.gmra.mrb[24].mxu0 %vm899_vm5, %v1860_v21 }
 0xeb3   : > { %5831 = vmatprep.mubr.msk.bf16.mxu0 %vm835_vm2, %v1939_v22 }
 0xeb4   : > { %5828 = vmatpush3.bf16.xpose.msra.mxu0 %v1953_v25 }
 0xeb5   : > { %6040 = vmatprep.subr.msk.bf16.mxu0 %vm835_vm2, %v1945_v23 }
 0xebc   : > { %5830 = vmatpush3.bf16.xpose.msra.mxu0 %v1956_v26 }
 0xec3   : > { %5832 = vmatmul.mubr.msk.bf16.vlgmr.msra.gmra.mrb[28].mxu0 %vm835_vm2, %v1941_v27 }
 0xf85   : > { %v7078_v29 = vpop.f32.mrb[24].mxu0 }
 0xf86   : > { %v7080_v33 = vpop.f32.mrb[25].mxu0 }
 0xf87   : > { %v5826_v31 = vpop.f32.mrb[26].mxu0 }
 0xf88   : > { %v7082_v34 = vpop.f32.mrb[27].mxu0 }
 0xf96   : > { %v5833_v36 = vpop.f32.mrb[28].mxu0 }
 0xf97   : > { %v1992_v37 = vpop.f32.mrb[29].mxu0  ;;  %v2008_v41 = vmul.f32 0.25, %v5833_v36 }
 0xf98   : > { %v2006_v38 = vmul.f32 0.25, %v1992_v37  ;;  %v5834_v39 = vpop.f32.mrb[30].mxu0 }
 0xf99   : > { %v1995_v40 = vpop.f32.mrb[31].mxu0  ;;  %v2015_v51 = vsel %vm906_vm6, %v2008_v41, -inf }
 0xf9a   : > { %v2007_v43 = vmul.f32 0.25, %v1995_v40  ;;  %v2009_v45 = vsel %vm899_vm5, %v2006_v38, -inf }
 0xf9b   : > { %2010 = vmax.xlane.f32.xlu0 %v2009_v45 }
 0xf9c   : > { %v2012_v49 = vsel %vm899_vm5, %v2007_v43, -inf }
 0xf9d   : > { %2013 = vmax.xlane.f32.xlu1 %v2012_v49 }
 0xf9f   : > { %2016 = vmax.xlane.f32.xlu0 %v2015_v51 }
0x1028   : > { %v2011_v52 = vpop.xlane.xlu0 %2010 }
0x1029   : > { %v2018_v53 = vsub.f32 %v2006_v38, %v2011_v52 }
0x102a   : > { %v2014_v55 = vpop.xlane.xlu1 %2013 }
0x102b   : > { %v2021_v47 = vmul.f32 1.442695, %v2018_v53  ;;  %v2019_v56 = vsub.f32 %v2007_v43, %v2014_v55 }
0x102c   : > { %v2017_v24 = vpop.xlane.xlu0 %2016 }
0x102d   : > { %6303 = vpow2.f32 %v2021_v47  ;;  %v2023_v54 = vmul.f32 1.442695, %v2019_v56  ;;  %v2020_v59 = vsub.f32 %v2008_v41, %v2017_v24 }
0x102f   : > { %6305 = vpow2.f32 %v2023_v54  ;;  %v2025_v57 = vmul.f32 1.442695, %v2020_v59 }
0x1031   : > { %6307 = vpow2.f32 %v2025_v57 }
0x1037   : > { %v6304_v60 = vpop.eup %6303 }
0x1038   : > { %v2027_v61 = vsel %vm899_vm5, %v6304_v60, 0.0 }
0x1039   : > { %v6306_v63 = vpop.eup %6305  ;;  %2028 = vadd.xlane.f32.xlu0 %v2027_v61 }
0x103a   : > { %v2030_v3 = vsel %vm899_vm5, %v6306_v63, 0.0 }
0x103b   : > { %v6308_v58 = vpop.eup %6307 }
0x103c   : > { %v2033_v1 = vsel %vm906_vm6, %v6308_v58, 0.0 }
0x103d   : > { %2034 = vadd.xlane.f32.xlu1 %v2033_v1  ;;  %2031 = vadd.xlane.f32.xlu0 %v2030_v3 }
0x104e   : > { %2046 = vrot.lane.b32.xlu1 %v6974_v2, %s8086_s23 }
0x1052   : > { %2125 = vrot.lane.b32.xlu1 %v6881_v8, %s8084_s26 }
0x1053   : > { %2044 = vrot.lane.b32.xlu0 %v6884_v9, %s8086_s23 }
0x1056   : > { %2127 = vrot.lane.b32.xlu1 %v7005_v50, %s8084_s26 }
0x1057   : > { %2121 = vrot.lane.b32.xlu0 %v6881_v8, %s8082_s15 }
0x105a   : > { %2123 = vrot.lane.b32.xlu1 %v7005_v50, %s8082_s15 }
0x10c6   : > { %v2029_v5 = vpop.xlane.xlu0 %2028 }
0x10c7   : > { %6309 = vrcp.f32 %v2029_v5 }
0x10ca   : > { %v2032_v10 = vpop.xlane.xlu0 %2031  ;;  %v2035_v15 = vpop.xlane.xlu1 %2034 }
0x10cb   : > { %6311 = vrcp.f32 %v2032_v10 }
0x10cc   : > { %6313 = vrcp.f32 %v2035_v15 }
0x10ce   : > { %v2045_v17 = vpop.permute.xlu0 %2044  ;;  %v2047_v18 = vpop.permute.xlu1 %2046 }
0x10cf   : > { %v2056_v20 = vand.u32 %v2047_v18, %v6867_v48  ;;  %5835 = vmatprep.subr.bf16.mxu1 %v2045_v17 }
0x10d0   : > { %5836 = vmatpush3.bf16.msra.mxu1 %v2045_v17 }
0x10d1   : > { %5837 = vmatprep.subr.bf16.mxu1 %v2056_v20  ;;  %v6310_v21 = vpop.eup %6309 }
0x10d2   : > { %v2126_v22 = vpop.permute.xlu1 %2125  ;;  %v2039_v25 = vmul.f32 %v6310_v21, %v6304_v60  ;;  %v2122_v36 = vpop.permute.xlu0 %2121 }
0x10d3   : > { %v2136_v37 = vsel %vm835_vm2, %v2126_v22, 0 }
0x10d4   : > { %5838 = vmatpush3.bf16.msra.mxu1 %v2056_v20 }
0x10d5   : > { %v6312_v8 = vpop.eup %6311  ;;  %6041 = vmatprep.subr.msk.bf16.mxu1 %vm835_vm2, %v2126_v22 }
0x10d6   : > { %v6314_v50 = vpop.eup %6313  ;;  %v2040_v23 = vmul.f32 %v6312_v8, %v6306_v63  ;;  %v2128_v38 = vpop.permute.xlu1 %2127 }
0x10d7   : > { %v2041_v26 = vmul.f32 %v6314_v50, %v6308_v58  ;;  %v2139_v39 = vsel %vm835_vm2, %v2128_v38, 0 }
0x10d8   : > { %v2042_v27 = vpack.c.bf16 %v2040_v23, %v2039_v25 }
0x10d9   : > { %v2043_v31 = vpack.c.bf16 %v2041_v26, %v2041_v26 }
0x10da   : > { %5839 = vmatprep.mubr.msk.bf16.mxu1 %vm899_vm5, %v2042_v27  ;;  %v2124_v40 = vpop.permute.xlu1 %2123 }
0x10db   : > { %5840 = vmatmul.mubr.msk.bf16.vlgmr.msra.gmra.mrb[44].mxu1 %vm899_vm5, %v2043_v31  ;;  %v6145_v31 = vld [vmem:[%s8072_s5] sm:$0xff]  }
0x10dc   : > { %5847 = vmatprep.mubr.msk.bf16.mxu1 %vm835_vm2, %v2122_v36 }
0x10dd   : > { %5844 = vmatpush3.bf16.xpose.msra.mxu1 %v2136_v37 }
0x10de   : > { %6042 = vmatprep.subr.msk.bf16.mxu1 %vm835_vm2, %v2128_v38 }
0x10e5   : > { %5846 = vmatpush3.bf16.xpose.msra.mxu1 %v2139_v39  ;;  %v6146_v39 = vld [vmem:[%s8072_s5 + $0x8] sm:$0xff]  }
0x10ec   : > { %5848 = vmatmul.mubr.msk.bf16.vlgmr.msra.gmra.mrb[48].mxu1 %vm835_vm2, %v2124_v40 }
0x10ed   : > { %2605 = vmatprep.mubr.bf16.mxu1 %v6561_v19 }
0x11ae   : > { %v7112_v41 = vpop.f32.mrb[44].mxu1 }
0x11af   : > { %v2092_v43 = vpop.f32.mrb[45].mxu1 }
0x11b0   : > { %v5842_v45 = vpop.f32.mrb[46].mxu1 }
0x11b1   : > { %v2095_v49 = vpop.f32.mrb[47].mxu1  ;;  %v6147_v45 = vld [vmem:[%s8072_s5 + $0x10] sm:$0xff]  }
0x11bf   : > { %v5849_v51 = vpop.f32.mrb[48].mxu1 }
0x11c0   : > { %v2175_v52 = vpop.f32.mrb[49].mxu1  ;;  %v2191_v56 = vmul.f32 0.25, %v5849_v51 }
0x11c1   : > { %v2189_v53 = vmul.f32 0.25, %v2175_v52  ;;  %v5850_v55 = vpop.f32.mrb[50].mxu1  ;;  %v6148_v52 = vld [vmem:[%s8072_s5 + $0x18] sm:$0xff]  }
0x11c2   : > { %v2178_v47 = vpop.f32.mrb[51].mxu1  ;;  %v2198_v57 = vsel %vm906_vm6, %v2191_v56, -inf }
0x11c3   : > { %v2190_v24 = vmul.f32 0.25, %v2178_v47  ;;  %v2192_v54 = vsel %vm899_vm5, %v2189_v53, -inf }
0x11c4   : > { %2193 = vmax.xlane.f32.xlu0 %v2192_v54 }
0x11c5   : > { %v2195_v59 = vsel %vm899_vm5, %v2190_v24, -inf }
0x11c6   : > { %2196 = vmax.xlane.f32.xlu1 %v2195_v59 }
0x11c8   : > { %2199 = vmax.xlane.f32.xlu0 %v2198_v57 }
0x1251   : > { %v2194_v60 = vpop.xlane.xlu0 %2193 }
0x1252   : > { %v2201_v61 = vsub.f32 %v2189_v53, %v2194_v60 }
0x1253   : > { %v2197_v63 = vpop.xlane.xlu1 %2196 }
0x1254   : > { %v2204_v58 = vmul.f32 1.442695, %v2201_v61  ;;  %v2202_v1 = vsub.f32 %v2190_v24, %v2197_v63 }
0x1255   : > { %v2200_v3 = vpop.xlane.xlu0 %2199 }
0x1256   : > { %6315 = vpow2.f32 %v2204_v58  ;;  %v2206_v5 = vmul.f32 1.442695, %v2202_v1  ;;  %v2203_v10 = vsub.f32 %v2191_v56, %v2200_v3 }
0x1258   : > { %6317 = vpow2.f32 %v2206_v5  ;;  %v2208_v15 = vmul.f32 1.442695, %v2203_v10  ;;  %v2322_v5 = vsub.s32 2, %v6817_v28  ;;  %v7191_v10 = vld [vmem:[%s8076_s9] sm:$0x3f] }
0x125a   : > { %6319 = vpow2.f32 %v2208_v15  ;;  %v7196_v15 = vrot.slane %v7191_v10, %v2322_v5 }
0x1260   : > { %v6316_v17 = vpop.eup %6315 }
0x1261   : > { %v2210_v18 = vsel %vm899_vm5, %v6316_v17, 0.0 }
0x1262   : > { %v6318_v20 = vpop.eup %6317  ;;  %2211 = vadd.xlane.f32.xlu0 %v2210_v18 }
0x1263   : > { %v2213_v8 = vsel %vm899_vm5, %v6318_v20, 0.0 }
0x1264   : > { %v6320_v21 = vpop.eup %6319 }
0x1265   : > { %v2216_v22 = vsel %vm906_vm6, %v6320_v21, 0.0 }
0x1266   : > { %2217 = vadd.xlane.f32.xlu1 %v2216_v22  ;;  %2214 = vadd.xlane.f32.xlu0 %v2213_v8 }
0x1277   : > { %2229 = vrot.lane.b32.xlu1 %v6974_v2, %s8082_s15 }
0x127b   : > { %1175 = vrot.lane.b32.xlu1 %v6982_v7, %s8084_s26 }
0x127c   : > { %2227 = vrot.lane.b32.xlu0 %v6884_v9, %s8082_s15 }
0x127f   : > { %1177 = vrot.lane.b32.xlu1 %v6984_v6, %s8084_s26 }
0x1280   : > { %1360 = vrot.lane.b32.xlu0 %v6988_v62, %s8088_s19 }
0x1283   : > { %1362 = vrot.lane.b32.xlu1 %v6990_v13, %s8088_s19 }
0x1284   : > { %1545 = vrot.lane.b32.xlu0 %v7022_v14, %s6563_s22 }
0x1287   : > { %1547 = vrot.lane.b32.xlu1 %v7024_v16, %s6563_s22  ;;  %v6569_v16 = vmov 0.0  }
0x1288   : > { %1179 = vrot.lane.b32.xlu0 %v6980_v0, %s8084_s26 }
0x128b   : > { %1926 = vrot.lane.b32.xlu1 %v7080_v33, %s8084_s26 }
0x128c   : > { %1928 = vrot.lane.b32.xlu0 %v7082_v34, %s8084_s26 }
0x128f   : > { %1364 = vrot.lane.b32.xlu1 %v6986_v11, %s8088_s19 }
0x1290   : > { %2109 = vrot.lane.b32.xlu0 %v2092_v43, %s8088_s19 }
0x1293   : > { %2111 = vrot.lane.b32.xlu1 %v2095_v49, %s8088_s19 }
0x1294   : > { %1549 = vrot.lane.b32.xlu0 %v7020_v12, %s6563_s22 }
0x12ef   : > { %v2212_v9 = vpop.xlane.xlu0 %2211 }
0x12f0   : > { %6321 = vrcp.f32 %v2212_v9 }
0x12f3   : > { %v2215_v2 = vpop.xlane.xlu0 %2214  ;;  %v2218_v0 = vpop.xlane.xlu1 %2217 }
0x12f4   : > { %6323 = vrcp.f32 %v2215_v2 }
0x12f5   : > { %6325 = vrcp.f32 %v2218_v0 }
0x12f7   : > { %v2228_v7 = vpop.permute.xlu0 %2227  ;;  %v2230_v6 = vpop.permute.xlu1 %2229 }
0x12f8   : > { %v2239_v62 = vand.u32 %v2230_v6, %v6867_v48  ;;  %5851 = vmatprep.subr.bf16.mxu0 %v2228_v7 }
0x12f9   : > { %5852 = vmatpush3.bf16.msra.mxu0 %v2228_v7 }
0x12fa   : > { %5853 = vmatprep.subr.bf16.mxu0 %v2239_v62  ;;  %v6322_v14 = vpop.eup %6321 }
0x12fb   : > { %v1361_v11 = vpop.permute.xlu0 %1360  ;;  %v1176_v13 = vpop.permute.xlu1 %1175  ;;  %v2222_v25 = vmul.f32 %v6322_v14, %v6316_v17 }
0x12fc   : > { %1185 = vst.msk [vmem:[#allocation2] sm:$0xff] %vm1184_vm8, %v1176_v13 }
0x12fd   : > { %5854 = vmatpush3.bf16.msra.mxu0 %v2239_v62  ;;  %1370 = vst.msk [vmem:[#allocation2] sm:$0xff] %vm1369_vm9, %v1361_v11 }
0x12fe   : > { %v6324_v12 = vpop.eup %6323  ;;  %5859 = vmatprep.subr.bf16.mxu0 %v6569_v16 }
0x12ff   : > { %v6326_v33 = vpop.eup %6325  ;;  %v1546_v34 = vpop.permute.xlu0 %1545  ;;  %v2223_v23 = vmul.f32 %v6324_v12, %v6318_v20 }
0x1300   : > { %v1178_v50 = vpop.permute.xlu1 %1177  ;;  %1555 = vst.msk [vmem:[#allocation2] sm:$0xff] %vm1554_vm10, %v1546_v34  ;;  %v2224_v26 = vmul.f32 %v6326_v33, %v6320_v21 }
0x1301   : > { %1186 = vst.msk [vmem:[#allocation2 + $0x8] sm:$0xff] %vm1184_vm8, %v1178_v50  ;;  %v2225_v27 = vpack.c.bf16 %v2223_v23, %v2222_v25 }
0x1302   : > { %v2226_v36 = vpack.c.bf16 %v2224_v26, %v2224_v26 }
0x1303   : > { %5855 = vmatprep.mubr.msk.bf16.mxu0 %vm899_vm5, %v2225_v27  ;;  %v1180_v37 = vpop.permute.xlu0 %1179 }
0x1304   : > { %v1363_v38 = vpop.permute.xlu1 %1362  ;;  %1188 = vst.msk [vmem:[#allocation2 + $0x10] sm:$0x1] %vm1187_vm11, %v1180_v37  ;;  %5856 = vmatmul.mubr.msk.bf16.vlgmr.msra.gmra.mrb[32].mxu0 %vm899_vm5, %v2226_v36 }
0x1305   : > { %1371 = vst.msk [vmem:[#allocation2 + $0x8] sm:$0xff] %vm1369_vm9, %v1363_v38  ;;  %5860 = vmatpush3.bf16.msra.mxu0 %v6145_v31  ;;  %5867 = vmatprep.mubr.msk.bf16.mxu0 %vm6570_vm12, %v6569_v16 }
0x1306   : > { %5861 = vmatprep.subr.bf16.mxu0 %v6569_v16 }
0x1307   : > { %v1929_v40 = vpop.permute.xlu0 %1928  ;;  %v2304_v47 = vld [vmem:[#allocation2] sm:$0xff] }
0x1308   : > { %v1548_v43 = vpop.permute.xlu1 %1547  ;;  %1936 = vst.msk [vmem:[#allocation2 + $0x19] sm:$0xff] %vm1184_vm8, %v1929_v40 }
0x1309   : > { %1556 = vst.msk [vmem:[#allocation2 + $0x8] sm:$0xff] %vm1554_vm10, %v1548_v43  ;;  %5862 = vmatpush3.bf16.msra.mxu0 %v6146_v39 }
0x130a   : > { %5863 = vmatprep.subr.bf16.mxu0 %v6569_v16 }
0x130b   : > { %v2110_v49 = vpop.permute.xlu0 %2109 }
0x130c   : > { %v1927_v51 = vpop.permute.xlu1 %1926 }
0x130d   : > { %1935 = vst.msk [vmem:[#allocation2 + $0x11] sm:$0xff] %vm1184_vm8, %v1927_v51  ;;  %5864 = vmatpush3.bf16.msra.mxu0 %v6147_v45  ;;  %v6151_v45 = vld [vmem:[%s8073_s6 + $0x4] ss:$8 sps:$4 sm:$0xff]   ;;  %v6154_v51 = vld [vmem:[%s8073_s6 + $0x14] ss:$8 sps:$4 sm:$0xff]  }
0x130e   : > { %2118 = vst.msk [vmem:[#allocation2 + $0x11] sm:$0xff] %vm1369_vm9, %v2110_v49  ;;  %5865 = vmatprep.subr.bf16.mxu0 %v6569_v16  ;;  %v6149_v49 = vld [vmem:[%s8073_s6] ss:$8 sps:$4 sm:$0xff]   ;;  %2573 = vmatprep.subr.bf16.mxu1 %v6151_v45 }
0x130f   : > { %v1550_v53 = vpop.permute.xlu0 %1549  ;;  %2574 = vmatpush1.bf16.msra.mxu1 %v6149_v49  ;;  %v6169_v45 = vld [vmem:[%s8075_s8 + $0x60] sm:$0xff]  }
0x1310   : > { %v1365_v55 = vpop.permute.xlu1 %1364  ;;  %v2305_v56 = vld [vmem:[#allocation2 + $0x8] sm:$0xff]  ;;  %2575 = vmatprep.subr.bf16.mxu1 %v6154_v51  ;;  %v6170_v49 = vld [vmem:[%s8075_s8 + $0x20] sm:$0xff]  }
0x1311   : > { %1373 = vst.msk [vmem:[#allocation2 + $0x10] sm:$0x1] %vm1372_vm13, %v1365_v55  ;;  %v2309_v24 = vpack.c.bf16 %v2305_v56, %v2304_v47  ;;  %5866 = vmatpush3.bf16.msra.mxu0 %v6148_v52  ;;  %v6152_v52 = vld [vmem:[%s8073_s6 + $0x10] ss:$8 sps:$4 sm:$0xff]   ;;  %v6155_v55 = vld [vmem:[%s8073_s6 + $0x20] ss:$8 sps:$4 sm:$0xff]  }
0x1312   : > { %1558 = vst.msk [vmem:[#allocation2 + $0x10] sm:$0x1] %vm1557_vm14, %v1550_v53  ;;  %v6157_v53 = vld [vmem:[%s8073_s6 + $0x24] ss:$8 sps:$4 sm:$0xff]   ;;  %v6158_v47 = vld [vmem:[%s8073_s6 + $0x30] ss:$8 sps:$4 sm:$0xff]  }
0x1313   : > { %2576 = vmatpush1.bf16.msra.mxu1 %v6152_v52  ;;  %v6160_v56 = vld [vmem:[%s8073_s6 + $0x34] ss:$8 sps:$4 sm:$0xff]   ;;  %v6171_v51 = vld [vmem:[%s8075_s8 + $0x68] sm:$0xff]  }
0x1314   : > { %v2112_v54 = vpop.permute.xlu1 %2111  ;;  %5868 = vmatmul.mubr.msk.bf16.vlgmr.msra.gmra.mrb[36].mxu0 %vm608_vm0, %v2309_v24  ;;  %2577 = vmatprep.subr.bf16.mxu1 %v6157_v53  ;;  %v6172_v52 = vld [vmem:[%s8075_s8 + $0x28] sm:$0xff]   ;;  %v6173_v53 = vld [vmem:[%s8075_s8 + $0x70] sm:$0xff]  }
0x1315   : > { %2119 = vst.msk [vmem:[#allocation2 + $0x19] sm:$0xff] %vm1369_vm9, %v2112_v54  ;;  %5871 = vmatprep.mubr.msk.bf16.mxu0 %vm6570_vm12, %v6569_v16 }
0x1317   : > { %2578 = vmatpush1.bf16.msra.mxu1 %v6155_v55  ;;  %v6174_v55 = vld [vmem:[%s8075_s8 + $0x30] sm:$0xff]  }
0x1318   : > { %2579 = vmatprep.subr.bf16.mxu1 %v6160_v56  ;;  %v6176_v56 = vld [vmem:[%s8075_s8 + $0x38] sm:$0xff]  }
0x131b   : > { %2580 = vmatpush1.bf16.msra.mxu1 %v6158_v47  ;;  %v6175_v47 = vld [vmem:[%s8075_s8 + $0x78] sm:$0xff]  }
0x13d7   : > { %v5857_v59 = vpop.f32.mrb[32].mxu0 }
0x13d8   : > { %v2275_v57 = vpop.f32.mrb[33].mxu0 }
0x13d9   : > { %2292 = vrot.lane.b32.xlu1 %v2275_v57, %s6563_s22  ;;  %v5858_v60 = vpop.f32.mrb[34].mxu0 }
0x13da   : > { %v2278_v61 = vpop.f32.mrb[35].mxu0 }
0x13db   : > { %2294 = vrot.lane.b32.xlu0 %v2278_v61, %s6563_s22 }
0x13e7   : > { %v2391_v63 = vpop.f32.mrb[36].mxu0 }
0x13e8   : > { %v5869_v58 = vpop.f32.mrb[37].mxu0  ;;  %v2392_v18 = vadd.f32 %v2391_v63, %v7196_v15 }
0x13e9   : > { %v2394_v1 = vpop.f32.mrb[38].mxu0 }
0x13ea   : > { %v5870_v3 = vpop.f32.mrb[39].mxu0  ;;  %v2395_v17 = vadd.f32 %v2394_v1, %v7196_v15  ;;  %v7204_v21 = vadd.f32 %v2392_v18, %v6739_v30 }
0x13ec   : > { %v7201_v20 = vadd.f32 %v2395_v17, %v6741_v32  ;;  %v2418_v8 = vsel %vm608_vm0, %v7204_v21, 0.0 }
0x13ee   : > { %v2421_v22 = vsel %vm608_vm0, %v7201_v20, 0.0 }
0x13fa   : > { %2422 = vadd.xlane.f32.xlu0 %v2421_v22 }
0x13fd   : > { %2419 = vadd.xlane.f32.xlu1 %v2418_v8 }
0x140e   : > { %2113 = vrot.lane.b32.xlu1 %v7112_v41, %s8088_s19 }
0x1410   : > { %1930 = vrot.lane.b32.xlu0 %v7078_v29, %s8084_s26 }
0x1412   : > { %2296 = vrot.lane.b32.xlu1 %v5857_v59, %s6563_s22 }
0x144b   : > { %v2293_v32 = vpop.permute.xlu1 %2292 }
0x144c   : > { %2301 = vst.msk [vmem:[#allocation2 + $0x11] sm:$0xff] %vm1554_vm10, %v2293_v32 }
0x144d   : > { %v2295_v30 = vpop.permute.xlu0 %2294 }
0x144e   : > { %2302 = vst.msk [vmem:[#allocation2 + $0x19] sm:$0xff] %vm1554_vm10, %v2295_v30 }
0x1453   : > { %v2306_v9 = vld [vmem:[#allocation2 + $0x10] sm:$0xff] }
0x1455   : > { %v2307_v2 = vld [vmem:[#allocation2 + $0x18] sm:$0xff] }
0x1456   : > { %v2310_v0 = vpack.c.bf16 %v2307_v2, %v2306_v9 }
0x1458   : > { %5872 = vmatmul.mubr.msk.bf16.gmra.mrb[40].mxu0 %vm608_vm0, %v2310_v0 }
0x1459   : > { %5875 = vmatprep.mubr.msk.bf16.mxu0 %vm6570_vm12, %v6569_v16 }
0x1487   : > { %v2423_v41 = vpop.xlane.xlu0 %2422 }
0x1488   : > { %v2434_v33 = vmul.f32 0.015625, %v2423_v41 }
0x148a   : > { %v2420_v7 = vpop.xlane.xlu1 %2419  ;;  %v7233_v36 = vsub.f32 %v7201_v20, %v2434_v33 }
0x148b   : > { %v1931_v6 = vpop.permute.xlu0 %1930  ;;  %v2433_v14 = vmul.f32 0.015625, %v2420_v7 }
0x148c   : > { %1937 = vst.msk [vmem:[#allocation2 + $0x21] sm:$0x1] %vm1187_vm11, %v1931_v6  ;;  %v2444_v43 = vmul.f32 %v7233_v36, %v7233_v36 }
0x148d   : > { %v7225_v34 = vsub.f32 %v7204_v21, %v2433_v14 }
0x148e   : > { %v2114_v29 = vpop.permute.xlu1 %2113 }
0x148f   : > { %2120 = vst.msk [vmem:[#allocation2 + $0x21] sm:$0x1] %vm1372_vm13, %v2114_v29  ;;  %v2443_v39 = vmul.f32 %v7225_v34, %v7225_v34 }
0x1491   : > { %v2448_v40 = vsel %vm608_vm0, %v2443_v39, 0.0  ;;  %v6164_v39 = vld [vmem:[%s8075_s8 + $0x8] sm:$0xff]  }
0x1492   : > { %v2297_v62 = vpop.permute.xlu1 %2296 }
0x1493   : > { %2303 = vst.msk [vmem:[#allocation2 + $0x21] sm:$0x1] %vm1557_vm14, %v2297_v62 }
0x149a   : > { %v2308_v11 = vld [vmem:[#allocation2 + $0x20] sm:$0x3] }
0x149b   : > { %v2311_v13 = vpack.c.bf16 %v2308_v11, %v2308_v11 }
0x149d   : > { %5876 = vmatmul.mubr.msk.bf16.gmra.mrb[44].mxu0 %vm608_vm0, %v2311_v13  ;;  %v2494_v13 = vsub.s32 4, %v6817_v28 }
0x152b   : > { %v2399_v12 = vpop.f32.mrb[40].mxu0 }
0x152c   : > { %v2400_v50 = vadd.f32 %v2399_v12, %v7196_v15  ;;  %v5873_v25 = vpop.f32.mrb[41].mxu0 }
0x152d   : > { %v2402_v23 = vpop.f32.mrb[42].mxu0 }
0x152e   : > { %v7229_v26 = vadd.f32 %v2400_v50, %v6753_v42  ;;  %v2403_v27 = vadd.f32 %v2402_v23, %v7196_v15  ;;  %v5874_v31 = vpop.f32.mrb[43].mxu0  ;;  %v7303_v50 = vrot.slane %v7191_v10, %v2494_v13 }
0x1530   : > { %v7236_v37 = vadd.f32 %v2403_v27, %v6755_v44  ;;  %v2424_v38 = vsel %vm608_vm0, %v7229_v26, 0.0  ;;  %v2451_v44 = vsel %vm608_vm0, %v2444_v43, 0.0  ;;  %v6167_v43 = vld [vmem:[%s8075_s8 + $0x58] sm:$0xff]  }
0x1531   : > { %2425 = vadd.xlane.f32.xlu0 %v2424_v38  ;;  %v6163_v38 = vld [vmem:[%s8075_s8 + $0x48] sm:$0xff]  }
0x1532   : > { %v2427_v42 = vsel %vm608_vm0, %v7236_v37, 0.0 }
0x1533   : > { %2428 = vadd.xlane.f32.xlu1 %v2427_v42  ;;  %v6165_v42 = vld [vmem:[%s8075_s8 + $0x50] sm:$0xff]  }
0x1535   : > { %2449 = vadd.xlane.f32.xlu0 %v2448_v40  ;;  %v6166_v40 = vld [vmem:[%s8075_s8 + $0x10] sm:$0xff]  }
0x1539   : > { %2452 = vadd.xlane.f32.xlu0 %v2451_v44  ;;  %v6168_v44 = vld [vmem:[%s8075_s8 + $0x18] sm:$0xff]  }
0x1570   : > { %v2407_v24 = vpop.f32.mrb[44].mxu0 }
0x1571   : > { %v5877_v54 = vpop.f32.mrb[45].mxu0  ;;  %v2408_v58 = vadd.f32 %v2407_v24, %v7196_v15 }
0x1572   : > { %v2410_v59 = vpop.f32.mrb[46].mxu0 }
0x1573   : > { %v5878_v57 = vpop.f32.mrb[47].mxu0  ;;  %v7282_v32 = vadd.f32 %v2408_v58, %v6779_v4  ;;  %v2485_v4 = vsub.s32 3, %v6817_v28 }
0x1575   : > { %v2430_v6 = vsel %vm621_vm1, %v7282_v32, 0.0  ;;  %v7294_v62 = vrot.slane %v7191_v10, %v2485_v4 }
0x15be   : > { %v2426_v60 = vpop.xlane.xlu0 %2425 }
0x15bf   : > { %v2435_v61 = vmul.f32 0.015625, %v2426_v60 }
0x15c0   : > { %v2429_v63 = vpop.xlane.xlu1 %2428 }
0x15c1   : > { %v7274_v1 = vsub.f32 %v7229_v26, %v2435_v61  ;;  %v2436_v3 = vmul.f32 0.015625, %v2429_v63 }
0x15c2   : > { %v2450_v17 = vpop.xlane.xlu0 %2449 }
0x15c3   : > { %v7277_v18 = vsub.f32 %v7236_v37, %v2436_v3  ;;  %v2463_v22 = vmul.f32 0.015625, %v2450_v17  ;;  %v2445_v8 = vmul.f32 %v7274_v1, %v7274_v1 }
0x15c5   : > { %v2468_v30 = vadd.f32 1e-05, %v2463_v22  ;;  %v2454_v9 = vsel %vm608_vm0, %v2445_v8, 0.0  ;;  %v2446_v15 = vmul.f32 %v7277_v18, %v7277_v18 }
0x15c6   : > { %2455 = vadd.xlane.f32.xlu0 %v2454_v9  ;;  %v2453_v2 = vpop.xlane.xlu0 %2452 }
0x15c7   : > { %6327 = vrsqrt.f32 %v2468_v30  ;;  %v2464_v0 = vmul.f32 0.015625, %v2453_v2  ;;  %v2457_v41 = vsel %vm608_vm0, %v2446_v15, 0.0 }
0x15c8   : > { %2458 = vadd.xlane.f32.xlu1 %v2457_v41 }
0x15c9   : > { %v2469_v7 = vadd.f32 1e-05, %v2464_v0 }
0x15ca   : > { %2431 = vadd.xlane.f32.xlu0 %v2430_v6 }
0x15cb   : > { %6329 = vrsqrt.f32 %v2469_v7 }
0x15d1   : > { %v6328_v29 = vpop.eup %6327 }
0x15d2   : > { %v2478_v11 = vmul.f32 %v6328_v29, %v7225_v34  ;;  %v6161_v34 = vld [vmem:[%s8075_s8 + $0x40] sm:$0xff]  }
0x15d3   : > { %5592 = vmatprep.subr.bf16.mxu0 %v6161_v34 }
0x15d4   : > { %v2487_v12 = vmul.f32 %v7294_v62, %v2478_v11 }
0x15d5   : > { %v6330_v14 = vpop.eup %6329 }
0x15d6   : > { %v2479_v33 = vmul.f32 %v6330_v14, %v7233_v36  ;;  %v2496_v23 = vadd.f32 %v7303_v50, %v2487_v12  ;;  %v6162_v36 = vld [vmem:[%s8075_s8] sm:$0xff]  }
0x15d7   : > { %5593 = vmatpush3.bf16.msra.mxu0 %v6162_v36 }
0x15d8   : > { %v2488_v25 = vmul.f32 %v7294_v62, %v2479_v33  ;;  %5594 = vmatprep.subr.bf16.mxu0 %v6163_v38 }
0x15da   : > { %v2497_v27 = vadd.f32 %v7303_v50, %v2488_v25 }
0x15db   : > { %5595 = vmatpush3.bf16.msra.mxu0 %v6164_v39 }
0x15dc   : > { %v2501_v31 = vpack.c.bf16 %v2497_v27, %v2496_v23  ;;  %5596 = vmatprep.subr.bf16.mxu0 %v6165_v42 }
0x15de   : > { %5328 = vmatmul.mubr.msk.bf16.vlgmr.msra.gmra.mrb[52].mxu1 %vm608_vm0, %v2501_v31 }
0x15df   : > { %2615 = vmatprep.mubr.bf16.mxu1 %v6561_v19  ;;  %5597 = vmatpush3.bf16.msra.mxu0 %v6166_v40 }
0x15e0   : > { %5598 = vmatprep.subr.bf16.mxu0 %v6167_v43 }
0x15e3   : > { %5599 = vmatpush3.bf16.msra.mxu0 %v6168_v44 }
0x15e4   : > { %5600 = vmatprep.subr.bf16.mxu0 %v6169_v45 }
0x15e7   : > { %5601 = vmatpush3.bf16.msra.mxu0 %v6170_v49 }
0x15e8   : > { %5602 = vmatprep.subr.bf16.mxu0 %v6171_v51 }
0x15eb   : > { %5603 = vmatpush3.bf16.msra.mxu0 %v6172_v52 }
0x15ec   : > { %5604 = vmatprep.subr.bf16.mxu0 %v6173_v53 }
0x15ef   : > { %5605 = vmatpush3.bf16.msra.mxu0 %v6174_v55 }
0x15f0   : > { %5606 = vmatprep.subr.bf16.mxu0 %v6175_v47 }
0x15f3   : > { %5607 = vmatpush3.bf16.msra.mxu0 %v6176_v56 }
0x1653   : > { %v2456_v24 = vpop.xlane.xlu0 %2455 }
0x1654   : > { %v2465_v54 = vmul.f32 0.015625, %v2456_v24 }
0x1655   : > { %v2459_v59 = vpop.xlane.xlu1 %2458 }
0x1656   : > { %v2470_v57 = vadd.f32 1e-05, %v2465_v54  ;;  %v2466_v60 = vmul.f32 0.015625, %v2459_v59 }
0x1657   : > { %v2432_v61 = vpop.xlane.xlu0 %2431 }
0x1658   : > { %6331 = vrsqrt.f32 %v2470_v57  ;;  %v2471_v63 = vadd.f32 1e-05, %v2466_v60  ;;  %v2437_v58 = vmul.f32 0.015625, %v2432_v61 }
0x165a   : > { %6333 = vrsqrt.f32 %v2471_v63  ;;  %v2442_v3 = vsub.f32 %v7282_v32, %v2437_v58 }
0x165c   : > { %v2447_v17 = vmul.f32 %v2442_v3, %v2442_v3 }
0x165e   : > { %v2460_v22 = vsel %vm621_vm1, %v2447_v17, 0.0 }
0x165f   : > { %2461 = vadd.xlane.f32.xlu1 %v2460_v22 }
0x1662   : > { %v6332_v8 = vpop.eup %6331 }
0x1663   : > { %v2480_v30 = vmul.f32 %v6332_v8, %v7274_v1  ;;  %v2512_v1 = vld [vmem:[%s8074_s7] sm:$0x3] }
0x1664   : > { %v6334_v9 = vpop.eup %6333  ;;  %v7372_v29 = vrot.slane %v2512_v1, %v6820_v35 }
0x1665   : > { %v2481_v15 = vmul.f32 %v6334_v9, %v7277_v18  ;;  %v2489_v2 = vmul.f32 %v7294_v62, %v2480_v30  ;;  %v7375_v18 = vrot.slane %v2512_v1, %v6829_v46 }
0x1667   : > { %v2490_v0 = vmul.f32 %v7294_v62, %v2481_v15  ;;  %v2498_v41 = vadd.f32 %v7303_v50, %v2489_v2 }
0x1669   : > { %v2499_v7 = vadd.f32 %v7303_v50, %v2490_v0 }
0x166b   : > { %v2502_v6 = vpack.c.bf16 %v2499_v7, %v2498_v41 }
0x166d   : > { %5329 = vmatmul.mubr.msk.bf16.gmra.mrb[56].mxu1 %vm608_vm0, %v2502_v6 }
0x166e   : > { %2625 = vmatprep.mubr.bf16.mxu1 %v6561_v19 }
0x16b1   : > { %v2607_v11 = vpop.f32.mrb[52].mxu1 }
0x16b2   : > { %v2608_v14 = vadd.f32 %v2607_v11, %v7372_v29  ;;  %v2609_v12 = vpop.f32.mrb[53].mxu1 }
0x16b3   : > { %v2610_v33 = vadd.f32 %v2609_v12, %v7375_v18  ;;  %v2611_v25 = vpop.f32.mrb[54].mxu1 }
0x16b4   : > { %v2644_v23 = vmul.f32 0.70710677, %v2608_v14  ;;  %v2612_v27 = vadd.f32 %v2611_v25, %v7372_v29  ;;  %v2613_v31 = vpop.f32.mrb[55].mxu1  ;;  %v2634_v51 = vmul.f32 0.5, %v2608_v14 }
0x16b5   : > { %v2645_v34 = vmul.f32 0.70710677, %v2610_v33  ;;  %v2614_v36 = vadd.f32 %v2613_v31, %v7375_v18  ;;  %v2635_v55 = vmul.f32 0.5, %v2610_v33 }
0x16b6   : > { %6335 = verf.f32 %v2644_v23  ;;  %v2646_v38 = vmul.f32 0.70710677, %v2612_v27  ;;  %v2636_v52 = vmul.f32 0.5, %v2612_v27 }
0x16b7   : > { %6337 = verf.f32 %v2645_v34  ;;  %v2647_v39 = vmul.f32 0.70710677, %v2614_v36  ;;  %v2637_v47 = vmul.f32 0.5, %v2614_v36 }
0x16b8   : > { %6339 = verf.f32 %v2646_v38 }
0x16b9   : > { %6341 = verf.f32 %v2647_v39 }
0x16c0   : > { %v6336_v42 = vpop.eup %6335 }
0x16c1   : > { %v6338_v40 = vpop.eup %6337  ;;  %v2664_v43 = vadd.f32 1.0, %v6336_v42 }
0x16c2   : > { %v6340_v44 = vpop.eup %6339  ;;  %v2665_v45 = vadd.f32 1.0, %v6338_v40 }
0x16c3   : > { %v6342_v49 = vpop.eup %6341  ;;  %v2666_v53 = vadd.f32 1.0, %v6340_v44  ;;  %v2674_v24 = vmul.f32 %v2664_v43, %v2634_v51 }
0x16c4   : > { %v2667_v56 = vadd.f32 1.0, %v6342_v49  ;;  %v2675_v59 = vmul.f32 %v2665_v45, %v2635_v55  ;;  %v2724_v55 = vsub.s32 5, %v6817_v28 }
0x16c5   : > { %v2676_v54 = vmul.f32 %v2666_v53, %v2636_v52 }
0x16c6   : > { %v2677_v57 = vmul.f32 %v2667_v56, %v2637_v47  ;;  %v7393_v56 = vrot.slane %v7191_v10, %v2724_v55 }
0x16c7   : > { %v2684_v60 = vpack.c.bf16 %v2676_v54, %v2674_v24 }
0x16c8   : > { %v2685_v61 = vpack.c.bf16 %v2677_v57, %v2675_v59 }
0x16ca   : > { %2854 = vmatprep.mubr.bf16.mxu0 %v2685_v61 }
0x16cb   : > { %2855 = vmatmul.mubr.bf16.vlgmr.msra.gmra.mrb[48].mxu0 %v2684_v60 }
0x16ec   : > { %v2462_v63 = vpop.xlane.xlu1 %2461 }
0x16ed   : > { %v2467_v58 = vmul.f32 0.015625, %v2462_v63 }
0x16ef   : > { %v2472_v17 = vadd.f32 1e-05, %v2467_v58 }
0x16f1   : > { %6343 = vrsqrt.f32 %v2472_v17 }
0x16fb   : > { %v6344_v22 = vpop.eup %6343 }
0x16fc   : > { %v2482_v8 = vmul.f32 %v6344_v22, %v2442_v3 }
0x16fe   : > { %v2491_v30 = vmul.f32 %v7294_v62, %v2482_v8 }
0x1700   : > { %v2500_v9 = vadd.f32 %v7303_v50, %v2491_v30 }
0x1702   : > { %v2503_v15 = vpack.c.bf16 %v2500_v9, %v2500_v9 }
0x1704   : > { %5330 = vmatmul.mubr.msk.bf16.gmra.mrb[60].mxu1 %vm608_vm0, %v2503_v15 }
0x1705   : > { %3074 = vmatprep.mubr.bf16.mxu1 %v6561_v19 }
0x1740   : > { %v2617_v2 = vpop.f32.mrb[56].mxu1 }
0x1741   : > { %v2618_v0 = vadd.f32 %v2617_v2, %v7372_v29  ;;  %v2619_v41 = vpop.f32.mrb[57].mxu1 }
0x1742   : > { %v2620_v7 = vadd.f32 %v2619_v41, %v7375_v18  ;;  %v2621_v6 = vpop.f32.mrb[58].mxu1 }
0x1743   : > { %v2648_v1 = vmul.f32 0.70710677, %v2618_v0  ;;  %v2622_v11 = vadd.f32 %v2621_v6, %v7372_v29  ;;  %v2623_v3 = vpop.f32.mrb[59].mxu1  ;;  %v2638_v36 = vmul.f32 0.5, %v2618_v0 }
0x1744   : > { %v2649_v14 = vmul.f32 0.70710677, %v2620_v7  ;;  %v2624_v62 = vadd.f32 %v2623_v3, %v7375_v18  ;;  %v2639_v42 = vmul.f32 0.5, %v2620_v7 }
0x1745   : > { %6345 = verf.f32 %v2648_v1  ;;  %v2650_v50 = vmul.f32 0.70710677, %v2622_v11  ;;  %v2640_v38 = vmul.f32 0.5, %v2622_v11 }
0x1746   : > { %6347 = verf.f32 %v2649_v14  ;;  %v2651_v12 = vmul.f32 0.70710677, %v2624_v62  ;;  %v2641_v40 = vmul.f32 0.5, %v2624_v62 }
0x1747   : > { %6349 = verf.f32 %v2650_v50 }
0x1748   : > { %6351 = verf.f32 %v2651_v12 }
0x174f   : > { %v6346_v33 = vpop.eup %6345 }
0x1750   : > { %v6348_v25 = vpop.eup %6347  ;;  %v2668_v23 = vadd.f32 1.0, %v6346_v33 }
0x1751   : > { %v6350_v27 = vpop.eup %6349  ;;  %v2669_v31 = vadd.f32 1.0, %v6348_v25 }
0x1752   : > { %v6352_v34 = vpop.eup %6351  ;;  %v2670_v39 = vadd.f32 1.0, %v6350_v27  ;;  %v2678_v44 = vmul.f32 %v2668_v23, %v2638_v36 }
0x1753   : > { %v2671_v43 = vadd.f32 1.0, %v6352_v34  ;;  %v2679_v49 = vmul.f32 %v2669_v31, %v2639_v42 }
0x1754   : > { %v2680_v45 = vmul.f32 %v2670_v39, %v2640_v38 }
0x1755   : > { %v2681_v51 = vmul.f32 %v2671_v43, %v2641_v40 }
0x1756   : > { %v2686_v52 = vpack.c.bf16 %v2680_v45, %v2678_v44 }
0x1757   : > { %v2687_v53 = vpack.c.bf16 %v2681_v51, %v2679_v49 }
0x1759   : > { %2862 = vmatprep.mubr.bf16.mxu0 %v2687_v53 }
0x175a   : > { %2863 = vmatmul.mubr.bf16.gmra.mrb[52].mxu0 %v2686_v52 }
0x179e   : > { %v5608_v47 = vpop.f32.mrb[48].mxu0 }
0x179f   : > { %v5609_v24 = vpop.f32.mrb[49].mxu0 }
0x17a0   : > { %v5610_v54 = vadd.f32 %v5609_v24, %v5608_v47  ;;  %v5611_v59 = vpop.f32.mrb[50].mxu0  ;;  %v6179_v47 = vld [vmem:[%s8070_s3 + $0x44] ss:$8 sps:$4 sm:$0xff]   ;;  %v6177_v24 = vld [vmem:[%s8070_s3 + $0x40] ss:$8 sps:$4 sm:$0xff]  }
0x17a1   : > { %v5612_v57 = vpop.f32.mrb[51].mxu0  ;;  %3042 = vmatprep.subr.bf16.mxu1 %v6179_v47 }
0x17a2   : > { %v2857_v60 = vadd.f32 %v5610_v54, %v7393_v56  ;;  %v5613_v61 = vadd.f32 %v5612_v57, %v5611_v59  ;;  %3043 = vmatpush1.bf16.msra.mxu1 %v6177_v24  ;;  %v6182_v54 = vld [vmem:[%s8070_s3 + $0x54] ss:$8 sps:$4 sm:$0xff]   ;;  %v6180_v59 = vld [vmem:[%s8070_s3 + $0x50] ss:$8 sps:$4 sm:$0xff]   ;;  %v6185_v57 = vld [vmem:[%s8070_s3 + $0x64] ss:$8 sps:$4 sm:$0xff]  }
0x17a3   : > { %3044 = vmatprep.subr.bf16.mxu1 %v6182_v54 }
0x17a4   : > { %v7397_v63 = vadd.f32 %v2857_v60, %v7204_v21  ;;  %v2860_v58 = vadd.f32 %v5613_v61, %v7393_v56  ;;  %v6183_v60 = vld [vmem:[%s8070_s3 + $0x60] ss:$8 sps:$4 sm:$0xff]   ;;  %v6188_v61 = vld [vmem:[%s8070_s3 + $0x74] ss:$8 sps:$4 sm:$0xff]  }
0x17a6   : > { %v7401_v17 = vadd.f32 %v2860_v58, %v7201_v20  ;;  %v2885_v22 = vsel %vm608_vm0, %v7397_v63, 0.0  ;;  %3045 = vmatpush1.bf16.msra.mxu1 %v6180_v59  ;;  %v6186_v58 = vld [vmem:[%s8070_s3 + $0x70] ss:$8 sps:$4 sm:$0xff]  }
0x17a7   : > { %2886 = vadd.xlane.f32.xlu0 %v2885_v22  ;;  %3046 = vmatprep.subr.bf16.mxu1 %v6185_v57 }
0x17a8   : > { %v2888_v10 = vsel %vm608_vm0, %v7401_v17, 0.0 }
0x17a9   : > { %2889 = vadd.xlane.f32.xlu1 %v2888_v10 }
0x17aa   : > { %3047 = vmatpush1.bf16.msra.mxu1 %v6183_v60 }
0x17ab   : > { %3048 = vmatprep.subr.bf16.mxu1 %v6188_v61 }
0x17ae   : > { %3049 = vmatpush1.bf16.msra.mxu1 %v6186_v58 }
0x17d7   : > { %v2627_v8 = vpop.f32.mrb[60].mxu1 }
0x17d8   : > { %v2628_v30 = vadd.f32 %v2627_v8, %v7372_v29  ;;  %v2629_v9 = vpop.f32.mrb[61].mxu1 }
0x17d9   : > { %v2630_v21 = vadd.f32 %v2629_v9, %v7375_v18  ;;  %v2631_v15 = vpop.f32.mrb[62].mxu1 }
0x17da   : > { %v2652_v2 = vmul.f32 0.70710677, %v2628_v30  ;;  %v2632_v0 = vpop.f32.mrb[63].mxu1  ;;  %v2642_v6 = vmul.f32 0.5, %v2628_v30 }
0x17db   : > { %v2653_v41 = vmul.f32 0.70710677, %v2630_v21  ;;  %v2643_v11 = vmul.f32 0.5, %v2630_v21 }
0x17dc   : > { %6353 = verf.f32 %v2652_v2 }
0x17dd   : > { %6355 = verf.f32 %v2653_v41 }
0x17e6   : > { %v6354_v20 = vpop.eup %6353 }
0x17e7   : > { %v6356_v7 = vpop.eup %6355  ;;  %v2672_v1 = vadd.f32 1.0, %v6354_v20 }
0x17e8   : > { %v2673_v3 = vadd.f32 1.0, %v6356_v7 }
0x17e9   : > { %v2682_v14 = vmul.f32 %v2672_v1, %v2642_v6 }
0x17ea   : > { %v2683_v62 = vmul.f32 %v2673_v3, %v2643_v11 }
0x17eb   : > { %v2688_v12 = vpack.c.bf16 %v2682_v14, %v2682_v14 }
0x17ec   : > { %v2689_v50 = vpack.c.bf16 %v2683_v62, %v2683_v62 }
0x17ee   : > { %2870 = vmatprep.mubr.bf16.mxu0 %v2689_v50 }
0x17ef   : > { %2871 = vmatmul.mubr.bf16.gmra.mrb[56].mxu0 %v2688_v12 }
0x182d   : > { %v5614_v29 = vpop.f32.mrb[52].mxu0 }
0x182e   : > { %v5615_v18 = vpop.f32.mrb[53].mxu0 }
0x182f   : > { %v5616_v33 = vadd.f32 %v5615_v18, %v5614_v29  ;;  %v5617_v25 = vpop.f32.mrb[54].mxu0 }
0x1830   : > { %v5618_v23 = vpop.f32.mrb[55].mxu0 }
0x1831   : > { %v2865_v27 = vadd.f32 %v5616_v33, %v7393_v56  ;;  %v5619_v31 = vadd.f32 %v5618_v23, %v5617_v25 }
0x1833   : > { %v7411_v34 = vadd.f32 %v2865_v27, %v7229_v26  ;;  %v2868_v36 = vadd.f32 %v5619_v31, %v7393_v56 }
0x1834   : > { %v2887_v38 = vpop.xlane.xlu0 %2886 }
0x1835   : > { %v7415_v39 = vadd.f32 %v2868_v36, %v7236_v37  ;;  %v2900_v42 = vmul.f32 0.015625, %v2887_v38  ;;  %v2891_v40 = vsel %vm608_vm0, %v7411_v34, 0.0 }
0x1836   : > { %2892 = vadd.xlane.f32.xlu0 %v2891_v40  ;;  %v2890_v43 = vpop.xlane.xlu1 %2889 }
0x1837   : > { %v2905_v44 = vsub.f32 %v7397_v63, %v2900_v42  ;;  %v2901_v45 = vmul.f32 0.015625, %v2890_v43  ;;  %v2894_v49 = vsel %vm608_vm0, %v7415_v39, 0.0 }
0x1838   : > { %2895 = vadd.xlane.f32.xlu1 %v2894_v49 }
0x1839   : > { %v2906_v26 = vsub.f32 %v7401_v17, %v2901_v45  ;;  %v2910_v51 = vmul.f32 %v2905_v44, %v2905_v44 }
0x183b   : > { %v2915_v52 = vsel %vm608_vm0, %v2910_v51, 0.0  ;;  %v2911_v37 = vmul.f32 %v2906_v26, %v2906_v26 }
0x183c   : > { %2916 = vadd.xlane.f32.xlu0 %v2915_v52 }
0x183d   : > { %v2918_v53 = vsel %vm608_vm0, %v2911_v37, 0.0 }
0x183e   : > { %2919 = vadd.xlane.f32.xlu1 %v2918_v53 }
0x18c2   : > { %v5620_v22 = vpop.f32.mrb[56].mxu0 }
0x18c3   : > { %v2893_v10 = vpop.xlane.xlu0 %2892  ;;  %v5621_v8 = vpop.f32.mrb[57].mxu0 }
0x18c4   : > { %v2902_v30 = vmul.f32 0.015625, %v2893_v10  ;;  %v5622_v9 = vadd.f32 %v5621_v8, %v5620_v22  ;;  %v5623_v21 = vpop.f32.mrb[58].mxu0 }
0x18c5   : > { %v5624_v15 = vpop.f32.mrb[59].mxu0  ;;  %v2896_v2 = vpop.xlane.xlu1 %2895 }
0x18c6   : > { %v2907_v0 = vsub.f32 %v7411_v34, %v2902_v30  ;;  %v2873_v41 = vadd.f32 %v5622_v9, %v7393_v56  ;;  %v2903_v20 = vmul.f32 0.015625, %v2896_v2  ;;  %v5356_v15 = vld [vmem:[%s8071_s4 + $0x2] sm:$0x3] }
0x18c7   : > { %v7474_v2 = vrot.slane %v5356_v15, %v6820_v35 }
0x18c8   : > { %v2908_v7 = vsub.f32 %v7415_v39, %v2903_v20  ;;  %v2912_v6 = vmul.f32 %v2907_v0, %v2907_v0  ;;  %v7453_v11 = vadd.f32 %v2873_v41, %v7282_v32  ;;  %v5347_v32 = vld [vmem:[%s8076_s9 + $0x8] sm:$0x3f] }
0x18c9   : > { %v2917_v1 = vpop.xlane.xlu0 %2916  ;;  %v2953_v25 = vrot.slane %v5347_v32, %v6820_v35  ;;  %v2962_v36 = vrot.slane %v5347_v32, %v6829_v46 }
0x18ca   : > { %v2930_v3 = vmul.f32 0.015625, %v2917_v1  ;;  %v2921_v14 = vsel %vm608_vm0, %v2912_v6, 0.0  ;;  %v2913_v62 = vmul.f32 %v2908_v7, %v2908_v7  ;;  %v2897_v33 = vsel %vm621_vm1, %v7453_v11, 0.0 }
0x18cb   : > { %2922 = vadd.xlane.f32.xlu0 %v2921_v14  ;;  %v2920_v50 = vpop.xlane.xlu1 %2919 }
0x18cc   : > { %v2935_v12 = vadd.f32 1e-05, %v2930_v3  ;;  %v2931_v29 = vmul.f32 0.015625, %v2920_v50  ;;  %v2924_v18 = vsel %vm608_vm0, %v2913_v62, 0.0 }
0x18cd   : > { %2925 = vadd.xlane.f32.xlu1 %v2924_v18 }
0x18ce   : > { %6357 = vrsqrt.f32 %v2935_v12  ;;  %v2936_v56 = vadd.f32 1e-05, %v2931_v29 }
0x18cf   : > { %2898 = vadd.xlane.f32.xlu0 %v2897_v33 }
0x18d0   : > { %6359 = vrsqrt.f32 %v2936_v56 }
0x18d8   : > { %v6358_v23 = vpop.eup %6357 }
0x18d9   : > { %v2945_v27 = vmul.f32 %v6358_v23, %v2905_v44 }
0x18da   : > { %v6360_v31 = vpop.eup %6359 }
0x18db   : > { %v2954_v38 = vmul.f32 %v2953_v25, %v2945_v27  ;;  %v2946_v42 = vmul.f32 %v6360_v31, %v2906_v26 }
0x18dd   : > { %v2955_v40 = vmul.f32 %v2953_v25, %v2946_v42  ;;  %v2963_v43 = vadd.f32 %v2962_v36, %v2954_v38 }
0x18df   : > { %v2964_v45 = vadd.f32 %v2962_v36, %v2955_v40 }
0x18e1   : > { %v2968_v49 = vpack.c.bf16 %v2964_v45, %v2963_v43 }
0x18e3   : > { %5365 = vmatmul.mubr.msk.bf16.vlgmr.msra.gmra.mrb[64].mxu1 %vm608_vm0, %v2968_v49 }
0x18e4   : > { %3084 = vmatprep.mubr.bf16.mxu1 %v6561_v19 }
0x1958   : > { %v2923_v51 = vpop.xlane.xlu0 %2922 }
0x1959   : > { %v2932_v52 = vmul.f32 0.015625, %v2923_v51 }
0x195a   : > { %v2926_v37 = vpop.xlane.xlu1 %2925 }
0x195b   : > { %v2937_v53 = vadd.f32 1e-05, %v2932_v52  ;;  %v2933_v47 = vmul.f32 0.015625, %v2926_v37 }
0x195c   : > { %v2899_v24 = vpop.xlane.xlu0 %2898 }
0x195d   : > { %6361 = vrsqrt.f32 %v2937_v53  ;;  %v2938_v44 = vadd.f32 1e-05, %v2933_v47  ;;  %v2904_v54 = vmul.f32 0.015625, %v2899_v24 }
0x195f   : > { %6363 = vrsqrt.f32 %v2938_v44  ;;  %v2909_v26 = vsub.f32 %v7453_v11, %v2904_v54 }
0x1961   : > { %v2914_v59 = vmul.f32 %v2909_v26, %v2909_v26 }
0x1963   : > { %v2927_v57 = vsel %vm621_vm1, %v2914_v59, 0.0 }
0x1964   : > { %2928 = vadd.xlane.f32.xlu1 %v2927_v57 }
0x1967   : > { %v6362_v60 = vpop.eup %6361 }
0x1968   : > { %v2947_v61 = vmul.f32 %v6362_v60, %v2907_v0  ;;  %v7477_v0 = vrot.slane %v5356_v15, %v6829_v46 }
0x1969   : > { %v6364_v58 = vpop.eup %6363 }
0x196a   : > { %v2948_v22 = vmul.f32 %v6364_v58, %v2908_v7  ;;  %v2956_v10 = vmul.f32 %v2953_v25, %v2947_v61 }
0x196c   : > { %v2957_v8 = vmul.f32 %v2953_v25, %v2948_v22  ;;  %v2965_v30 = vadd.f32 %v2962_v36, %v2956_v10 }
0x196e   : > { %v2966_v9 = vadd.f32 %v2962_v36, %v2957_v8 }
0x1970   : > { %v2969_v21 = vpack.c.bf16 %v2966_v9, %v2965_v30 }
0x1972   : > { %5366 = vmatmul.mubr.msk.bf16.gmra.mrb[68].mxu1 %vm608_vm0, %v2969_v21 }
0x1973   : > { %3094 = vmatprep.mubr.bf16.mxu1 %v6561_v19 }
0x19b6   : > { %v3076_v41 = vpop.f32.mrb[64].mxu1 }
0x19b7   : > { %v3078_v20 = vpop.f32.mrb[65].mxu1  ;;  %v3077_v6 = vadd.f32 %v3076_v41, %v7474_v2 }
0x19b8   : > { %v3080_v7 = vpop.f32.mrb[66].mxu1  ;;  %v3079_v14 = vadd.f32 %v3078_v20, %v7477_v0 }
0x19b9   : > { %v3081_v1 = vadd.f32 %v3080_v7, %v7474_v2  ;;  %v3082_v3 = vpop.f32.mrb[67].mxu1 }
0x19ba   : > { %v3083_v62 = vadd.f32 %v3082_v3, %v7477_v0 }
0x19bb   : > { %v7483_v50 = vpack.c.bf16 %v3081_v1, %v3077_v6 }
0x19bc   : > { %v7485_v12 = vpack.c.bf16 %v3083_v62, %v3079_v14 }
0x19bd   : > { %3107 = vrot.lane.b32.xlu0 %v7483_v50, %s6562_s30 }
0x19be   : > { %5887 = vmatprep.subr.bf16.mxu0 %v7485_v12 }
0x19bf   : > { %5888 = vmatpush3.bf16.msra.mxu0 %v7485_v12 }
0x19c1   : > { %3271 = vrot.lane.b32.xlu0 %v7483_v50, %s6564_s24 }
0x19f1   : > { %v2929_v29 = vpop.xlane.xlu1 %2928 }
0x19f2   : > { %v2934_v18 = vmul.f32 0.015625, %v2929_v29 }
0x19f4   : > { %v2939_v56 = vadd.f32 1e-05, %v2934_v18 }
0x19f6   : > { %6365 = vrsqrt.f32 %v2939_v56 }
0x1a00   : > { %v6366_v33 = vpop.eup %6365 }
0x1a01   : > { %v2949_v32 = vmul.f32 %v6366_v33, %v2909_v26 }
0x1a03   : > { %v2958_v23 = vmul.f32 %v2953_v25, %v2949_v32 }
0x1a05   : > { %v2967_v27 = vadd.f32 %v2962_v36, %v2958_v23 }
0x1a07   : > { %v2970_v31 = vpack.c.bf16 %v2967_v27, %v2967_v27 }
0x1a09   : > { %5367 = vmatmul.mubr.msk.bf16.gmra.mrb[72].mxu1 %vm608_vm0, %v2970_v31 }
0x1a0a   : > { %5883 = vmatprep.mubr.msk.bf16.mxu1 %vm835_vm2, %v7483_v50 }
0x1a2f   : > { %v3108_v38 = vpop.permute.xlu0 %3107 }
0x1a30   : > { %6043 = vmatprep.subr.msk.bf16.mxu1 %vm835_vm2, %v3108_v38  ;;  %v3118_v42 = vsel %vm835_vm2, %v3108_v38, 0 }
0x1a31   : > { %5880 = vmatpush3.bf16.xpose.msra.mxu1 %v3118_v42 }
0x1a33   : > { %v3272_v57 = vpop.permute.xlu0 %3271 }
0x1a45   : > { %v3086_v40 = vpop.f32.mrb[68].mxu1 }
0x1a46   : > { %v3087_v43 = vadd.f32 %v3086_v40, %v7474_v2  ;;  %v3088_v45 = vpop.f32.mrb[69].mxu1 }
0x1a47   : > { %v3089_v49 = vadd.f32 %v3088_v45, %v7477_v0  ;;  %v3090_v25 = vpop.f32.mrb[70].mxu1 }
0x1a48   : > { %v7500_v36 = vpack.c.bf16 %v3087_v43, %v3087_v43  ;;  %v3091_v51 = vadd.f32 %v3090_v25, %v7474_v2  ;;  %v3092_v52 = vpop.f32.mrb[71].mxu1 }
0x1a49   : > { %v7503_v37 = vpack.c.bf16 %v3089_v49, %v3089_v49  ;;  %v3093_v53 = vadd.f32 %v3092_v52, %v7477_v0 }
0x1a4a   : > { %v3822_v47 = vpack.c.bf16 %v3091_v51, %v3087_v43  ;;  %3109 = vrot.lane.b32.xlu1 %v7500_v36, %s6562_s30 }
0x1a4b   : > { %v3940_v24 = vpack.c.bf16 %v3093_v53, %v3089_v49  ;;  %v3218_v44 = vand.u32 %v7503_v37, %v6867_v48 }
0x1a4c   : > { %v3827_v10 = vshll.u32 %v3822_v47, 16  ;;  %v3825_v14 = vshrl.u32 %v3822_v47, 16 }
0x1a4d   : > { %5889 = vmatprep.subr.bf16.mxu0 %v3218_v44  ;;  %v3945_v8 = vshll.u32 %v3940_v24, 16  ;;  %v3943_v29 = vshrl.u32 %v3940_v24, 16 }
0x1a4e   : > { %5890 = vmatpush3.bf16.msra.mxu0 %v3218_v44  ;;  %3275 = vrot.lane.b32.xlu1 %v7483_v50, %s6563_s22  ;;  %v3829_v20 = vrot.slane %v3827_v10, 1 }
0x1a4f   : > { %v3947_v1 = vrot.slane %v3945_v8, 1 }
0x1a50   : > { %v3830_v56 = vor.u32 %v3829_v20, %v3825_v14 }
0x1a52   : > { %3277 = vrot.lane.b32.xlu1 %v7500_v36, %s6563_s22 }
0x1a56   : > { %3273 = vrot.lane.b32.xlu1 %v7500_v36, %s6564_s24 }
0x1abc   : > { %v3110_v54 = vpop.permute.xlu1 %3109 }
0x1abd   : > { %6044 = vmatprep.subr.msk.bf16.mxu1 %vm835_vm2, %v3110_v54  ;;  %v3121_v26 = vsel %vm835_vm2, %v3110_v54, 0 }
0x1abe   : > { %5882 = vmatpush3.bf16.xpose.msra.mxu1 %v3121_v26 }
0x1ac0   : > { %v3276_v59 = vpop.permute.xlu1 %3275 }
0x1ac1   : > { %6045 = vmatprep.subr.msk.bf16.mxu1 %vm835_vm2, %v3276_v59  ;;  %v3286_v60 = vsel %vm835_vm2, %v3276_v59, 0 }
0x1ac4   : > { %v3278_v61 = vpop.permute.xlu1 %3277 }
0x1ac5   : > { %5884 = vmatmul.mubr.msk.bf16.vlgmr.msra.gmra.mrb[76].mxu1 %vm835_vm2, %v7500_v36  ;;  %v3289_v58 = vsel %vm835_vm2, %v3278_v61, 0 }
0x1ac6   : > { %5896 = vmatpush3.bf16.xpose.msra.mxu1 %v3286_v60  ;;  %5899 = vmatprep.mubr.msk.bf16.mxu1 %vm835_vm2, %v3272_v57 }
0x1ac7   : > { %6046 = vmatprep.subr.msk.bf16.mxu1 %vm835_vm2, %v3278_v61 }
0x1ac8   : > { %v3274_v22 = vpop.permute.xlu1 %3273 }
0x1ace   : > { %5898 = vmatpush3.bf16.xpose.msra.mxu1 %v3289_v58 }
0x1ad5   : > { %5900 = vmatmul.mubr.msk.bf16.vlgmr.msra.gmra.mrb[80].mxu1 %vm835_vm2, %v3274_v22 }
0x1adc   : > { %v3096_v30 = vpop.f32.mrb[72].mxu1 }
0x1add   : > { %v3097_v9 = vadd.f32 %v3096_v30, %v7474_v2  ;;  %v3098_v21 = vpop.f32.mrb[73].mxu1  ;;  %v3948_v2 = vor.u32 %v3947_v1, %v3943_v29 }
0x1ade   : > { %v3099_v15 = vadd.f32 %v3098_v21, %v7477_v0  ;;  %v3100_v41 = vpop.f32.mrb[74].mxu1 }
0x1adf   : > { %v7528_v7 = vpack.c.bf16 %v3097_v9, %v3097_v9  ;;  %v3101_v6 = vpop.f32.mrb[75].mxu1 }
0x1ae0   : > { %v7530_v3 = vpack.c.bf16 %v3099_v15, %v3099_v15 }
0x1ae1   : > { %v3832_v62 = vshll.u32 %v7528_v7, 16 }
0x1ae2   : > { %v3950_v18 = vshll.u32 %v7530_v3, 16 }
0x1ae3   : > { %v3834_v33 = vrot.slane %v3832_v62, 1 }
0x1ae4   : > { %v3952_v32 = vrot.slane %v3950_v18, 1 }
0x1ae5   : > { %v7535_v0 = vsel %vm1561_vm4, %v3830_v56, %v3834_v33 }
0x1ae6   : > { %v7538_v23 = vsel %vm1561_vm4, %v3948_v2, %v3952_v32 }
0x1b98   : > { %v5885_v27 = vpop.f32.mrb[76].mxu1 }
0x1b99   : > { %v3157_v31 = vpop.f32.mrb[77].mxu1  ;;  %v3173_v43 = vmul.f32 0.25, %v5885_v27 }
0x1b9a   : > { %v3171_v38 = vmul.f32 0.25, %v3157_v31  ;;  %v5886_v42 = vpop.f32.mrb[78].mxu1 }
0x1b9b   : > { %v3160_v40 = vpop.f32.mrb[79].mxu1  ;;  %v3180_v51 = vsel %vm906_vm6, %v3173_v43, -inf }
0x1b9c   : > { %v3172_v45 = vmul.f32 0.25, %v3160_v40  ;;  %v3174_v49 = vsel %vm899_vm5, %v3171_v38, -inf }
0x1b9d   : > { %3175 = vmax.xlane.f32.xlu0 %v3174_v49 }
0x1b9e   : > { %v3177_v25 = vsel %vm899_vm5, %v3172_v45, -inf }
0x1b9f   : > { %3178 = vmax.xlane.f32.xlu1 %v3177_v25 }
0x1ba1   : > { %3181 = vmax.xlane.f32.xlu0 %v3180_v51 }
0x1ba8   : > { %v5901_v52 = vpop.f32.mrb[80].mxu1 }
0x1ba9   : > { %v3341_v53 = vmul.f32 0.25, %v5901_v52  ;;  %v3325_v47 = vpop.f32.mrb[81].mxu1 }
0x1baa   : > { %v3339_v24 = vmul.f32 0.25, %v3325_v47  ;;  %v5902_v44 = vpop.f32.mrb[82].mxu1 }
0x1bab   : > { %v3328_v54 = vpop.f32.mrb[83].mxu1  ;;  %v3348_v26 = vsel %vm906_vm6, %v3341_v53, -inf }
0x1bac   : > { %v3340_v59 = vmul.f32 0.25, %v3328_v54  ;;  %3349 = vmax.xlane.f32.xlu1 %v3348_v26  ;;  %v3342_v57 = vsel %vm899_vm5, %v3339_v24, -inf }
0x1bad   : > { %3343 = vmax.xlane.f32.xlu0 %v3342_v57 }
0x1bae   : > { %v3345_v60 = vsel %vm899_vm5, %v3340_v59, -inf }
0x1bb1   : > { %3346 = vmax.xlane.f32.xlu0 %v3345_v60 }
0x1c2a   : > { %v3176_v61 = vpop.xlane.xlu0 %3175 }
0x1c2b   : > { %v3183_v22 = vsub.f32 %v3171_v38, %v3176_v61 }
0x1c2c   : > { %v3179_v58 = vpop.xlane.xlu1 %3178 }
0x1c2d   : > { %v3184_v10 = vsub.f32 %v3172_v45, %v3179_v58  ;;  %v3186_v21 = vmul.f32 1.442695, %v3183_v22 }
0x1c2e   : > { %v3182_v8 = vpop.xlane.xlu0 %3181 }
0x1c2f   : > { %v3188_v30 = vmul.f32 1.442695, %v3184_v10  ;;  %v3185_v9 = vsub.f32 %v3173_v43, %v3182_v8 }
0x1c31   : > { %6367 = vpow2.f32 %v3188_v30  ;;  %v3190_v15 = vmul.f32 1.442695, %v3185_v9 }
0x1c33   : > { %6369 = vpow2.f32 %v3190_v15 }
0x1c34   : > { %6371 = vpow2.f32 %v3186_v21 }
0x1c39   : > { %v3350_v41 = vpop.xlane.xlu1 %3349 }
0x1c3a   : > { %v3353_v20 = vsub.f32 %v3341_v53, %v3350_v41  ;;  %v3344_v6 = vpop.xlane.xlu0 %3343 }
0x1c3b   : > { %v6368_v1 = vpop.eup %6367  ;;  %v3351_v14 = vsub.f32 %v3339_v24, %v3344_v6 }
0x1c3c   : > { %v3358_v62 = vmul.f32 1.442695, %v3353_v20  ;;  %v3195_v29 = vsel %vm899_vm5, %v6368_v1, 0.0 }
0x1c3d   : > { %v6370_v18 = vpop.eup %6369  ;;  %v3354_v56 = vmul.f32 1.442695, %v3351_v14  ;;  %3196 = vadd.xlane.f32.xlu1 %v3195_v29 }
0x1c3e   : > { %6373 = vpow2.f32 %v3358_v62  ;;  %v3347_v33 = vpop.xlane.xlu0 %3346  ;;  %v3198_v2 = vsel %vm906_vm6, %v6370_v18, 0.0  ;;  %v6372_v32 = vpop.eup %6371 }
0x1c3f   : > { %v3352_v27 = vsub.f32 %v3340_v59, %v3347_v33  ;;  %3199 = vadd.xlane.f32.xlu0 %v3198_v2  ;;  %6375 = vpow2.f32 %v3354_v56  ;;  %v3192_v38 = vsel %vm899_vm5, %v6372_v32, 0.0 }
0x1c41   : > { %v3356_v31 = vmul.f32 1.442695, %v3352_v27 }
0x1c43   : > { %6377 = vpow2.f32 %v3356_v31  ;;  %3193 = vadd.xlane.f32.xlu0 %v3192_v38 }
0x1c48   : > { %v6374_v42 = vpop.eup %6373 }
0x1c49   : > { %v3366_v40 = vsel %vm906_vm6, %v6374_v42, 0.0  ;;  %v6376_v43 = vpop.eup %6375 }
0x1c4a   : > { %3367 = vadd.xlane.f32.xlu1 %v3366_v40  ;;  %v3360_v49 = vsel %vm899_vm5, %v6376_v43, 0.0 }
0x1c4d   : > { %v6378_v45 = vpop.eup %6377 }
0x1c4e   : > { %3361 = vadd.xlane.f32.xlu1 %v3360_v49  ;;  %v3363_v25 = vsel %vm899_vm5, %v6378_v45, 0.0 }
0x1c4f   : > { %3364 = vadd.xlane.f32.xlu0 %v3363_v25 }
0x1c5f   : > { %3381 = vrot.lane.b32.xlu1 %v7503_v37, %s6564_s24 }
0x1c63   : > { %3460 = vrot.lane.b32.xlu1 %v7483_v50, %s8095_s14 }
0x1c65   : > { %3379 = vrot.lane.b32.xlu0 %v7485_v12, %s6564_s24 }
0x1c67   : > { %3462 = vrot.lane.b32.xlu1 %v7500_v36, %s8095_s14 }
0x1c69   : > { %3456 = vrot.lane.b32.xlu0 %v7483_v50, %s8096_s16 }
0x1c6b   : > { %3458 = vrot.lane.b32.xlu1 %v7500_v36, %s8096_s16 }
0x1cca   : > { %v3197_v51 = vpop.xlane.xlu1 %3196 }
0x1ccc   : > { %v3200_v52 = vpop.xlane.xlu0 %3199 }
0x1ccd   : > { %6379 = vrcp.f32 %v3200_v52 }
0x1cce   : > { %6381 = vrcp.f32 %v3197_v51 }
0x1cd0   : > { %v3194_v53 = vpop.xlane.xlu0 %3193 }
0x1cd1   : > { %6383 = vrcp.f32 %v3194_v53 }
0x1cd7   : > { %v3368_v47 = vpop.xlane.xlu1 %3367  ;;  %v6380_v24 = vpop.eup %6379 }
0x1cd8   : > { %v6382_v44 = vpop.eup %6381  ;;  %6385 = vrcp.f32 %v3368_v47  ;;  %v3206_v26 = vmul.f32 %v6380_v24, %v6370_v18 }
0x1cd9   : > { %v3205_v61 = vmul.f32 %v6382_v44, %v6368_v1 }
0x1cda   : > { %v3208_v22 = vpack.c.bf16 %v3206_v26, %v3206_v26 }
0x1cdb   : > { %v6384_v54 = vpop.eup %6383  ;;  %v3362_v59 = vpop.xlane.xlu1 %3361 }
0x1cdc   : > { %6387 = vrcp.f32 %v3362_v59  ;;  %v3365_v57 = vpop.xlane.xlu0 %3364  ;;  %v3204_v60 = vmul.f32 %v6384_v54, %v6372_v32 }
0x1cdd   : > { %6389 = vrcp.f32 %v3365_v57 }
0x1cde   : > { %v3207_v58 = vpack.c.bf16 %v3205_v61, %v3204_v60 }
0x1cdf   : > { %v3382_v10 = vpop.permute.xlu1 %3381 }
0x1ce0   : > { %v3391_v8 = vand.u32 %v3382_v10, %v6867_v48  ;;  %v3380_v30 = vpop.permute.xlu0 %3379  ;;  %5891 = vmatprep.mubr.msk.bf16.mxu0 %vm899_vm5, %v3207_v58 }
0x1ce1   : > { %5892 = vmatmul.mubr.msk.bf16.vlgmr.msra.gmra.mrb[60].mxu0 %vm899_vm5, %v3208_v22  ;;  %5903 = vmatprep.subr.bf16.mxu0 %v3380_v30 }
0x1ce2   : > { %5904 = vmatpush3.bf16.msra.mxu0 %v3380_v30  ;;  %v6386_v9 = vpop.eup %6385 }
0x1ce3   : > { %5905 = vmatprep.subr.bf16.mxu0 %v3391_v8  ;;  %v3461_v15 = vpop.permute.xlu1 %3460  ;;  %v3374_v6 = vmul.f32 %v6386_v9, %v6374_v42 }
0x1ce4   : > { %v3457_v29 = vpop.permute.xlu0 %3456  ;;  %v3471_v18 = vsel %vm835_vm2, %v3461_v15, 0 }
0x1ce5   : > { %v3376_v62 = vpack.c.bf16 %v3374_v6, %v3374_v6 }
0x1ce6   : > { %v6388_v21 = vpop.eup %6387  ;;  %5906 = vmatpush3.bf16.msra.mxu0 %v3391_v8 }
0x1ce7   : > { %v6390_v41 = vpop.eup %6389  ;;  %6047 = vmatprep.subr.msk.bf16.mxu0 %vm835_vm2, %v3461_v15  ;;  %v3372_v20 = vmul.f32 %v6388_v21, %v6376_v43  ;;  %v3463_v56 = vpop.permute.xlu1 %3462 }
0x1ce8   : > { %v3373_v1 = vmul.f32 %v6390_v41, %v6378_v45  ;;  %v3474_v33 = vsel %vm835_vm2, %v3463_v56, 0 }
0x1cea   : > { %v3375_v14 = vpack.c.bf16 %v3373_v1, %v3372_v20 }
0x1ceb   : > { %v3459_v2 = vpop.permute.xlu1 %3458 }
0x1cec   : > { %5907 = vmatprep.mubr.msk.bf16.mxu0 %vm899_vm5, %v3375_v14 }
0x1ced   : > { %5908 = vmatmul.mubr.msk.bf16.vlgmr.msra.gmra.mrb[64].mxu0 %vm899_vm5, %v3376_v62 }
0x1cee   : > { %5915 = vmatprep.mubr.msk.bf16.mxu0 %vm835_vm2, %v3457_v29 }
0x1cef   : > { %5912 = vmatpush3.bf16.xpose.msra.mxu0 %v3471_v18 }
0x1cf0   : > { %6048 = vmatprep.subr.msk.bf16.mxu0 %vm835_vm2, %v3463_v56 }
0x1cf7   : > { %5914 = vmatpush3.bf16.xpose.msra.mxu0 %v3474_v33 }
0x1cfe   : > { %5916 = vmatmul.mubr.msk.bf16.vlgmr.msra.gmra.mrb[68].mxu0 %vm835_vm2, %v3459_v2 }
0x1db4   : > { %v5893_v32 = vpop.f32.mrb[60].mxu0 }
0x1db5   : > { %3270 = vst.msk [vmem:[#allocation2 + $0x10] sm:$0x1] %vm1000_vm7, %v5893_v32  ;;  %v3254_v27 = vpop.f32.mrb[61].mxu0 }
0x1db6   : > { %3268 = vst.msk [vmem:[#allocation2] sm:$0xff] %vm835_vm2, %v3254_v27  ;;  %v5894_v31 = vpop.f32.mrb[62].mxu0 }
0x1db7   : > { %v3257_v38 = vpop.f32.mrb[63].mxu0 }
0x1db8   : > { %3269 = vst.msk [vmem:[#allocation2 + $0x8] sm:$0xff] %vm835_vm2, %v3257_v38 }
0x1dc0   : > { %v7578_v42 = vpop.f32.mrb[64].mxu0 }
0x1dc1   : > { %v7580_v40 = vpop.f32.mrb[65].mxu0 }
0x1dc2   : > { %v5910_v43 = vpop.f32.mrb[66].mxu0 }
0x1dc3   : > { %v7582_v45 = vpop.f32.mrb[67].mxu0 }
0x1dd1   : > { %v5917_v49 = vpop.f32.mrb[68].mxu0 }
0x1dd2   : > { %v3510_v25 = vpop.f32.mrb[69].mxu0  ;;  %v3526_v47 = vmul.f32 0.25, %v5917_v49 }
0x1dd3   : > { %v3524_v51 = vmul.f32 0.25, %v3510_v25  ;;  %v5918_v52 = vpop.f32.mrb[70].mxu0 }
0x1dd4   : > { %v3513_v53 = vpop.f32.mrb[71].mxu0  ;;  %v3533_v26 = vsel %vm906_vm6, %v3526_v47, -inf }
0x1dd5   : > { %v3525_v24 = vmul.f32 0.25, %v3513_v53  ;;  %v3527_v44 = vsel %vm899_vm5, %v3524_v51, -inf  ;;  %v7612_v53 = vshrl.u32 %v7530_v3, 16 }
0x1dd6   : > { %3528 = vmax.xlane.f32.xlu0 %v3527_v44 }
0x1dd7   : > { %v3530_v54 = vsel %vm899_vm5, %v3525_v24, -inf }
0x1dd8   : > { %3531 = vmax.xlane.f32.xlu1 %v3530_v54 }
0x1dda   : > { %3534 = vmax.xlane.f32.xlu0 %v3533_v26 }
0x1e63   : > { %v3529_v59 = vpop.xlane.xlu0 %3528 }
0x1e64   : > { %v3536_v57 = vsub.f32 %v3524_v51, %v3529_v59 }
0x1e65   : > { %v3532_v60 = vpop.xlane.xlu1 %3531 }
0x1e66   : > { %v3539_v61 = vmul.f32 1.442695, %v3536_v57  ;;  %v3537_v58 = vsub.f32 %v3525_v24, %v3532_v60  ;;  %v3964_v24 = vand.u32 %v7612_v53, %v6867_v48 }
0x1e67   : > { %v3535_v22 = vpop.xlane.xlu0 %3534 }
0x1e68   : > { %6391 = vpow2.f32 %v3539_v61  ;;  %v3541_v10 = vmul.f32 1.442695, %v3537_v58  ;;  %v3538_v8 = vsub.f32 %v3526_v47, %v3535_v22 }
0x1e6a   : > { %6393 = vpow2.f32 %v3541_v10  ;;  %v3543_v30 = vmul.f32 1.442695, %v3538_v8 }
0x1e6c   : > { %6395 = vpow2.f32 %v3543_v30 }
0x1e72   : > { %v6392_v9 = vpop.eup %6391 }
0x1e73   : > { %v3545_v21 = vsel %vm899_vm5, %v6392_v9, 0.0 }
0x1e74   : > { %v6394_v15 = vpop.eup %6393  ;;  %3546 = vadd.xlane.f32.xlu0 %v3545_v21 }
0x1e75   : > { %v3548_v6 = vsel %vm899_vm5, %v6394_v15, 0.0 }
0x1e76   : > { %v6396_v41 = vpop.eup %6395 }
0x1e77   : > { %v3551_v20 = vsel %vm906_vm6, %v6396_v41, 0.0 }
0x1e78   : > { %3552 = vadd.xlane.f32.xlu1 %v3551_v20  ;;  %3549 = vadd.xlane.f32.xlu0 %v3548_v6 }
0x1e89   : > { %3564 = vrot.lane.b32.xlu1 %v7503_v37, %s8096_s16 }
0x1e8d   : > { %3643 = vrot.lane.b32.xlu1 %v7483_v50, %s8097_s25 }
0x1e8e   : > { %3562 = vrot.lane.b32.xlu0 %v7485_v12, %s8096_s16 }
0x1e91   : > { %3645 = vrot.lane.b32.xlu1 %v7500_v36, %s8097_s25 }
0x1e92   : > { %3639 = vrot.lane.b32.xlu0 %v7483_v50, %s8098_s12 }
0x1e95   : > { %3641 = vrot.lane.b32.xlu1 %v7500_v36, %s8098_s12 }
0x1f01   : > { %v3547_v1 = vpop.xlane.xlu0 %3546 }
0x1f02   : > { %6397 = vrcp.f32 %v3547_v1 }
0x1f05   : > { %v3550_v14 = vpop.xlane.xlu0 %3549  ;;  %v3553_v62 = vpop.xlane.xlu1 %3552 }
0x1f06   : > { %6399 = vrcp.f32 %v3550_v14 }
0x1f07   : > { %6401 = vrcp.f32 %v3553_v62 }
0x1f09   : > { %v3563_v29 = vpop.permute.xlu0 %3562  ;;  %v3565_v18 = vpop.permute.xlu1 %3564 }
0x1f0a   : > { %v3574_v56 = vand.u32 %v3565_v18, %v6867_v48  ;;  %5919 = vmatprep.subr.bf16.mxu1 %v3563_v29 }
0x1f0b   : > { %5920 = vmatpush3.bf16.msra.mxu1 %v3563_v29 }
0x1f0c   : > { %5921 = vmatprep.subr.bf16.mxu1 %v3574_v56  ;;  %v6398_v33 = vpop.eup %6397 }
0x1f0d   : > { %v3644_v2 = vpop.permute.xlu1 %3643  ;;  %v3557_v32 = vmul.f32 %v6398_v33, %v6392_v9  ;;  %v3640_v49 = vpop.permute.xlu0 %3639 }
0x1f0e   : > { %v3654_v25 = vsel %vm835_vm2, %v3644_v2, 0 }
0x1f0f   : > { %5922 = vmatpush3.bf16.msra.mxu1 %v3574_v56 }
0x1f10   : > { %v6400_v50 = vpop.eup %6399  ;;  %6049 = vmatprep.subr.msk.bf16.mxu1 %vm835_vm2, %v3644_v2 }
0x1f11   : > { %v6402_v36 = vpop.eup %6401  ;;  %v3558_v27 = vmul.f32 %v6400_v50, %v6394_v15  ;;  %v3646_v51 = vpop.permute.xlu1 %3645 }
0x1f12   : > { %v3559_v31 = vmul.f32 %v6402_v36, %v6396_v41  ;;  %v3657_v52 = vsel %vm835_vm2, %v3646_v51, 0 }
0x1f13   : > { %v3560_v38 = vpack.c.bf16 %v3558_v27, %v3557_v32  ;;  %v7637_v32 = vshrl.u32 %v7528_v7, 16 }
0x1f14   : > { %v3561_v43 = vpack.c.bf16 %v3559_v31, %v3559_v31 }
0x1f15   : > { %5923 = vmatprep.mubr.msk.bf16.mxu1 %vm899_vm5, %v3560_v38  ;;  %v3642_v47 = vpop.permute.xlu1 %3641 }
0x1f16   : > { %5924 = vmatmul.mubr.msk.bf16.vlgmr.msra.gmra.mrb[84].mxu1 %vm899_vm5, %v3561_v43 }
0x1f17   : > { %5931 = vmatprep.mubr.msk.bf16.mxu1 %vm835_vm2, %v3640_v49 }
0x1f18   : > { %5928 = vmatpush3.bf16.xpose.msra.mxu1 %v3654_v25 }
0x1f19   : > { %6050 = vmatprep.subr.msk.bf16.mxu1 %vm835_vm2, %v3646_v51 }
0x1f20   : > { %5930 = vmatpush3.bf16.xpose.msra.mxu1 %v3657_v52 }
0x1f21   : > { %5951 = vmatprep.subr.bf16.mxu1 %v7538_v23 }
0x1f27   : > { %5932 = vmatmul.mubr.msk.bf16.vlgmr.msra.gmra.mrb[88].mxu1 %vm835_vm2, %v3642_v47 }
0x1f28   : > { %5952 = vmatpush3.bf16.msra.mxu1 %v7538_v23 }
0x1f29   : > { %5953 = vmatprep.subr.bf16.mxu1 %v3964_v24 }
0x1f2c   : > { %5954 = vmatpush3.bf16.msra.mxu1 %v3964_v24 }
0x1fe9   : > { %v7618_v44 = vpop.f32.mrb[84].mxu1 }
0x1fea   : > { %v7620_v54 = vpop.f32.mrb[85].mxu1 }
0x1feb   : > { %v5926_v26 = vpop.f32.mrb[86].mxu1 }
0x1fec   : > { %v7622_v59 = vpop.f32.mrb[87].mxu1 }
0x1ffa   : > { %v5933_v57 = vpop.f32.mrb[88].mxu1 }
0x1ffb   : > { %v3693_v3 = vpop.f32.mrb[89].mxu1  ;;  %v3709_v22 = vmul.f32 0.25, %v5933_v57 }
0x1ffc   : > { %v3707_v60 = vmul.f32 0.25, %v3693_v3  ;;  %v5934_v61 = vpop.f32.mrb[90].mxu1 }
0x1ffd   : > { %v3696_v58 = vpop.f32.mrb[91].mxu1  ;;  %v3716_v9 = vsel %vm906_vm6, %v3709_v22, -inf }
0x1ffe   : > { %v3708_v10 = vmul.f32 0.25, %v3696_v58  ;;  %v3710_v8 = vsel %vm899_vm5, %v3707_v60, -inf }
0x1fff   : > { %3711 = vmax.xlane.f32.xlu0 %v3710_v8 }
0x2000   : > { %v3713_v30 = vsel %vm899_vm5, %v3708_v10, -inf }
0x2001   : > { %3714 = vmax.xlane.f32.xlu1 %v3713_v30 }
0x2003   : > { %3717 = vmax.xlane.f32.xlu0 %v3716_v9 }
0x208c   : > { %v3712_v21 = vpop.xlane.xlu0 %3711 }
0x208d   : > { %v3719_v15 = vsub.f32 %v3707_v60, %v3712_v21 }
0x208e   : > { %v3715_v41 = vpop.xlane.xlu1 %3714 }
0x208f   : > { %v3722_v20 = vmul.f32 1.442695, %v3719_v15  ;;  %v3720_v6 = vsub.f32 %v3708_v10, %v3715_v41 }
0x2090   : > { %v3718_v1 = vpop.xlane.xlu0 %3717 }
0x2091   : > { %6403 = vpow2.f32 %v3722_v20  ;;  %v3724_v14 = vmul.f32 1.442695, %v3720_v6  ;;  %v3721_v62 = vsub.f32 %v3709_v22, %v3718_v1 }
0x2093   : > { %6405 = vpow2.f32 %v3724_v14  ;;  %v3726_v29 = vmul.f32 1.442695, %v3721_v62 }
0x2095   : > { %6407 = vpow2.f32 %v3726_v29 }
0x209b   : > { %v6404_v18 = vpop.eup %6403 }
0x209c   : > { %v3728_v56 = vsel %vm899_vm5, %v6404_v18, 0.0 }
0x209d   : > { %v6406_v33 = vpop.eup %6405  ;;  %3729 = vadd.xlane.f32.xlu0 %v3728_v56 }
0x209e   : > { %v3731_v36 = vsel %vm899_vm5, %v6406_v33, 0.0 }
0x209f   : > { %v6408_v2 = vpop.eup %6407 }
0x20a0   : > { %v3734_v50 = vsel %vm906_vm6, %v6408_v2, 0.0 }
0x20a1   : > { %3735 = vadd.xlane.f32.xlu1 %v3734_v50  ;;  %3732 = vadd.xlane.f32.xlu0 %v3731_v36 }
0x20b2   : > { %3747 = vrot.lane.b32.xlu1 %v7503_v37, %s8098_s12 }
0x20b6   : > { %3838 = vrot.lane.b32.xlu1 %v7535_v0, %s6562_s30 }
0x20b7   : > { %3745 = vrot.lane.b32.xlu0 %v7485_v12, %s8098_s12 }
0x20ba   : > { %3840 = vrot.lane.b32.xlu1 %v7637_v32, %s6562_s30 }
0x212a   : > { %v3730_v27 = vpop.xlane.xlu0 %3729 }
0x212b   : > { %6409 = vrcp.f32 %v3730_v27 }
0x212e   : > { %v3733_v31 = vpop.xlane.xlu0 %3732  ;;  %v3736_v38 = vpop.xlane.xlu1 %3735 }
0x212f   : > { %6411 = vrcp.f32 %v3733_v31 }
0x2130   : > { %6413 = vrcp.f32 %v3736_v38 }
0x2132   : > { %v3746_v43 = vpop.permute.xlu0 %3745  ;;  %v3748_v37 = vpop.permute.xlu1 %3747 }
0x2133   : > { %v3757_v49 = vand.u32 %v3748_v37, %v6867_v48  ;;  %5935 = vmatprep.subr.bf16.mxu0 %v3746_v43 }
0x2134   : > { %5936 = vmatpush3.bf16.msra.mxu0 %v3746_v43 }
0x2135   : > { %5937 = vmatprep.subr.bf16.mxu0 %v3757_v49  ;;  %v6410_v12 = vpop.eup %6409 }
0x2136   : > { %v3839_v25 = vpop.permute.xlu1 %3838  ;;  %v3740_v52 = vmul.f32 %v6410_v12, %v6404_v18 }
0x2137   : > { %v3849_v3 = vsel %vm835_vm2, %v3839_v25, 0 }
0x2138   : > { %5938 = vmatpush3.bf16.msra.mxu0 %v3757_v49 }
0x2139   : > { %v6412_v7 = vpop.eup %6411  ;;  %6051 = vmatprep.subr.msk.bf16.mxu0 %vm835_vm2, %v3839_v25 }
0x213a   : > { %v6414_v51 = vpop.eup %6413  ;;  %v3741_v47 = vmul.f32 %v6412_v7, %v6406_v33  ;;  %v3841_v60 = vpop.permute.xlu1 %3840 }
0x213b   : > { %v3742_v24 = vmul.f32 %v6414_v51, %v6408_v2  ;;  %v3852_v61 = vsel %vm835_vm2, %v3841_v60, 0 }
0x213c   : > { %v3743_v26 = vpack.c.bf16 %v3741_v47, %v3740_v52 }
0x213d   : > { %v3744_v57 = vpack.c.bf16 %v3742_v24, %v3742_v24 }
0x213e   : > { %5939 = vmatprep.mubr.msk.bf16.mxu0 %vm899_vm5, %v3743_v26 }
0x213f   : > { %5940 = vmatmul.mubr.msk.bf16.vlgmr.msra.gmra.mrb[72].mxu0 %vm899_vm5, %v3744_v57 }
0x2140   : > { %5947 = vmatprep.mubr.msk.bf16.mxu0 %vm835_vm2, %v7535_v0 }
0x2141   : > { %5944 = vmatpush3.bf16.xpose.msra.mxu0 %v3849_v3 }
0x2142   : > { %6052 = vmatprep.subr.msk.bf16.mxu0 %vm835_vm2, %v3841_v60 }
0x2149   : > { %5946 = vmatpush3.bf16.xpose.msra.mxu0 %v3852_v61 }
0x2150   : > { %5948 = vmatmul.mubr.msk.bf16.vlgmr.msra.gmra.mrb[76].mxu0 %vm835_vm2, %v7637_v32 }
0x2212   : > { %v7652_v58 = vpop.f32.mrb[72].mxu0 }
0x2213   : > { %v7654_v22 = vpop.f32.mrb[73].mxu0 }
0x2214   : > { %v5942_v10 = vpop.f32.mrb[74].mxu0 }
0x2215   : > { %v7656_v8 = vpop.f32.mrb[75].mxu0 }
0x2223   : > { %v5949_v30 = vpop.f32.mrb[76].mxu0 }
0x2224   : > { %v3888_v9 = vpop.f32.mrb[77].mxu0  ;;  %v3904_v20 = vmul.f32 0.25, %v5949_v30 }
0x2225   : > { %v3902_v21 = vmul.f32 0.25, %v3888_v9  ;;  %v5950_v15 = vpop.f32.mrb[78].mxu0 }
0x2226   : > { %v3891_v41 = vpop.f32.mrb[79].mxu0  ;;  %v3911_v62 = vsel %vm906_vm6, %v3904_v20, -inf }
0x2227   : > { %v3903_v6 = vmul.f32 0.25, %v3891_v41  ;;  %v3905_v1 = vsel %vm899_vm5, %v3902_v21, -inf }
0x2228   : > { %3906 = vmax.xlane.f32.xlu0 %v3905_v1 }
0x2229   : > { %v3908_v14 = vsel %vm899_vm5, %v3903_v6, -inf }
0x222a   : > { %3909 = vmax.xlane.f32.xlu1 %v3908_v14 }
0x222c   : > { %3912 = vmax.xlane.f32.xlu0 %v3911_v62 }
0x22b5   : > { %v3907_v29 = vpop.xlane.xlu0 %3906 }
0x22b6   : > { %v3914_v18 = vsub.f32 %v3902_v21, %v3907_v29 }
0x22b7   : > { %v3910_v56 = vpop.xlane.xlu1 %3909 }
0x22b8   : > { %v3917_v33 = vmul.f32 1.442695, %v3914_v18  ;;  %v3915_v2 = vsub.f32 %v3903_v6, %v3910_v56 }
0x22b9   : > { %v3913_v50 = vpop.xlane.xlu0 %3912 }
0x22ba   : > { %6415 = vpow2.f32 %v3917_v33  ;;  %v3919_v36 = vmul.f32 1.442695, %v3915_v2  ;;  %v3916_v27 = vsub.f32 %v3904_v20, %v3913_v50 }
0x22bc   : > { %6417 = vpow2.f32 %v3919_v36  ;;  %v3921_v31 = vmul.f32 1.442695, %v3916_v27 }
0x22be   : > { %6419 = vpow2.f32 %v3921_v31 }
0x22c4   : > { %v6416_v38 = vpop.eup %6415 }
0x22c5   : > { %v3923_v43 = vsel %vm899_vm5, %v6416_v38, 0.0 }
0x22c6   : > { %v6418_v37 = vpop.eup %6417  ;;  %3924 = vadd.xlane.f32.xlu0 %v3923_v43 }
0x22c7   : > { %v3926_v25 = vsel %vm899_vm5, %v6418_v37, 0.0 }
0x22c8   : > { %v6420_v49 = vpop.eup %6419 }
0x22c9   : > { %v3929_v12 = vsel %vm906_vm6, %v6420_v49, 0.0 }
0x22ca   : > { %3930 = vadd.xlane.f32.xlu1 %v3929_v12  ;;  %3927 = vadd.xlane.f32.xlu0 %v3926_v25 }
0x22db   : > { %4023 = vrot.lane.b32.xlu1 %v7637_v32, %s6563_s22 }
0x22df   : > { %4017 = vrot.lane.b32.xlu1 %v7535_v0, %s6564_s24 }
0x22e0   : > { %4021 = vrot.lane.b32.xlu0 %v7535_v0, %s6563_s22 }
0x22e3   : > { %4019 = vrot.lane.b32.xlu1 %v7637_v32, %s6564_s24 }
0x2353   : > { %v3925_v7 = vpop.xlane.xlu0 %3924 }
0x2354   : > { %6421 = vrcp.f32 %v3925_v7 }
0x2357   : > { %v3928_v51 = vpop.xlane.xlu0 %3927  ;;  %v3931_v52 = vpop.xlane.xlu1 %3930 }
0x2358   : > { %6423 = vrcp.f32 %v3928_v51 }
0x2359   : > { %6425 = vrcp.f32 %v3931_v52 }
0x235b   : > { %v4022_v47 = vpop.permute.xlu0 %4021  ;;  %v4024_v57 = vpop.permute.xlu1 %4023 }
0x235c   : > { %6053 = vmatprep.subr.msk.bf16.mxu1 %vm835_vm2, %v4022_v47  ;;  %v4032_v21 = vsel %vm835_vm2, %v4022_v47, 0  ;;  %v4035_v41 = vsel %vm835_vm2, %v4024_v57, 0 }
0x235e   : > { %v6422_v24 = vpop.eup %6421 }
0x235f   : > { %v3935_v60 = vmul.f32 %v6422_v24, %v6416_v38  ;;  %v4018_v15 = vpop.permute.xlu1 %4017 }
0x2362   : > { %v6424_v26 = vpop.eup %6423 }
0x2363   : > { %v6426_v3 = vpop.eup %6425  ;;  %v3936_v61 = vmul.f32 %v6424_v26, %v6418_v37  ;;  %v4020_v20 = vpop.permute.xlu1 %4019 }
0x2364   : > { %v3937_v10 = vmul.f32 %v6426_v3, %v6420_v49 }
0x2365   : > { %v3938_v30 = vpack.c.bf16 %v3936_v61, %v3935_v60 }
0x2366   : > { %v3939_v9 = vpack.c.bf16 %v3937_v10, %v3937_v10 }
0x2367   : > { %5955 = vmatprep.mubr.msk.bf16.mxu1 %vm899_vm5, %v3938_v30 }
0x2368   : > { %5956 = vmatmul.mubr.msk.bf16.vlgmr.msra.gmra.mrb[92].mxu1 %vm899_vm5, %v3939_v9 }
0x2369   : > { %5960 = vmatpush3.bf16.xpose.msra.mxu1 %v4032_v21  ;;  %5963 = vmatprep.mubr.msk.bf16.mxu1 %vm835_vm2, %v4018_v15 }
0x236a   : > { %6054 = vmatprep.subr.msk.bf16.mxu1 %vm835_vm2, %v4024_v57 }
0x2371   : > { %5962 = vmatpush3.bf16.xpose.msra.mxu1 %v4035_v41 }
0x2378   : > { %5964 = vmatmul.mubr.msk.bf16.vlgmr.msra.gmra.mrb[96].mxu1 %vm835_vm2, %v4020_v20 }
0x243b   : > { %v5957_v6 = vpop.f32.mrb[92].mxu1 }
0x243c   : > { %4016 = vst.msk [vmem:[#allocation2 + $0x21] sm:$0x1] %vm1000_vm7, %v5957_v6  ;;  %v4000_v1 = vpop.f32.mrb[93].mxu1 }
0x243d   : > { %4014 = vst.msk [vmem:[#allocation2 + $0x11] sm:$0xff] %vm835_vm2, %v4000_v1  ;;  %v5958_v14 = vpop.f32.mrb[94].mxu1 }
0x243e   : > { %v4003_v62 = vpop.f32.mrb[95].mxu1 }
0x243f   : > { %4015 = vst.msk [vmem:[#allocation2 + $0x19] sm:$0xff] %vm835_vm2, %v4003_v62 }
0x244b   : > { %v5965_v29 = vpop.f32.mrb[96].mxu1 }
0x244c   : > { %v4071_v18 = vpop.f32.mrb[97].mxu1  ;;  %v4087_v50 = vmul.f32 0.25, %v5965_v29 }
0x244d   : > { %v4085_v56 = vmul.f32 0.25, %v4071_v18  ;;  %v5966_v33 = vpop.f32.mrb[98].mxu1 }
0x244e   : > { %v4074_v2 = vpop.f32.mrb[99].mxu1  ;;  %v4094_v38 = vsel %vm906_vm6, %v4087_v50, -inf }
0x244f   : > { %v4086_v36 = vmul.f32 0.25, %v4074_v2  ;;  %v4088_v27 = vsel %vm899_vm5, %v4085_v56, -inf }
0x2450   : > { %4089 = vmax.xlane.f32.xlu0 %v4088_v27 }
0x2451   : > { %v4091_v31 = vsel %vm899_vm5, %v4086_v36, -inf }
0x2452   : > { %4092 = vmax.xlane.f32.xlu1 %v4091_v31 }
0x2454   : > { %4095 = vmax.xlane.f32.xlu0 %v4094_v38 }
0x24dd   : > { %v4090_v43 = vpop.xlane.xlu0 %4089 }
0x24de   : > { %v4097_v37 = vsub.f32 %v4085_v56, %v4090_v43 }
0x24df   : > { %v4093_v49 = vpop.xlane.xlu1 %4092 }
0x24e0   : > { %v4100_v12 = vmul.f32 1.442695, %v4097_v37  ;;  %v4098_v25 = vsub.f32 %v4086_v36, %v4093_v49 }
0x24e1   : > { %v4096_v7 = vpop.xlane.xlu0 %4095 }
0x24e2   : > { %6427 = vpow2.f32 %v4100_v12  ;;  %v4102_v51 = vmul.f32 1.442695, %v4098_v25  ;;  %v4099_v52 = vsub.f32 %v4087_v50, %v4096_v7 }
0x24e4   : > { %6429 = vpow2.f32 %v4102_v51  ;;  %v4104_v47 = vmul.f32 1.442695, %v4099_v52 }
0x24e6   : > { %6431 = vpow2.f32 %v4104_v47 }
0x24ec   : > { %v6428_v24 = vpop.eup %6427 }
0x24ed   : > { %v4106_v26 = vsel %vm899_vm5, %v6428_v24, 0.0 }
0x24ee   : > { %v6430_v57 = vpop.eup %6429  ;;  %4107 = vadd.xlane.f32.xlu0 %v4106_v26 }
0x24ef   : > { %v4109_v61 = vsel %vm899_vm5, %v6430_v57, 0.0 }
0x24f0   : > { %v6432_v3 = vpop.eup %6431 }
0x24f1   : > { %v4112_v60 = vsel %vm906_vm6, %v6432_v3, 0.0 }
0x24f2   : > { %4113 = vadd.xlane.f32.xlu1 %v4112_v60  ;;  %4110 = vadd.xlane.f32.xlu0 %v4109_v61 }
0x2503   : > { %4125 = vrot.lane.b32.xlu1 %v7612_v53, %s6564_s24 }
0x2507   : > { %4204 = vrot.lane.b32.xlu1 %v7535_v0, %s8095_s14 }
0x2508   : > { %4123 = vrot.lane.b32.xlu0 %v7538_v23, %s6564_s24 }
0x250b   : > { %4206 = vrot.lane.b32.xlu1 %v7637_v32, %s8095_s14 }
0x250c   : > { %4200 = vrot.lane.b32.xlu0 %v7535_v0, %s8096_s16 }
0x250f   : > { %4202 = vrot.lane.b32.xlu1 %v7637_v32, %s8096_s16 }
0x257b   : > { %v4108_v10 = vpop.xlane.xlu0 %4107 }
0x257c   : > { %6433 = vrcp.f32 %v4108_v10 }
0x257f   : > { %v4111_v30 = vpop.xlane.xlu0 %4110  ;;  %v4114_v9 = vpop.xlane.xlu1 %4113 }
0x2580   : > { %6435 = vrcp.f32 %v4111_v30 }
0x2581   : > { %6437 = vrcp.f32 %v4114_v9 }
0x2583   : > { %v4124_v21 = vpop.permute.xlu0 %4123  ;;  %v4126_v15 = vpop.permute.xlu1 %4125 }
0x2584   : > { %v4135_v41 = vand.u32 %v4126_v15, %v6867_v48  ;;  %5967 = vmatprep.subr.bf16.mxu0 %v4124_v21 }
0x2585   : > { %5968 = vmatpush3.bf16.msra.mxu0 %v4124_v21 }
0x2586   : > { %5969 = vmatprep.subr.bf16.mxu0 %v4135_v41  ;;  %v6434_v20 = vpop.eup %6433 }
0x2587   : > { %v4205_v6 = vpop.permute.xlu1 %4204  ;;  %v4118_v62 = vmul.f32 %v6434_v20, %v6428_v24  ;;  %v4201_v2 = vpop.permute.xlu0 %4200 }
0x2588   : > { %v4215_v50 = vsel %vm835_vm2, %v4205_v6, 0 }
0x2589   : > { %5970 = vmatpush3.bf16.msra.mxu0 %v4135_v41 }
0x258a   : > { %v6436_v1 = vpop.eup %6435  ;;  %6055 = vmatprep.subr.msk.bf16.mxu0 %vm835_vm2, %v4205_v6 }
0x258b   : > { %v6438_v14 = vpop.eup %6437  ;;  %v4119_v29 = vmul.f32 %v6436_v1, %v6430_v57  ;;  %v4207_v36 = vpop.permute.xlu1 %4206 }
0x258c   : > { %v4120_v18 = vmul.f32 %v6438_v14, %v6432_v3  ;;  %v4218_v27 = vsel %vm835_vm2, %v4207_v36, 0 }
0x258d   : > { %v4121_v56 = vpack.c.bf16 %v4119_v29, %v4118_v62 }
0x258e   : > { %v4122_v33 = vpack.c.bf16 %v4120_v18, %v4120_v18 }
0x258f   : > { %5971 = vmatprep.mubr.msk.bf16.mxu0 %vm899_vm5, %v4121_v56  ;;  %v4203_v31 = vpop.permute.xlu1 %4202 }
0x2590   : > { %5972 = vmatmul.mubr.msk.bf16.vlgmr.msra.gmra.mrb[80].mxu0 %vm899_vm5, %v4122_v33 }
0x2591   : > { %5979 = vmatprep.mubr.msk.bf16.mxu0 %vm835_vm2, %v4201_v2 }
0x2592   : > { %5976 = vmatpush3.bf16.xpose.msra.mxu0 %v4215_v50 }
0x2593   : > { %6056 = vmatprep.subr.msk.bf16.mxu0 %vm835_vm2, %v4207_v36 }
0x259a   : > { %5978 = vmatpush3.bf16.xpose.msra.mxu0 %v4218_v27 }
0x25a1   : > { %5980 = vmatmul.mubr.msk.bf16.vlgmr.msra.gmra.mrb[84].mxu0 %vm835_vm2, %v4203_v31 }
0x2663   : > { %v7710_v38 = vpop.f32.mrb[80].mxu0 }
0x2664   : > { %v7712_v43 = vpop.f32.mrb[81].mxu0 }
0x2665   : > { %v5974_v37 = vpop.f32.mrb[82].mxu0 }
0x2666   : > { %v7714_v49 = vpop.f32.mrb[83].mxu0 }
0x2674   : > { %v5981_v12 = vpop.f32.mrb[84].mxu0 }
0x2675   : > { %v4254_v25 = vpop.f32.mrb[85].mxu0  ;;  %v4270_v47 = vmul.f32 0.25, %v5981_v12 }
0x2676   : > { %v4268_v7 = vmul.f32 0.25, %v4254_v25  ;;  %v5982_v51 = vpop.f32.mrb[86].mxu0 }
0x2677   : > { %v4257_v52 = vpop.f32.mrb[87].mxu0  ;;  %v4277_v3 = vsel %vm906_vm6, %v4270_v47, -inf }
0x2678   : > { %v4269_v24 = vmul.f32 0.25, %v4257_v52  ;;  %v4271_v26 = vsel %vm899_vm5, %v4268_v7, -inf }
0x2679   : > { %4272 = vmax.xlane.f32.xlu0 %v4271_v26 }
0x267a   : > { %v4274_v57 = vsel %vm899_vm5, %v4269_v24, -inf }
0x267b   : > { %4275 = vmax.xlane.f32.xlu1 %v4274_v57 }
0x267d   : > { %4278 = vmax.xlane.f32.xlu0 %v4277_v3 }
0x2706   : > { %v4273_v60 = vpop.xlane.xlu0 %4272 }
0x2707   : > { %v4280_v61 = vsub.f32 %v4268_v7, %v4273_v60 }
0x2708   : > { %v4276_v10 = vpop.xlane.xlu1 %4275 }
0x2709   : > { %v4283_v30 = vmul.f32 1.442695, %v4280_v61  ;;  %v4281_v9 = vsub.f32 %v4269_v24, %v4276_v10 }
0x270a   : > { %v4279_v21 = vpop.xlane.xlu0 %4278 }
0x270b   : > { %6439 = vpow2.f32 %v4283_v30  ;;  %v4285_v15 = vmul.f32 1.442695, %v4281_v9  ;;  %v4282_v41 = vsub.f32 %v4270_v47, %v4279_v21 }
0x270d   : > { %6441 = vpow2.f32 %v4285_v15  ;;  %v4287_v20 = vmul.f32 1.442695, %v4282_v41 }
0x270f   : > { %6443 = vpow2.f32 %v4287_v20 }
0x2715   : > { %v6440_v6 = vpop.eup %6439 }
0x2716   : > { %v4289_v1 = vsel %vm899_vm5, %v6440_v6, 0.0 }
0x2717   : > { %v6442_v14 = vpop.eup %6441  ;;  %4290 = vadd.xlane.f32.xlu0 %v4289_v1 }
0x2718   : > { %v4292_v18 = vsel %vm899_vm5, %v6442_v14, 0.0 }
0x2719   : > { %v6444_v62 = vpop.eup %6443 }
0x271a   : > { %v4295_v29 = vsel %vm906_vm6, %v6444_v62, 0.0 }
0x271b   : > { %4296 = vadd.xlane.f32.xlu1 %v4295_v29  ;;  %4293 = vadd.xlane.f32.xlu0 %v4292_v18 }
0x272c   : > { %4308 = vrot.lane.b32.xlu1 %v7612_v53, %s8096_s16 }
0x2730   : > { %4387 = vrot.lane.b32.xlu1 %v7535_v0, %s8097_s25 }
0x2731   : > { %4306 = vrot.lane.b32.xlu0 %v7538_v23, %s8096_s16  ;;  %s377_s16 = sand.u32 1, %s6551_s18  }
0x2732   : > { %s5170_s23 = scalar_lea.sflag [#allocation4], %s377_s16 }
0x2734   : > { %4389 = vrot.lane.b32.xlu1 %v7637_v32, %s8097_s25 }
0x2735   : > { %4383 = vrot.lane.b32.xlu0 %v7535_v0, %s8098_s12 }
0x2738   : > { %4385 = vrot.lane.b32.xlu1 %v7637_v32, %s8098_s12 }
0x27a4   : > { %v4291_v56 = vpop.xlane.xlu0 %4290 }
0x27a5   : > { %6445 = vrcp.f32 %v4291_v56 }
0x27a8   : > { %v4294_v33 = vpop.xlane.xlu0 %4293  ;;  %v4297_v2 = vpop.xlane.xlu1 %4296 }
0x27a9   : > { %6447 = vrcp.f32 %v4294_v33 }
0x27aa   : > { %6449 = vrcp.f32 %v4297_v2 }
0x27ac   : > { %v4307_v50 = vpop.permute.xlu0 %4306  ;;  %v4309_v36 = vpop.permute.xlu1 %4308 }
0x27ad   : > { %v4318_v27 = vand.u32 %v4309_v36, %v6867_v48  ;;  %5983 = vmatprep.subr.bf16.mxu1 %v4307_v50 }
0x27ae   : > { %5984 = vmatpush3.bf16.msra.mxu1 %v4307_v50 }
0x27af   : > { %5985 = vmatprep.subr.bf16.mxu1 %v4318_v27  ;;  %v6446_v31 = vpop.eup %6445 }
0x27b0   : > { %v4388_v37 = vpop.permute.xlu1 %4387  ;;  %v4301_v12 = vmul.f32 %v6446_v31, %v6440_v6  ;;  %v4384_v47 = vpop.permute.xlu0 %4383 }
0x27b1   : > { %v4398_v24 = vsel %vm835_vm2, %v4388_v37, 0 }
0x27b2   : > { %5986 = vmatpush3.bf16.msra.mxu1 %v4318_v27 }
0x27b3   : > { %v6448_v0 = vpop.eup %6447  ;;  %6057 = vmatprep.subr.msk.bf16.mxu1 %vm835_vm2, %v4388_v37 }
0x27b4   : > { %v6450_v32 = vpop.eup %6449  ;;  %v4302_v25 = vmul.f32 %v6448_v0, %v6442_v14  ;;  %v4390_v26 = vpop.permute.xlu1 %4389 }
0x27b5   : > { %v4303_v7 = vmul.f32 %v6450_v32, %v6444_v62  ;;  %v4401_v57 = vsel %vm835_vm2, %v4390_v26, 0 }
0x27b6   : > { %v4304_v51 = vpack.c.bf16 %v4302_v25, %v4301_v12 }
0x27b7   : > { %v4305_v52 = vpack.c.bf16 %v4303_v7, %v4303_v7 }
0x27b8   : > { %5987 = vmatprep.mubr.msk.bf16.mxu1 %vm899_vm5, %v4304_v51  ;;  %v4386_v3 = vpop.permute.xlu1 %4385 }
0x27b9   : > { %5988 = vmatmul.mubr.msk.bf16.vlgmr.msra.gmra.mrb[100].mxu1 %vm899_vm5, %v4305_v52 }
0x27ba   : > { %5995 = vmatprep.mubr.msk.bf16.mxu1 %vm835_vm2, %v4384_v47 }
0x27bb   : > { %5992 = vmatpush3.bf16.xpose.msra.mxu1 %v4398_v24 }
0x27bc   : > { %6058 = vmatprep.subr.msk.bf16.mxu1 %vm835_vm2, %v4390_v26  ;;  %v6189_v26 = vld [vmem:[%s8072_s5 + $0x20] sm:$0xff]  }
0x27c3   : > { %5994 = vmatpush3.bf16.xpose.msra.mxu1 %v4401_v57 }
0x27ca   : > { %5996 = vmatmul.mubr.msk.bf16.vlgmr.msra.gmra.mrb[104].mxu1 %vm835_vm2, %v4386_v3 }
0x27cb   : > { %4870 = vmatprep.mubr.bf16.mxu1 %v6561_v19 }
0x288c   : > { %v7744_v60 = vpop.f32.mrb[100].mxu1 }
0x288d   : > { %v4354_v61 = vpop.f32.mrb[101].mxu1 }
0x288e   : > { %v5990_v10 = vpop.f32.mrb[102].mxu1 }
0x288f   : > { %v4357_v30 = vpop.f32.mrb[103].mxu1  ;;  %v6190_v10 = vld [vmem:[%s8072_s5 + $0x28] sm:$0xff]  }
0x289d   : > { %v5997_v9 = vpop.f32.mrb[104].mxu1 }
0x289e   : > { %v4437_v21 = vpop.f32.mrb[105].mxu1  ;;  %v4453_v6 = vmul.f32 0.25, %v5997_v9 }
0x289f   : > { %v4451_v15 = vmul.f32 0.25, %v4437_v21  ;;  %v5998_v41 = vpop.f32.mrb[106].mxu1  ;;  %v6191_v21 = vld [vmem:[%s8072_s5 + $0x30] sm:$0xff]  }
0x28a0   : > { %v4440_v20 = vpop.f32.mrb[107].mxu1  ;;  %v4460_v29 = vsel %vm906_vm6, %v4453_v6, -inf }
0x28a1   : > { %v4452_v1 = vmul.f32 0.25, %v4440_v20  ;;  %v4454_v14 = vsel %vm899_vm5, %v4451_v15, -inf  ;;  %v6192_v20 = vld [vmem:[%s8072_s5 + $0x38] sm:$0xff]  }
0x28a2   : > { %4455 = vmax.xlane.f32.xlu0 %v4454_v14 }
0x28a3   : > { %v4457_v62 = vsel %vm899_vm5, %v4452_v1, -inf }
0x28a4   : > { %4458 = vmax.xlane.f32.xlu1 %v4457_v62 }
0x28a6   : > { %4461 = vmax.xlane.f32.xlu0 %v4460_v29 }
0x292f   : > { %v4456_v18 = vpop.xlane.xlu0 %4455 }
0x2930   : > { %v4463_v56 = vsub.f32 %v4451_v15, %v4456_v18 }
0x2931   : > { %v4459_v33 = vpop.xlane.xlu1 %4458 }
0x2932   : > { %v4466_v2 = vmul.f32 1.442695, %v4463_v56  ;;  %v4464_v50 = vsub.f32 %v4452_v1, %v4459_v33 }
0x2933   : > { %v4462_v36 = vpop.xlane.xlu0 %4461 }
0x2934   : > { %6451 = vpow2.f32 %v4466_v2  ;;  %v4468_v27 = vmul.f32 1.442695, %v4464_v50  ;;  %v4465_v31 = vsub.f32 %v4453_v6, %v4462_v36 }
0x2936   : > { %6453 = vpow2.f32 %v4468_v27  ;;  %v4470_v37 = vmul.f32 1.442695, %v4465_v31 }
0x2938   : > { %6455 = vpow2.f32 %v4470_v37 }
0x293e   : > { %v6452_v0 = vpop.eup %6451 }
0x293f   : > { %v4472_v32 = vsel %vm899_vm5, %v6452_v0, 0.0 }
0x2940   : > { %v6454_v12 = vpop.eup %6453  ;;  %4473 = vadd.xlane.f32.xlu0 %v4472_v32 }
0x2941   : > { %v4475_v51 = vsel %vm899_vm5, %v6454_v12, 0.0 }
0x2942   : > { %v6456_v25 = vpop.eup %6455 }
0x2943   : > { %v4478_v7 = vsel %vm906_vm6, %v6456_v25, 0.0 }
0x2944   : > { %4479 = vadd.xlane.f32.xlu1 %v4478_v7  ;;  %4476 = vadd.xlane.f32.xlu0 %v4475_v51 }
0x2955   : > { %4491 = vrot.lane.b32.xlu1 %v7612_v53, %s8098_s12 }
0x2959   : > { %3444 = vrot.lane.b32.xlu1 %v7580_v40, %s8097_s25 }
0x295a   : > { %4489 = vrot.lane.b32.xlu0 %v7538_v23, %s8098_s12  ;;  %s5246_s12 = sshll.u32 %s377_s16, 1 }
0x295b   : > { %s379_s30 = scalar_lea.vmem [#allocation3], %s5246_s12 }
0x295c   : > { %s5183_s24 = sshll.u32 %s379_s30, 4  ;;  %s8026_s24 = int_to_ptr.vmem [resolvable:$true] %s5183_s24 }
0x295d   : > { %3446 = vrot.lane.b32.xlu1 %v7582_v45, %s8097_s25  ;;  %s6497_s26 = scalar_lea.vmem %s8026_s24, 32 }
0x295e   : > { %3627 = vrot.lane.b32.xlu0 %v7620_v54, %s8095_s14  ;;  %p6498_p11 = scmp.ne.s32.totalorder %s8026_s24, %s6497_s26 }
0x2960   : > { %p6499_p12 = pnand %p6498_p11, %p6670_p5 }
0x2961   : > { %3629 = vrot.lane.b32.xlu1 %v7622_v59, %s8095_s14 }
0x2962   : > { %3810 = vrot.lane.b32.xlu0 %v7654_v22, %s6563_s22  ;;  %p6500_p13 = pneg %p6499_p12 }
0x2965   : > { %3812 = vrot.lane.b32.xlu1 %v7656_v8, %s6563_s22 }
0x2966   : > { %3448 = vrot.lane.b32.xlu0 %v7578_v42, %s8097_s25 }
0x2969   : > { %4188 = vrot.lane.b32.xlu1 %v7712_v43, %s8097_s25 }
0x296a   : > { %4190 = vrot.lane.b32.xlu0 %v7714_v49, %s8097_s25 }
0x296d   : > { %3631 = vrot.lane.b32.xlu1 %v7618_v44, %s8095_s14 }
0x296e   : > { %4371 = vrot.lane.b32.xlu0 %v4354_v61, %s8095_s14 }
0x2971   : > { %4373 = vrot.lane.b32.xlu1 %v4357_v30, %s8095_s14 }
0x2972   : > { %3814 = vrot.lane.b32.xlu0 %v7652_v58, %s6563_s22 }
0x29cd   : > { %v4474_v23 = vpop.xlane.xlu0 %4473 }
0x29ce   : > { %6457 = vrcp.f32 %v4474_v23 }
0x29d1   : > { %v4477_v40 = vpop.xlane.xlu0 %4476  ;;  %v4480_v42 = vpop.xlane.xlu1 %4479 }
0x29d2   : > { %6459 = vrcp.f32 %v4477_v40 }
0x29d3   : > { %6461 = vrcp.f32 %v4480_v42 }
0x29d5   : > { %v4490_v45 = vpop.permute.xlu0 %4489  ;;  %v4492_v53 = vpop.permute.xlu1 %4491 }
0x29d6   : > { %v4501_v54 = vand.u32 %v4492_v53, %v6867_v48  ;;  %5999 = vmatprep.subr.bf16.mxu0 %v4490_v45 }
0x29d7   : > { %6000 = vmatpush3.bf16.msra.mxu0 %v4490_v45 }
0x29d8   : > { %6001 = vmatprep.subr.bf16.mxu0 %v4501_v54  ;;  %v6458_v22 = vpop.eup %6457 }
0x29d9   : > { %v3628_v44 = vpop.permute.xlu0 %3627  ;;  %v3445_v59 = vpop.permute.xlu1 %3444  ;;  %v4484_v52 = vmul.f32 %v6458_v22, %v6452_v0  ;;  %v7827_v0 = vld [vmem:[%s8076_s9 + $0x8] sm:$0x3f] }
0x29da   : > { %3453 = vst.msk [vmem:[#allocation2] sm:$0xff] %vm1184_vm8, %v3445_v59  ;;  %v7832_v32 = vrot.slane %v7827_v0, %v2322_v5 }
0x29db   : > { %3636 = vst.msk [vmem:[#allocation2] sm:$0xff] %vm1369_vm9, %v3628_v44  ;;  %6002 = vmatpush3.bf16.msra.mxu0 %v4501_v54 }
0x29dc   : > { %v6460_v58 = vpop.eup %6459  ;;  %6007 = vmatprep.subr.bf16.mxu0 %v6569_v16 }
0x29dd   : > { %v6462_v8 = vpop.eup %6461  ;;  %v3811_v43 = vpop.permute.xlu0 %3810  ;;  %v4485_v47 = vmul.f32 %v6460_v58, %v6454_v12 }
0x29de   : > { %v3447_v49 = vpop.permute.xlu1 %3446  ;;  %v4486_v48 = vmul.f32 %v6462_v8, %v6456_v25  ;;  %3819 = vst.msk [vmem:[#allocation2] sm:$0xff] %vm1554_vm10, %v3811_v43 }
0x29df   : > { %3454 = vst.msk [vmem:[#allocation2 + $0x8] sm:$0xff] %vm1184_vm8, %v3447_v49  ;;  %v4487_v24 = vpack.c.bf16 %v4485_v47, %v4484_v52 }
0x29e0   : > { %v4488_v57 = vpack.c.bf16 %v4486_v48, %v4486_v48 }
0x29e1   : > { %6003 = vmatprep.mubr.msk.bf16.mxu0 %vm899_vm5, %v4487_v24  ;;  %v3449_v3 = vpop.permute.xlu0 %3448 }
0x29e2   : > { %v3630_v61 = vpop.permute.xlu1 %3629  ;;  %3455 = vst.msk [vmem:[#allocation2 + $0x10] sm:$0x1] %vm1187_vm11, %v3449_v3  ;;  %6004 = vmatmul.mubr.msk.bf16.vlgmr.msra.gmra.mrb[88].mxu0 %vm899_vm5, %v4488_v57 }
0x29e3   : > { %3637 = vst.msk [vmem:[#allocation2 + $0x8] sm:$0xff] %vm1369_vm9, %v3630_v61  ;;  %6008 = vmatpush3.bf16.msra.mxu0 %v6189_v26  ;;  %6015 = vmatprep.mubr.msk.bf16.mxu0 %vm6570_vm12, %v6569_v16 }
0x29e4   : > { %6009 = vmatprep.subr.bf16.mxu0 %v6569_v16 }
0x29e5   : > { %v4191_v30 = vpop.permute.xlu0 %4190  ;;  %v4566_v14 = vld [vmem:[#allocation2] sm:$0xff] }
0x29e6   : > { %v3813_v9 = vpop.permute.xlu1 %3812  ;;  %4198 = vst.msk [vmem:[#allocation2 + $0x19] sm:$0xff] %vm1184_vm8, %v4191_v30 }
0x29e7   : > { %3820 = vst.msk [vmem:[#allocation2 + $0x8] sm:$0xff] %vm1554_vm10, %v3813_v9  ;;  %6010 = vmatpush3.bf16.msra.mxu0 %v6190_v10 }
0x29e8   : > { %6011 = vmatprep.subr.bf16.mxu0 %v6569_v16 }
0x29e9   : > { %v4372_v15 = vpop.permute.xlu0 %4371 }
0x29ea   : > { %v4189_v41 = vpop.permute.xlu1 %4188 }
0x29eb   : > { %4197 = vst.msk [vmem:[#allocation2 + $0x11] sm:$0xff] %vm1184_vm8, %v4189_v41  ;;  %6012 = vmatpush3.bf16.msra.mxu0 %v6191_v21 }
0x29ec   : > { %4380 = vst.msk [vmem:[#allocation2 + $0x11] sm:$0xff] %vm1369_vm9, %v4372_v15  ;;  %6013 = vmatprep.subr.bf16.mxu0 %v6569_v16 }
0x29ed   : > { %v3815_v6 = vpop.permute.xlu0 %3814 }
0x29ee   : > { %v3632_v1 = vpop.permute.xlu1 %3631  ;;  %v4567_v62 = vld [vmem:[#allocation2 + $0x8] sm:$0xff] }
0x29ef   : > { %3638 = vst.msk [vmem:[#allocation2 + $0x10] sm:$0x1] %vm1372_vm13, %v3632_v1  ;;  %v4571_v29 = vpack.c.bf16 %v4567_v62, %v4566_v14  ;;  %6014 = vmatpush3.bf16.msra.mxu0 %v6192_v20  ;;  %v6195_v1 = vld [vmem:[%s8073_s6 + $0x44] ss:$8 sps:$4 sm:$0xff]   ;;  %v6198_v14 = vld [vmem:[%s8073_s6 + $0x54] ss:$8 sps:$4 sm:$0xff]  }
0x29f0   : > { %3821 = vst.msk [vmem:[#allocation2 + $0x10] sm:$0x1] %vm1557_vm14, %v3815_v6  ;;  %4838 = vmatprep.subr.bf16.mxu1 %v6195_v1  ;;  %v6196_v62 = vld [vmem:[%s8073_s6 + $0x50] ss:$8 sps:$4 sm:$0xff]  }
0x29f2   : > { %v4374_v18 = vpop.permute.xlu1 %4373  ;;  %6016 = vmatmul.mubr.msk.bf16.vlgmr.msra.gmra.mrb[92].mxu0 %vm608_vm0, %v4571_v29  ;;  %v6201_v29 = vld [vmem:[%s8073_s6 + $0x64] ss:$8 sps:$4 sm:$0xff]  }
0x29f3   : > { %4381 = vst.msk [vmem:[#allocation2 + $0x19] sm:$0xff] %vm1369_vm9, %v4374_v18  ;;  %6019 = vmatprep.mubr.msk.bf16.mxu0 %vm6570_vm12, %v6569_v16  ;;  %v6199_v18 = vld [vmem:[%s8073_s6 + $0x60] ss:$8 sps:$4 sm:$0xff]  }
0x2ab5   : > { %v6005_v56 = vpop.f32.mrb[88].mxu0 }
0x2ab6   : > { %v4537_v33 = vpop.f32.mrb[89].mxu0 }
0x2ab7   : > { %4554 = vrot.lane.b32.xlu1 %v4537_v33, %s6563_s22  ;;  %v6006_v2 = vpop.f32.mrb[90].mxu0  ;;  %v6204_v33 = vld [vmem:[%s8073_s6 + $0x74] ss:$8 sps:$4 sm:$0xff]  }
0x2ab8   : > { %v4540_v50 = vpop.f32.mrb[91].mxu0 }
0x2ab9   : > { %4556 = vrot.lane.b32.xlu0 %v4540_v50, %s6563_s22 }
0x2abb   : > { %4192 = vrot.lane.b32.xlu1 %v7710_v38, %s8097_s25  ;;  %s5484_s25 = sshll.u32 %s6653_s21, 5  ;;  %s6571_s21 = smov [#allocation3]  }
0x2abc   : > { %s8024_s19 = scalar_lea.hbm %s8078_s11, %s5484_s25  ;;  %s6501_s15 = sshll.u32 %s6571_s21, 4  ;;  %s6502_s15 = int_to_ptr.vmem [resolvable:$false] %s6501_s15 }
0x2abd   : > { %4375 = vrot.lane.b32.xlu0 %v7744_v60, %s8095_s14  ;;  %s6503_s12 = scalar_lea.vmem %s6502_s15, 64  ;;  %p6504_p0 = scmp.lt.s32.totalorder %s8026_s24, %s6502_s15 }
0x2abe   : > { %p6505_p1 = scmp.lt.s32.totalorder %s6503_s12, %s6497_s26 }
0x2abf   : > { %4558 = vrot.lane.b32.xlu1 %v6005_v56, %s6563_s22  ;;  %v6202_v56 = vld [vmem:[%s8073_s6 + $0x70] ss:$8 sps:$4 sm:$0xff]  }
0x2ac0   : > { %p6506_p2 = por %p6505_p1, %p6504_p0 }
0x2ac2   : > { %p6507_p3 = pnand %p6506_p2, %p6500_p13 }
0x2ac5   : > { %v4654_v36 = vpop.f32.mrb[92].mxu0 }
0x2ac6   : > { %v6017_v27 = vpop.f32.mrb[93].mxu0  ;;  %v4655_v38 = vadd.f32 %v4654_v36, %v7832_v32 }
0x2ac7   : > { %v4657_v31 = vpop.f32.mrb[94].mxu0 }
0x2ac8   : > { %v6018_v37 = vpop.f32.mrb[95].mxu0  ;;  %v7836_v60 = vadd.f32 %v4655_v38, %v7397_v63  ;;  %v4658_v12 = vadd.f32 %v4657_v31, %v7832_v32 }
0x2aca   : > { %v4681_v25 = vsel %vm608_vm0, %v7836_v60, 0.0  ;;  %v4677_v7 = vadd.f32 %v4658_v12, %v7401_v17 }
0x2acc   : > { %v4684_v51 = vsel %vm608_vm0, %v4677_v7, 0.0 }
0x2adc   : > { %4682 = vadd.xlane.f32.xlu0 %v4681_v25 }
0x2ae3   : > { %4685 = vadd.xlane.f32.xlu1 %v4684_v51 }
0x2b29   : > { %v4555_v23 = vpop.permute.xlu1 %4554 }
0x2b2a   : > { %4563 = vst.msk [vmem:[#allocation2 + $0x11] sm:$0xff] %vm1554_vm10, %v4555_v23 }
0x2b2b   : > { %v4557_v5 = vpop.permute.xlu0 %4556 }
0x2b2c   : > { %4564 = vst.msk [vmem:[#allocation2 + $0x19] sm:$0xff] %vm1554_vm10, %v4557_v5 }
0x2b2d   : > { %v4193_v40 = vpop.permute.xlu1 %4192 }
0x2b2e   : > { %4199 = vst.msk [vmem:[#allocation2 + $0x21] sm:$0x1] %vm1187_vm11, %v4193_v40 }
0x2b2f   : > { %v4376_v63 = vpop.permute.xlu0 %4375 }
0x2b30   : > { %4382 = vst.msk [vmem:[#allocation2 + $0x21] sm:$0x1] %vm1372_vm13, %v4376_v63 }
0x2b31   : > { %v4559_v42 = vpop.permute.xlu1 %4558  ;;  %v4568_v45 = vld [vmem:[#allocation2 + $0x10] sm:$0xff] }
0x2b32   : > { %4565 = vst.msk [vmem:[#allocation2 + $0x21] sm:$0x1] %vm1557_vm14, %v4559_v42 }
0x2b33   : > { %v4569_v17 = vld [vmem:[#allocation2 + $0x18] sm:$0xff] }
0x2b34   : > { %v4572_v53 = vpack.c.bf16 %v4569_v17, %v4568_v45 }
0x2b36   : > { %6020 = vmatmul.mubr.msk.bf16.gmra.mrb[96].mxu0 %vm608_vm0, %v4572_v53  ;;  %v7912_v53 = vrot.slane %v7827_v0, %v2485_v4  ;;  %v6205_v4 = vld [vmem:[%s8075_s8 + $0xc0] sm:$0xff]  }
0x2b37   : > { %6023 = vmatprep.mubr.msk.bf16.mxu0 %vm6570_vm12, %v6569_v16  ;;  %5697 = vmatprep.subr.bf16.mxu0 %v6205_v4 }
0x2b39   : > { %v4570_v54 = vld [vmem:[#allocation2 + $0x20] sm:$0x3] }
0x2b3a   : > { %v4573_v44 = vpack.c.bf16 %v4570_v54, %v4570_v54 }
0x2b3e   : > { %6024 = vmatmul.mubr.msk.bf16.gmra.mrb[100].mxu0 %vm608_vm0, %v4573_v44 }
0x2b69   : > { %v4683_v49 = vpop.xlane.xlu0 %4682 }
0x2b6a   : > { %v4696_v47 = vmul.f32 0.015625, %v4683_v49 }
0x2b6c   : > { %v4701_v61 = vsub.f32 %v7836_v60, %v4696_v47 }
0x2b6e   : > { %v4706_v41 = vmul.f32 %v4701_v61, %v4701_v61 }
0x2b70   : > { %v4686_v59 = vpop.xlane.xlu1 %4685  ;;  %v4711_v6 = vsel %vm608_vm0, %v4706_v41, 0.0  ;;  %v6219_v41 = vld [vmem:[%s8075_s8 + $0xf8] sm:$0xff]  }
0x2b71   : > { %v4697_v22 = vmul.f32 0.015625, %v4686_v59 }
0x2b73   : > { %v7852_v58 = vsub.f32 %v4677_v7, %v4697_v22 }
0x2b75   : > { %v4707_v8 = vmul.f32 %v7852_v58, %v7852_v58 }
0x2b77   : > { %v4714_v43 = vsel %vm608_vm0, %v4707_v8, 0.0  ;;  %v7919_v8 = vrot.slane %v7827_v0, %v2494_v13  ;;  %v6206_v13 = vld [vmem:[%s8075_s8 + $0x80] sm:$0xff]  }
0x2b78   : > { %4715 = vadd.xlane.f32.xlu1 %v4714_v43  ;;  %5698 = vmatpush3.bf16.msra.mxu0 %v6206_v13 }
0x2c05   : > { %v4716_v2 = vpop.xlane.xlu1 %4715 }
0x2c06   : > { %v4727_v50 = vmul.f32 0.015625, %v4716_v2 }
0x2c08   : > { %v4732_v31 = vadd.f32 1e-05, %v4727_v50 }
0x2c09   : > { %v4662_v52 = vpop.f32.mrb[96].mxu0 }
0x2c0a   : > { %v4663_v48 = vadd.f32 %v4662_v52, %v7832_v32  ;;  %v6021_v16 = vpop.f32.mrb[97].mxu0  ;;  %6463 = vrsqrt.f32 %v4732_v31 }
0x2c0b   : > { %v4665_v24 = vpop.f32.mrb[98].mxu0  ;;  %v6209_v16 = vld [vmem:[%s8075_s8 + $0xd0] sm:$0xff]  }
0x2c0c   : > { %v7859_v26 = vadd.f32 %v4663_v48, %v7411_v34  ;;  %v4666_v57 = vadd.f32 %v4665_v24, %v7832_v32  ;;  %v6022_v3 = vpop.f32.mrb[99].mxu0  ;;  %v6208_v48 = vld [vmem:[%s8075_s8 + $0x88] sm:$0xff]   ;;  %v6210_v24 = vld [vmem:[%s8075_s8 + $0x90] sm:$0xff]  }
0x2c0d   : > { %v6212_v3 = vld [vmem:[%s8075_s8 + $0x98] sm:$0xff]  }
0x2c0e   : > { %v4679_v10 = vadd.f32 %v4666_v57, %v7415_v39  ;;  %v4687_v30 = vsel %vm608_vm0, %v7859_v26, 0.0  ;;  %v6193_v39 = vld [vmem:[%s8073_s6 + $0x40] ss:$8 sps:$4 sm:$0xff]   ;;  %v6211_v57 = vld [vmem:[%s8075_s8 + $0xd8] sm:$0xff]  }
0x2c0f   : > { %4688 = vadd.xlane.f32.xlu0 %v4687_v30  ;;  %4839 = vmatpush1.bf16.msra.mxu1 %v6193_v39  ;;  %v6215_v30 = vld [vmem:[%s8075_s8 + $0xe8] sm:$0xff]  }
0x2c10   : > { %v4690_v15 = vsel %vm608_vm0, %v4679_v10, 0.0  ;;  %4840 = vmatprep.subr.bf16.mxu1 %v6198_v14 }
0x2c11   : > { %v4670_v9 = vpop.f32.mrb[100].mxu0 }
0x2c12   : > { %v6025_v21 = vpop.f32.mrb[101].mxu0  ;;  %v4671_v37 = vadd.f32 %v4670_v9, %v7832_v32  ;;  %v6216_v9 = vld [vmem:[%s8075_s8 + $0xa8] sm:$0xff]  }
0x2c13   : > { %4691 = vadd.xlane.f32.xlu0 %v4690_v15  ;;  %v4673_v20 = vpop.f32.mrb[102].mxu0  ;;  %4841 = vmatpush1.bf16.msra.mxu1 %v6196_v62  ;;  %v6217_v21 = vld [vmem:[%s8075_s8 + $0xf0] sm:$0xff]  }
0x2c14   : > { %v6026_v34 = vpop.f32.mrb[103].mxu0  ;;  %4842 = vmatprep.subr.bf16.mxu1 %v6201_v29  ;;  %v7899_v51 = vadd.f32 %v4671_v37, %v7453_v11  ;;  %v6464_v11 = vpop.eup %6463  ;;  %v6218_v15 = vld [vmem:[%s8075_s8 + $0xb0] sm:$0xff]   ;;  %v6220_v20 = vld [vmem:[%s8075_s8 + $0xb8] sm:$0xff]  }
0x2c15   : > { %v4742_v54 = vmul.f32 %v6464_v11, %v7852_v58  ;;  %v6207_v58 = vld [vmem:[%s8075_s8 + $0xc8] sm:$0xff]  }
0x2c16   : > { %v4693_v45 = vsel %vm621_vm1, %v7899_v51, 0.0  ;;  %5699 = vmatprep.subr.bf16.mxu0 %v6207_v58 }
0x2c17   : > { %4712 = vadd.xlane.f32.xlu0 %v4711_v6  ;;  %4843 = vmatpush1.bf16.msra.mxu1 %v6199_v18  ;;  %v4751_v59 = vmul.f32 %v7912_v53, %v4742_v54 }
0x2c18   : > { %4844 = vmatprep.subr.bf16.mxu1 %v6204_v33  ;;  %5700 = vmatpush3.bf16.msra.mxu0 %v6208_v48 }
0x2c19   : > { %v4760_v52 = vadd.f32 %v7919_v8, %v4751_v59  ;;  %5701 = vmatprep.subr.bf16.mxu0 %v6209_v16 }
0x2c1b   : > { %4845 = vmatpush1.bf16.msra.mxu1 %v6202_v56 }
0x2c1c   : > { %5702 = vmatpush3.bf16.msra.mxu0 %v6210_v24 }
0x2c1d   : > { %5703 = vmatprep.subr.bf16.mxu0 %v6211_v57 }
0x2c20   : > { %5704 = vmatpush3.bf16.msra.mxu0 %v6212_v3 }
0x2c9c   : > { %v4689_v36 = vpop.xlane.xlu0 %4688 }
0x2c9d   : > { %v4698_v27 = vmul.f32 0.015625, %v4689_v36 }
0x2c9f   : > { %v7894_v38 = vsub.f32 %v7859_v26, %v4698_v27 }
0x2ca0   : > { %v4692_v12 = vpop.xlane.xlu0 %4691 }
0x2ca1   : > { %v4699_v25 = vmul.f32 0.015625, %v4692_v12  ;;  %v4708_v7 = vmul.f32 %v7894_v38, %v7894_v38 }
0x2ca3   : > { %v7901_v23 = vsub.f32 %v4679_v10, %v4699_v25  ;;  %v4717_v5 = vsel %vm608_vm0, %v4708_v7, 0.0  ;;  %v6214_v10 = vld [vmem:[%s8075_s8 + $0xa0] sm:$0xff]  }
0x2ca4   : > { %4718 = vadd.xlane.f32.xlu0 %v4717_v5  ;;  %v4713_v40 = vpop.xlane.xlu0 %4712 }
0x2ca5   : > { %v4726_v63 = vmul.f32 0.015625, %v4713_v40  ;;  %v4709_v32 = vmul.f32 %v7901_v23, %v7901_v23 }
0x2ca7   : > { %v4731_v42 = vadd.f32 1e-05, %v4726_v63  ;;  %v4720_v17 = vsel %vm608_vm0, %v4709_v32, 0.0 }
0x2ca8   : > { %4694 = vadd.xlane.f32.xlu0 %v4693_v45  ;;  %4721 = vadd.xlane.f32.xlu1 %v4720_v17 }
0x2ca9   : > { %6465 = vrsqrt.f32 %v4731_v42 }
0x2cb3   : > { %v6466_v44 = vpop.eup %6465 }
0x2cb4   : > { %v4741_v22 = vmul.f32 %v6466_v44, %v4701_v61  ;;  %v6213_v61 = vld [vmem:[%s8075_s8 + $0xe0] sm:$0xff]  }
0x2cb5   : > { %5705 = vmatprep.subr.bf16.mxu0 %v6213_v61 }
0x2cb6   : > { %v4750_v43 = vmul.f32 %v7912_v53, %v4741_v22  ;;  %5706 = vmatpush3.bf16.msra.mxu0 %v6214_v10 }
0x2cb7   : > { %5707 = vmatprep.subr.bf16.mxu0 %v6215_v30 }
0x2cb8   : > { %v4759_v49 = vadd.f32 %v7919_v8, %v4750_v43 }
0x2cba   : > { %v4764_v47 = vpack.c.bf16 %v4760_v52, %v4759_v49  ;;  %5708 = vmatpush3.bf16.msra.mxu0 %v6216_v9 }
0x2cbb   : > { %5709 = vmatprep.subr.bf16.mxu0 %v6217_v21 }
0x2cbc   : > { %5432 = vmatmul.mubr.msk.bf16.vlgmr.msra.gmra.mrb[108].mxu1 %vm608_vm0, %v4764_v47 }
0x2cbd   : > { %4880 = vmatprep.mubr.bf16.mxu1 %v6561_v19 }
0x2cbe   : > { %5710 = vmatpush3.bf16.msra.mxu0 %v6218_v15 }
0x2cbf   : > { %5711 = vmatprep.subr.bf16.mxu0 %v6219_v41 }
0x2cc2   : > { %5712 = vmatpush3.bf16.msra.mxu0 %v6220_v20 }
0x2d31   : > { %v4719_v34 = vpop.xlane.xlu0 %4718 }
0x2d32   : > { %v4728_v6 = vmul.f32 0.015625, %v4719_v34 }
0x2d34   : > { %v4733_v1 = vadd.f32 1e-05, %v4728_v6 }
0x2d35   : > { %v4695_v39 = vpop.xlane.xlu0 %4694  ;;  %v4722_v14 = vpop.xlane.xlu1 %4721 }
0x2d36   : > { %6467 = vrsqrt.f32 %v4733_v1  ;;  %v4700_v62 = vmul.f32 0.015625, %v4695_v39  ;;  %v4729_v29 = vmul.f32 0.015625, %v4722_v14 }
0x2d38   : > { %v4705_v18 = vsub.f32 %v7899_v51, %v4700_v62  ;;  %v4734_v56 = vadd.f32 1e-05, %v4729_v29 }
0x2d3a   : > { %6469 = vrsqrt.f32 %v4734_v56  ;;  %v4710_v33 = vmul.f32 %v4705_v18, %v4705_v18 }
0x2d3c   : > { %v4723_v2 = vsel %vm621_vm1, %v4710_v33, 0.0 }
0x2d3d   : > { %4724 = vadd.xlane.f32.xlu1 %v4723_v2 }
0x2d40   : > { %v6468_v50 = vpop.eup %6467 }
0x2d41   : > { %v4743_v36 = vmul.f32 %v6468_v50, %v7894_v38  ;;  %v5423_v38 = vld [vmem:[%s8074_s7 + $0x2] sm:$0x3] }
0x2d42   : > { %v7988_v5 = vrot.slane %v5423_v38, %v6820_v35 }
0x2d43   : > { %v4752_v37 = vmul.f32 %v7912_v53, %v4743_v36 }
0x2d44   : > { %v6470_v27 = vpop.eup %6469 }
0x2d45   : > { %v4744_v31 = vmul.f32 %v6470_v27, %v7901_v23  ;;  %v4761_v25 = vadd.f32 %v7919_v8, %v4752_v37  ;;  %v7991_v23 = vrot.slane %v5423_v38, %v6829_v46 }
0x2d47   : > { %v4753_v12 = vmul.f32 %v7912_v53, %v4744_v31 }
0x2d49   : > { %v4762_v7 = vadd.f32 %v7919_v8, %v4753_v12 }
0x2d4b   : > { %v4765_v51 = vpack.c.bf16 %v4762_v7, %v4761_v25 }
0x2d4d   : > { %5433 = vmatmul.mubr.msk.bf16.gmra.mrb[112].mxu1 %vm608_vm0, %v4765_v51 }
0x2d4e   : > { %4890 = vmatprep.mubr.bf16.mxu1 %v6561_v19 }
0x2d8f   : > { %v4872_v40 = vpop.f32.mrb[108].mxu1 }
0x2d90   : > { %v4873_v63 = vadd.f32 %v4872_v40, %v7988_v5  ;;  %v4874_v32 = vpop.f32.mrb[109].mxu1 }
0x2d91   : > { %v4875_v42 = vadd.f32 %v4874_v32, %v7991_v23  ;;  %v4876_v45 = vpop.f32.mrb[110].mxu1 }
0x2d92   : > { %v4909_v17 = vmul.f32 0.70710677, %v4873_v63  ;;  %v4877_v19 = vadd.f32 %v4876_v45, %v7988_v5  ;;  %v4878_v11 = vpop.f32.mrb[111].mxu1  ;;  %v4899_v58 = vmul.f32 0.5, %v4873_v63 }
0x2d93   : > { %v4910_v54 = vmul.f32 0.70710677, %v4875_v42  ;;  %v4879_v44 = vadd.f32 %v4878_v11, %v7991_v23  ;;  %v4900_v24 = vmul.f32 0.5, %v4875_v42 }
0x2d94   : > { %6471 = verf.f32 %v4909_v17  ;;  %v4911_v59 = vmul.f32 0.70710677, %v4877_v19  ;;  %v4901_v48 = vmul.f32 0.5, %v4877_v19 }
0x2d95   : > { %6473 = verf.f32 %v4910_v54  ;;  %v4912_v22 = vmul.f32 0.70710677, %v4879_v44  ;;  %v4902_v57 = vmul.f32 0.5, %v4879_v44 }
0x2d96   : > { %6475 = verf.f32 %v4911_v59 }
0x2d97   : > { %6477 = verf.f32 %v4912_v22 }
0x2d9e   : > { %v6472_v43 = vpop.eup %6471 }
0x2d9f   : > { %v6474_v49 = vpop.eup %6473  ;;  %v4929_v52 = vadd.f32 1.0, %v6472_v43 }
0x2da0   : > { %v6476_v47 = vpop.eup %6475  ;;  %v4930_v4 = vadd.f32 1.0, %v6474_v49 }
0x2da1   : > { %v6478_v13 = vpop.eup %6477  ;;  %v4931_v16 = vadd.f32 1.0, %v6476_v47  ;;  %v4939_v61 = vmul.f32 %v4929_v52, %v4899_v58 }
0x2da2   : > { %v4932_v3 = vadd.f32 1.0, %v6478_v13  ;;  %v4940_v30 = vmul.f32 %v4930_v4, %v4900_v24 }
0x2da3   : > { %v4941_v10 = vmul.f32 %v4931_v16, %v4901_v48 }
0x2da4   : > { %v4942_v9 = vmul.f32 %v4932_v3, %v4902_v57 }
0x2da5   : > { %v4949_v21 = vpack.c.bf16 %v4941_v10, %v4939_v61 }
0x2da6   : > { %v4950_v15 = vpack.c.bf16 %v4942_v9, %v4940_v30 }
0x2da8   : > { %5120 = vmatprep.mubr.bf16.mxu0 %v4950_v15 }
0x2da9   : > { %5121 = vmatmul.mubr.bf16.vlgmr.msra.gmra.mrb[104].mxu0 %v4949_v21 }
0x2dca   : > { %v4725_v41 = vpop.xlane.xlu1 %4724 }
0x2dcb   : > { %v4730_v20 = vmul.f32 0.015625, %v4725_v41 }
0x2dcd   : > { %v4735_v34 = vadd.f32 1e-05, %v4730_v20 }
0x2dcf   : > { %6479 = vrsqrt.f32 %v4735_v34 }
0x2dd9   : > { %v6480_v6 = vpop.eup %6479 }
0x2dda   : > { %v4745_v1 = vmul.f32 %v6480_v6, %v4705_v18 }
0x2ddc   : > { %v4754_v39 = vmul.f32 %v7912_v53, %v4745_v1 }
0x2dde   : > { %v4763_v14 = vadd.f32 %v7919_v8, %v4754_v39 }
0x2de0   : > { %v4766_v62 = vpack.c.bf16 %v4763_v14, %v4763_v14 }
0x2de2   : > { %5434 = vmatmul.mubr.msk.bf16.gmra.mrb[116].mxu1 %vm608_vm0, %v4766_v62 }
0x2e20   : > { %v4882_v29 = vpop.f32.mrb[112].mxu1 }
0x2e21   : > { %v4883_v56 = vadd.f32 %v4882_v29, %v7988_v5  ;;  %v4884_v33 = vpop.f32.mrb[113].mxu1 }
0x2e22   : > { %v4885_v2 = vadd.f32 %v4884_v33, %v7991_v23  ;;  %v4886_v50 = vpop.f32.mrb[114].mxu1 }
0x2e23   : > { %v4913_v36 = vmul.f32 0.70710677, %v4883_v56  ;;  %v4887_v27 = vadd.f32 %v4886_v50, %v7988_v5  ;;  %v4888_v31 = vpop.f32.mrb[115].mxu1  ;;  %v4903_v63 = vmul.f32 0.5, %v4883_v56 }
0x2e24   : > { %v4914_v37 = vmul.f32 0.70710677, %v4885_v2  ;;  %v4889_v18 = vadd.f32 %v4888_v31, %v7991_v23  ;;  %v4904_v45 = vmul.f32 0.5, %v4885_v2 }
0x2e25   : > { %6481 = verf.f32 %v4913_v36  ;;  %v4915_v53 = vmul.f32 0.70710677, %v4887_v27  ;;  %v4905_v32 = vmul.f32 0.5, %v4887_v27 }
0x2e26   : > { %6483 = verf.f32 %v4914_v37  ;;  %v4916_v8 = vmul.f32 0.70710677, %v4889_v18  ;;  %v4906_v17 = vmul.f32 0.5, %v4889_v18 }
0x2e27   : > { %6485 = verf.f32 %v4915_v53 }
0x2e28   : > { %6487 = verf.f32 %v4916_v8 }
0x2e2f   : > { %v6482_v12 = vpop.eup %6481 }
0x2e30   : > { %v6484_v25 = vpop.eup %6483  ;;  %v4933_v7 = vadd.f32 1.0, %v6482_v12 }
0x2e31   : > { %v6486_v51 = vpop.eup %6485  ;;  %v4934_v38 = vadd.f32 1.0, %v6484_v25 }
0x2e32   : > { %v6488_v40 = vpop.eup %6487  ;;  %v4935_v42 = vadd.f32 1.0, %v6486_v51  ;;  %v4943_v11 = vmul.f32 %v4933_v7, %v4903_v63  ;;  %v5144_v51 = vld [vmem:[%s8077_s10] sm:$0x3] }
0x2e33   : > { %v4936_v19 = vadd.f32 1.0, %v6488_v40  ;;  %v4944_v44 = vmul.f32 %v4934_v38, %v4904_v45  ;;  %v5161_v38 = vrot.slane %v5144_v51, %v6820_v35 }
0x2e34   : > { %v4945_v54 = vmul.f32 %v4935_v42, %v4905_v32  ;;  %v5166_v32 = vrot.slane %v5144_v51, %v6829_v46 }
0x2e35   : > { %v4946_v59 = vmul.f32 %v4936_v19, %v4906_v17 }
0x2e36   : > { %v4951_v22 = vpack.c.bf16 %v4945_v54, %v4943_v11 }
0x2e37   : > { %v4952_v43 = vpack.c.bf16 %v4946_v59, %v4944_v44 }
0x2e39   : > { %5127 = vmatprep.mubr.bf16.mxu0 %v4952_v43 }
0x2e3a   : > { %5128 = vmatmul.mubr.bf16.gmra.mrb[108].mxu0 %v4951_v22 }
0x2e7c   : > { %v5713_v49 = vpop.f32.mrb[104].mxu0 }
0x2e7d   : > { %v5714_v52 = vpop.f32.mrb[105].mxu0 }
0x2e7e   : > { %v5715_v47 = vadd.f32 %v5714_v52, %v5713_v49  ;;  %v5716_v4 = vpop.f32.mrb[106].mxu0 }
0x2e7f   : > { %v5717_v13 = vpop.f32.mrb[107].mxu0 }
0x2eb5   : > { %v4892_v58 = vpop.f32.mrb[116].mxu1 }
0x2eb6   : > { %v4893_v48 = vadd.f32 %v4892_v58, %v7988_v5  ;;  %v4894_v16 = vpop.f32.mrb[117].mxu1  ;;  %v4991_v5 = vrot.slane %v7827_v0, %v2724_v55 }
0x2eb7   : > { %v4895_v24 = vadd.f32 %v4894_v16, %v7991_v23  ;;  %v4896_v57 = vpop.f32.mrb[118].mxu1 }
0x2eb8   : > { %v4917_v3 = vmul.f32 0.70710677, %v4893_v48  ;;  %v4897_v61 = vpop.f32.mrb[119].mxu1  ;;  %v4907_v21 = vmul.f32 0.5, %v4893_v48  ;;  %v5123_v62 = vadd.f32 %v5715_v47, %v4991_v5 }
0x2eb9   : > { %v4918_v10 = vmul.f32 0.70710677, %v4895_v24  ;;  %v4908_v41 = vmul.f32 0.5, %v4895_v24 }
0x2eba   : > { %6489 = verf.f32 %v4917_v3  ;;  %v5141_v50 = vadd.f32 %v5123_v62, %v7836_v60 }
0x2ebb   : > { %6491 = verf.f32 %v4918_v10 }
0x2ec4   : > { %v6490_v30 = vpop.eup %6489 }
0x2ec5   : > { %v6492_v9 = vpop.eup %6491  ;;  %v4937_v15 = vadd.f32 1.0, %v6490_v30 }
0x2ec6   : > { %v4938_v20 = vadd.f32 1.0, %v6492_v9 }
0x2ec7   : > { %v4947_v34 = vmul.f32 %v4937_v15, %v4907_v21 }
0x2ec8   : > { %v4948_v6 = vmul.f32 %v4938_v20, %v4908_v41 }
0x2ec9   : > { %v4953_v39 = vpack.c.bf16 %v4947_v34, %v4947_v34 }
0x2eca   : > { %v4954_v1 = vpack.c.bf16 %v4948_v6, %v4948_v6 }
0x2ecc   : > { %5134 = vmatprep.mubr.bf16.mxu0 %v4954_v1 }
0x2ecd   : > { %5135 = vmatmul.mubr.bf16.gmra.mrb[112].mxu0 %v4953_v39 }
0x2f0d   : > { %v5719_v23 = vpop.f32.mrb[108].mxu0 }
0x2f0e   : > { %v5720_v14 = vpop.f32.mrb[109].mxu0 }
0x2f0f   : > { %v5721_v29 = vadd.f32 %v5720_v14, %v5719_v23  ;;  %v5722_v56 = vpop.f32.mrb[110].mxu0 }
0x2f10   : > { %v5723_v33 = vpop.f32.mrb[111].mxu0 }
0x2f11   : > { %v5130_v2 = vadd.f32 %v5721_v29, %v4991_v5 }
0x2f13   : > { %v5142_v36 = vadd.f32 %v5130_v2, %v7859_v26 }
0x2f15   : > { %v5143_v27 = vsel %vm944_vm3, %v5141_v50, %v5142_v36 }
0x2f16   : > { %v5145_v31 = vsel %vm621_vm1, %v5143_v27, 0.0 }
0x2f17   : > { %5146 = vadd.xlane.f32.xlu0 %v5145_v31 }
0x2fa0   : > { %v5725_v28 = vpop.f32.mrb[112].mxu0 }
0x2fa1   : > { %v5726_v37 = vpop.f32.mrb[113].mxu0 }
0x2fa2   : > { %v5728_v55 = vpop.f32.mrb[114].mxu0 }
0x2fa3   : > { %v5729_v0 = vpop.f32.mrb[115].mxu0 }
0x2fa4   : > { %v5147_v18 = vpop.xlane.xlu0 %5146 }
0x2fa5   : > { %v5148_v53 = vmul.f32 0.015625, %v5147_v18 }
0x2fa7   : > { %v5149_v8 = vsub.f32 %v5143_v27, %v5148_v53 }
0x2fa9   : > { %v5150_v12 = vmul.f32 %v5149_v8, %v5149_v8 }
0x2fab   : > { %v5151_v25 = vsel %vm621_vm1, %v5150_v12, 0.0 }
0x2fac   : > { %5152 = vadd.xlane.f32.xlu1 %v5151_v25 }
0x3039   : > { %v5153_v60 = vpop.xlane.xlu1 %5152 }
0x303a   : > { %v5154_v26 = vmul.f32 0.015625, %v5153_v60 }
0x303c   : > { %v5155_v7 = vadd.f32 1e-05, %v5154_v26 }
0x303e   : > { %6493 = vrsqrt.f32 %v5155_v7 }
0x3048   : > { %v6494_v40 = vpop.eup %6493 }
0x3049   : > { %v5157_v63 = vmul.f32 %v6494_v40, %v5149_v8 }
0x304b   : > { %v5162_v42 = vmul.f32 %v5161_v38, %v5157_v63 }
0x304d   : > { %v5167_v45 = vadd.f32 %v5166_v32, %v5162_v42 }
0x304f   : > { %5168 = vst.msk [vmem:[%s379_s30] sm:$0x3] %vm621_vm1, %v5167_v45 }
0x3050   : > { %6510 = shalt.err (!%p6507_p3)
}
0x3051   : > { %s6511_s16 = scalar_lea.hbm %s8024_s19, 32  ;;  %s6515_s25 = scalar_lea.hbm %s8078_s11, 64 }
0x3052   : > { %p6512_p4 = scmp.ne.s32.totalorder %s8024_s19, %s6511_s16  ;;  %p6516_p9 = scmp.lt.u32.totalorder %s8024_s19, %s8078_s11 }
0x3053   : > { %p6517_p10 = scmp.lt.u32.totalorder %s6515_s25, %s6511_s16  ;;  %p6519_p12 = scmp.lt.u32.totalorder %s6511_s16, %s8024_s19 }
0x3054   : > { %p6513_p7 = pnand %p6512_p4, %p6670_p5 }
0x3055   : > { %p6518_p11 = por %p6517_p10, %p6516_p9 }
0x3056   : > { %p6514_p8 = pneg %p6513_p7 }
0x3057   : > { %p6520_p13 = por %p6519_p12, %p6518_p11 }
0x3059   : > { %p6521_p0 = pnand %p6520_p13, %p6514_p8 }
0x305b   : > { %6524 = shalt.err (!%p6521_p0)
}
0x305c   : > { %6060 = dma.vmem_to_hbm [thread:$0]  (%p6670_p5), %s8026_s24, 32, %s8024_s19, %s5170_s23  }
0x305d PF: > { %p6066_p1 = scmp.ge.s32.totalorder %s6559_s20, 2  ;;  %s5195_s13 = sand.u32 1, %s6547_s17  }
0x305e   : > { %s5196_s26 = scalar_lea.sflag [#allocation4], %s5195_s13 }
0x305f   : > { %p6063_p2 = pnand %p6066_p1, %p6674_p6 }
0x3061   : > { %6542 = dma.done.wait (!%p6063_p2), %s5196_s26, 32  }
0x3062   : > { %6544 = vsyncadd (!%p6063_p2), %s5196_s26, 4294967264  ;;  %s8099_s20 = sld [smem:[#allocation7_spill]]  ;;  %s8100_s21 = sld [smem:[#allocation6_spill]] }
0x3063   : > { %s8101_s19 = sld [smem:[#allocation8_spill]]  ;;  %s8102_s17 = smov %s6551_s18 }
0x3068   : > { %p21_p3 = scmp.ge.s32.totalorder %s8099_s20, 4   ;;  %s8103_s18 = smov %s8100_s21 }
0x306a   :  { %23 = sbr.rel (!%p21_p3) target bundleno = 3 (0x3), region = 106 }
0x3071   :  { %5201 = vsyncpa [#allocation4], 1 }
0x3072   :  { %5203 = vsyncpa [#allocation4 + $0x1], 1 }

</bundles_post_ra>
